<compile_context>
chip_gen: v7x
topology: tpu7x:2x2x1
jax: 0.10.0
libtpu: 0.0.40
codegen_flags: <defaults>
</compile_context>

<pallas_src>
import math

import jax
import jax.numpy as jnp
from jax import lax
from jax.experimental import pallas as pl
from jax.experimental.pallas import tpu as pltpu


def _layer_norm(x, w, b, eps=1e-6):
    # x: (T, H), w/b: (1, H). Matches torch.nn.LayerNorm(eps=1e-06), biased var.
    mean = jnp.mean(x, axis=-1, keepdims=True)
    var = jnp.mean((x - mean) ** 2, axis=-1, keepdims=True)
    return (x - mean) * lax.rsqrt(var + eps) * w + b


# Contract the last dim of both operands: A @ B^T without materializing B^T
# (the MXU consumes the transposed RHS directly).
_NT_DIMS = (((1,), (1,)), ((), ()))


def make_encoder_layer_kernel(n_heads: int, head_dim: int):
    scale = 1.0 / math.sqrt(head_dim)

    def kernel(src_full_ref, src_q_ref, mask_ref,
               wq_ref, bq_ref, wk_ref, bk_ref, wv_ref, bv_ref,
               wo_ref, bo_ref, ln1w_ref, ln1b_ref,
               w1_ref, b1_ref, w2_ref, b2_ref,
               ln2w_ref, ln2b_ref,
               out_ref, k_sc, v_sc, ctx_sc):
        qi = pl.program_id(1)

        # ---- K / V projections over the full sequence: compute once per batch
        #      element (first query tile) and keep resident in VMEM scratch. ----
        @pl.when(qi == 0)
        def _():
            x_all = src_full_ref[0].astype(jnp.bfloat16)                      # (S, H)
            k = jnp.dot(x_all, wk_ref[...],
                        preferred_element_type=jnp.float32) + bk_ref[...]
            v = jnp.dot(x_all, wv_ref[...],
                        preferred_element_type=jnp.float32) + bv_ref[...]
            k_sc[...] = k.astype(jnp.bfloat16)
            v_sc[...] = v.astype(jnp.bfloat16)

        x = src_q_ref[0].astype(jnp.float32)                                  # (Tq, H)
        x16 = x.astype(jnp.bfloat16)

        # ---- Q projection; fold the 1/sqrt(d) scale into q once (cheaper than
        #      one (Tq, S) multiply per head). ----
        q = jnp.dot(x16, wq_ref[...],
                    preferred_element_type=jnp.float32) + bq_ref[...]
        q16 = (q * scale).astype(jnp.bfloat16)

        # ---- additive key-mask bias, hoisted out of the head loop ----
        tq = q.shape[0]
        seq = k_sc.shape[0]
        mask_bias = jnp.broadcast_to(
            (mask_ref[0].astype(jnp.float32) - 1.0) * 1e10, (tq, seq))

        # ---- per-head attention (static unroll, n_heads is small & static);
        #      head outputs go straight into the context scratch (no concat). ----
        for h in range(n_heads):
            sl = slice(h * head_dim, (h + 1) * head_dim)
            s = lax.dot_general(q16[:, sl], k_sc[:, sl], _NT_DIMS,
                                preferred_element_type=jnp.float32)           # (Tq, S)
            s = s + mask_bias
            s = s - jnp.max(s, axis=-1, keepdims=True)
            p = jnp.exp(s)
            p = p * pl.reciprocal(jnp.sum(p, axis=-1, keepdims=True), approx=True)
            ctx_sc[:, sl] = jnp.dot(p.astype(jnp.bfloat16), v_sc[:, sl],
                                    preferred_element_type=jnp.float32
                                    ).astype(jnp.bfloat16)

        attn = jnp.dot(ctx_sc[...], wo_ref[...],
                       preferred_element_type=jnp.float32) + bo_ref[...]

        # ---- residual + LayerNorm 1 (f32) ----
        h1 = _layer_norm(x + attn, ln1w_ref[...], ln1b_ref[...])

        # ---- position-wise FFN on this query tile only ((Tq, P) intermediate) ----
        ff = jnp.dot(h1.astype(jnp.bfloat16), w1_ref[...],
                     preferred_element_type=jnp.float32) + b1_ref[...]
        ff = jnp.maximum(ff, 0.0)
        ff = jnp.dot(ff.astype(jnp.bfloat16), w2_ref[...],
                     preferred_element_type=jnp.float32) + b2_ref[...]

        # ---- residual + LayerNorm 2 (f32) ----
        out = _layer_norm(h1 + ff, ln2w_ref[...], ln2b_ref[...])
        out_ref[0] = out.astype(out_ref.dtype)

    return kernel


def _pick_q_tile(seq_len: int) -> int:
    for t in (256, 128, 64, 32, 16, 8):
        if seq_len % t == 0:
            return t
    return seq_len  # block equals full dim -> always legal


def _build_encoder_call(B, S, H, P, n_heads, tq, out_dtype, single_buffer_weights):
    head_dim = H // n_heads
    n_q_tiles = S // tq

    if single_buffer_weights:
        # Weights / biases / LN params are grid-invariant: one VMEM buffer is
        # enough (halves their footprint vs. default double-buffering).
        def wspec(shape):
            return pl.BlockSpec(shape, lambda b, qi: (0, 0),
                                pipeline_mode=pl.Buffered(1))
    else:
        def wspec(shape):
            return pl.BlockSpec(shape, lambda b, qi: (0, 0))

    in_specs = [
        pl.BlockSpec((1, S, H), lambda b, qi: (b, 0, 0)),    # src (full seq, K/V)
        pl.BlockSpec((1, tq, H), lambda b, qi: (b, qi, 0)),  # src (query tile)
        pl.BlockSpec((1, 1, S), lambda b, qi: (b, 0, 0)),    # mask (B, 1, S)
        wspec((H, H)), wspec((1, H)),     # Wq, bq
        wspec((H, H)), wspec((1, H)),     # Wk, bk
        wspec((H, H)), wspec((1, H)),     # Wv, bv
        wspec((H, H)), wspec((1, H)),     # Wo, bo
        wspec((1, H)), wspec((1, H)),     # ln1 w, b
        wspec((H, P)), wspec((1, P)),     # W1, b1
        wspec((P, H)), wspec((1, H)),     # W2, b2
        wspec((1, H)), wspec((1, H)),     # ln2 w, b
    ]

    flops = int(B * (8 * S * H * H + 4 * S * S * H + 4 * S * H * P))
    transcendentals = int(B * n_heads * S * S)
    bytes_accessed = int(2 * (4 * H * H + 2 * H * P)        # bf16 matmul weights
                         + 4 * (8 * H + 2 * P)              # f32 biases / LN params
                         + 3 * B * S * H * 4                # src (2 views) + out
                         + B * S * 4)                       # mask

    kernel = make_encoder_layer_kernel(n_heads, head_dim)

    return pl.pallas_call(
        kernel,
        out_shape=jax.ShapeDtypeStruct((B, S, H), out_dtype),
        grid_spec=pltpu.PrefetchScalarGridSpec(
            num_scalar_prefetch=0,
            grid=(B, n_q_tiles),
            in_specs=in_specs,
            out_specs=pl.BlockSpec((1, tq, H), lambda b, qi: (b, qi, 0)),
            scratch_shapes=[
                pltpu.VMEM((S, H), jnp.bfloat16),    # cached K (all heads packed)
                pltpu.VMEM((S, H), jnp.bfloat16),    # cached V
                pltpu.VMEM((tq, H), jnp.bfloat16),   # per-tile attention context
            ]),
        compiler_params=pltpu.CompilerParams(
            # query-tile axis must stay sequential ("arbitrary") so the K/V
            # scratch written at qi == 0 is reusable by later tiles of a batch.
            dimension_semantics=("parallel", "arbitrary"),
            vmem_limit_bytes=48 * 1024 * 1024),
        cost_estimate=pl.CostEstimate(flops=flops,
                                      transcendentals=transcendentals,
                                      bytes_accessed=bytes_accessed),
    )


def encoder_layer(src, src_mask, params, n_heads, q_tile=None):
    B, S, H = src.shape
    P = params["w1"].shape[1]
    tq = q_tile if q_tile is not None else _pick_q_tile(S)
    assert S % tq == 0

    bf16 = jnp.bfloat16
    args = (src, src, src_mask,
            params["wq"].astype(bf16), params["bq"],
            params["wk"].astype(bf16), params["bk"],
            params["wv"].astype(bf16), params["bv"],
            params["wo"].astype(bf16), params["bo"],
            params["ln1_w"], params["ln1_b"],
            params["w1"].astype(bf16), params["b1"],
            params["w2"].astype(bf16), params["b2"],
            params["ln2_w"], params["ln2_b"])

    # Prefer single-buffered grid-invariant weights; fall back to default
    # double-buffering if this JAX build rejects pl.Buffered(1) on pallas_call.
    try:
        call = _build_encoder_call(B, S, H, P, n_heads, tq, src.dtype, True)
        return call(*args)
    except Exception:  # safe functional fallback, identical math
        call = _build_encoder_call(B, S, H, P, n_heads, tq, src.dtype, False)
        return call(*args)


def encoder_layer_reference(src, src_mask, params, n_heads):
    """Pure-JAX f32 reference matching the PyTorch module (eval mode)."""
    B, S, H = src.shape
    d = H // n_heads
    x = src.astype(jnp.float32)
    q = x @ params["wq"] + params["bq"]
    k = x @ params["wk"] + params["bk"]
    v = x @ params["wv"] + params["bv"]

    def split(t):  # (B, S, H) -> (B, nh, S, d)
        return t.reshape(B, S, n_heads, d).transpose(0, 2, 1, 3)

    qh, kh, vh = split(q), split(k), split(v)
    scores = jnp.einsum("bhqd,bhkd->bhqk", qh, kh) / math.sqrt(d)
    mask = src_mask[:, None, :, :]                     # (B, 1, 1, S)
    scores = jnp.where(mask == 0.0, -1e10, scores)
    p = jax.nn.softmax(scores, axis=-1)
    ctx = jnp.einsum("bhqk,bhkd->bhqd", p, vh)
    ctx = ctx.transpose(0, 2, 1, 3).reshape(B, S, H)
    attn = ctx @ params["wo"] + params["bo"]

    def ln(t, w, b):
        m = t.mean(-1, keepdims=True)
        var = ((t - m) ** 2).mean(-1, keepdims=True)
        return (t - m) / jnp.sqrt(var + 1e-6) * w + b

    h1 = ln(x + attn, params["ln1_w"], params["ln1_b"])
    ff = jnp.maximum(h1 @ params["w1"] + params["b1"], 0.0)
    ff = ff @ params["w2"] + params["b2"]
    return ln(h1 + ff, params["ln2_w"], params["ln2_b"])


def init_params(key, hid_dim, pwff_dim):
    ks = jax.random.split(key, 8)
    s = 0.02
    f32 = jnp.float32
    return {
        "wq": jax.random.normal(ks[0], (hid_dim, hid_dim), f32) * s,
        "bq": jnp.zeros((1, hid_dim), f32),
        "wk": jax.random.normal(ks[1], (hid_dim, hid_dim), f32) * s,
        "bk": jnp.zeros((1, hid_dim), f32),
        "wv": jax.random.normal(ks[2], (hid_dim, hid_dim), f32) * s,
        "bv": jnp.zeros((1, hid_dim), f32),
        "wo": jax.random.normal(ks[3], (hid_dim, hid_dim), f32) * s,
        "bo": jnp.zeros((1, hid_dim), f32),
        "ln1_w": jnp.ones((1, hid_dim), f32),
        "ln1_b": jnp.zeros((1, hid_dim), f32),
        "w1": jax.random.normal(ks[4], (hid_dim, pwff_dim), f32) * s,
        "b1": jnp.zeros((1, pwff_dim), f32),
        "w2": jax.random.normal(ks[5], (pwff_dim, hid_dim), f32) * s,
        "b2": jnp.zeros((1, hid_dim), f32),
        "ln2_w": jnp.ones((1, hid_dim), f32),
        "ln2_b": jnp.zeros((1, hid_dim), f32),
    }


if __name__ == "__main__":
    B, S, H, n_heads, pwff = 2, 8, 32, 4, 64

    key = jax.random.PRNGKey(0)
    k_src, k_params = jax.random.split(key)

    src = jax.random.normal(k_src, (B, S, H), jnp.float32)
    # mask: (B, 1, S); 1 = valid, 0 = padded (last two positions of batch 1 masked)
    src_mask = jnp.ones((B, 1, S), jnp.float32).at[1, 0, -2:].set(0.0)

    params = init_params(k_params, H, pwff)

    out = encoder_layer(src, src_mask, params, n_heads)
    out = jax.block_until_ready(out)
    assert out.shape == (B, S, H)

    # sanity check against a pure-JAX f32 reference (loose tol: bf16 MXU inputs)
    ref = encoder_layer_reference(src, src_mask, params, n_heads)
    max_err = float(jnp.max(jnp.abs(out.astype(jnp.float32) - ref)))
    assert max_err < 5e-2, f"max abs error too large: {max_err}"

    print("KERNEL_OK")
</pallas_src>

<mosaic_0001>
module attributes {stable_mosaic.version = 11 : i64} {
  func.func @kernel(%arg0: i32, %arg1: i32, %arg2: memref<1x8x32xf32, #tpu.memory_space<vmem>>, %arg3: memref<1x8x32xf32, #tpu.memory_space<vmem>>, %arg4: memref<1x1x8xf32, #tpu.memory_space<vmem>>, %arg5: memref<32x32xbf16, #tpu.memory_space<vmem>>, %arg6: memref<1x32xf32, #tpu.memory_space<vmem>>, %arg7: memref<32x32xbf16, #tpu.memory_space<vmem>>, %arg8: memref<1x32xf32, #tpu.memory_space<vmem>>, %arg9: memref<32x32xbf16, #tpu.memory_space<vmem>>, %arg10: memref<1x32xf32, #tpu.memory_space<vmem>>, %arg11: memref<32x32xbf16, #tpu.memory_space<vmem>>, %arg12: memref<1x32xf32, #tpu.memory_space<vmem>>, %arg13: memref<1x32xf32, #tpu.memory_space<vmem>>, %arg14: memref<1x32xf32, #tpu.memory_space<vmem>>, %arg15: memref<32x64xbf16, #tpu.memory_space<vmem>>, %arg16: memref<1x64xf32, #tpu.memory_space<vmem>>, %arg17: memref<64x32xbf16, #tpu.memory_space<vmem>>, %arg18: memref<1x32xf32, #tpu.memory_space<vmem>>, %arg19: memref<1x32xf32, #tpu.memory_space<vmem>>, %arg20: memref<1x32xf32, #tpu.memory_space<vmem>>, %arg21: memref<1x8x32xf32, #tpu.memory_space<vmem>>, %arg22: memref<8x32xbf16, #tpu.memory_space<vmem>>, %arg23: memref<8x32xbf16, #tpu.memory_space<vmem>>, %arg24: memref<8x32xbf16, #tpu.memory_space<vmem>>) attributes {dimension_semantics = [#tpu.dimension_semantics<parallel>, #tpu.dimension_semantics<arbitrary>], iteration_bounds = array<i64: 2, 1>, scalar_prefetch = 0 : i64, scratch_operands = 3 : i64, tpu.core_type = #tpu.core_type<tc>, window_params = [{transform_indices = @transform_0, window_bounds = array<i64: 1, 8, 32>}, {transform_indices = @transform_1, window_bounds = array<i64: 1, 8, 32>}, {transform_indices = @transform_2, window_bounds = array<i64: 1, 1, 8>}, {pipeline_mode = #tpu.pipeline_mode<synchronous>, transform_indices = @transform_3, window_bounds = array<i64: 32, 32>}, {pipeline_mode = #tpu.pipeline_mode<synchronous>, transform_indices = @transform_4, window_bounds = array<i64: 1, 32>}, {pipeline_mode = #tpu.pipeline_mode<synchronous>, transform_indices = @transform_5, window_bounds = array<i64: 32, 32>}, {pipeline_mode = #tpu.pipeline_mode<synchronous>, transform_indices = @transform_6, window_bounds = array<i64: 1, 32>}, {pipeline_mode = #tpu.pipeline_mode<synchronous>, transform_indices = @transform_7, window_bounds = array<i64: 32, 32>}, {pipeline_mode = #tpu.pipeline_mode<synchronous>, transform_indices = @transform_8, window_bounds = array<i64: 1, 32>}, {pipeline_mode = #tpu.pipeline_mode<synchronous>, transform_indices = @transform_9, window_bounds = array<i64: 32, 32>}, {pipeline_mode = #tpu.pipeline_mode<synchronous>, transform_indices = @transform_10, window_bounds = array<i64: 1, 32>}, {pipeline_mode = #tpu.pipeline_mode<synchronous>, transform_indices = @transform_11, window_bounds = array<i64: 1, 32>}, {pipeline_mode = #tpu.pipeline_mode<synchronous>, transform_indices = @transform_12, window_bounds = array<i64: 1, 32>}, {pipeline_mode = #tpu.pipeline_mode<synchronous>, transform_indices = @transform_13, window_bounds = array<i64: 32, 64>}, {pipeline_mode = #tpu.pipeline_mode<synchronous>, transform_indices = @transform_14, window_bounds = array<i64: 1, 64>}, {pipeline_mode = #tpu.pipeline_mode<synchronous>, transform_indices = @transform_15, window_bounds = array<i64: 64, 32>}, {pipeline_mode = #tpu.pipeline_mode<synchronous>, transform_indices = @transform_16, window_bounds = array<i64: 1, 32>}, {pipeline_mode = #tpu.pipeline_mode<synchronous>, transform_indices = @transform_17, window_bounds = array<i64: 1, 32>}, {pipeline_mode = #tpu.pipeline_mode<synchronous>, transform_indices = @transform_18, window_bounds = array<i64: 1, 32>}, {transform_indices = @transform_19, window_bounds = array<i64: 1, 8, 32>}]} {
    %c0_i32 = arith.constant 0 : i32
    %0 = arith.cmpi eq, %arg1, %c0_i32 : i32
    %1 = arith.extui %0 : i1 to i32
    %c0_i32_0 = arith.constant 0 : i32
    %2 = arith.cmpi ne, %1, %c0_i32_0 : i32
    scf.if %2 {
      %c0_89 = arith.constant 0 : index
      %c0_90 = arith.constant 0 : index
      %c0_91 = arith.constant 0 : index
      %171 = vector.load %arg2[%c0_89, %c0_90, %c0_91] : memref<1x8x32xf32, #tpu.memory_space<vmem>>, vector<1x8x32xf32>
      %172 = vector.shape_cast %171 : vector<1x8x32xf32> to vector<8x32xf32>
      %173 = arith.truncf %172 : vector<8x32xf32> to vector<8x32xbf16>
      %c0_92 = arith.constant 0 : index
      %c0_93 = arith.constant 0 : index
      %174 = vector.load %arg7[%c0_92, %c0_93] : memref<32x32xbf16, #tpu.memory_space<vmem>>, vector<32x32xbf16>
      %cst_94 = arith.constant dense<0.000000e+00> : vector<8x32xf32>
      %175 = tpu.matmul %173, %174, %cst_94 {dimension_numbers = #tpu.dot_dimension_numbers<[1], [0], [0], [1], [0, 0, 1, 1], [], []>} : vector<8x32xbf16>, vector<32x32xbf16>, vector<8x32xf32> -> vector<8x32xf32>
      %c0_95 = arith.constant 0 : index
      %c0_96 = arith.constant 0 : index
      %176 = vector.load %arg8[%c0_95, %c0_96] : memref<1x32xf32, #tpu.memory_space<vmem>>, vector<1x32xf32>
      %177 = vector.broadcast %176 : vector<1x32xf32> to vector<8x32xf32>
      %178 = arith.addf %175, %177 : vector<8x32xf32>
      %c0_97 = arith.constant 0 : index
      %c0_98 = arith.constant 0 : index
      %179 = vector.load %arg9[%c0_97, %c0_98] : memref<32x32xbf16, #tpu.memory_space<vmem>>, vector<32x32xbf16>
      %cst_99 = arith.constant dense<0.000000e+00> : vector<8x32xf32>
      %180 = tpu.matmul %173, %179, %cst_99 {dimension_numbers = #tpu.dot_dimension_numbers<[1], [0], [0], [1], [0, 0, 1, 1], [], []>} : vector<8x32xbf16>, vector<32x32xbf16>, vector<8x32xf32> -> vector<8x32xf32>
      %c0_100 = arith.constant 0 : index
      %c0_101 = arith.constant 0 : index
      %181 = vector.load %arg10[%c0_100, %c0_101] : memref<1x32xf32, #tpu.memory_space<vmem>>, vector<1x32xf32>
      %182 = vector.broadcast %181 : vector<1x32xf32> to vector<8x32xf32>
      %183 = arith.addf %180, %182 : vector<8x32xf32>
      %184 = arith.truncf %178 : vector<8x32xf32> to vector<8x32xbf16>
      %c0_102 = arith.constant 0 : index
      %c0_103 = arith.constant 0 : index
      %185 = vector.load %arg22[%c0_102, %c0_103] : memref<8x32xbf16, #tpu.memory_space<vmem>>, vector<8x32xbf16>
      tpu.vector_store %arg22[%c0_102, %c0_103], %184 {strides = array<i32>} : memref<8x32xbf16, #tpu.memory_space<vmem>>, vector<8x32xbf16>,
      %186 = arith.truncf %183 : vector<8x32xf32> to vector<8x32xbf16>
      %c0_104 = arith.constant 0 : index
      %c0_105 = arith.constant 0 : index
      %187 = vector.load %arg23[%c0_104, %c0_105] : memref<8x32xbf16, #tpu.memory_space<vmem>>, vector<8x32xbf16>
      tpu.vector_store %arg23[%c0_104, %c0_105], %186 {strides = array<i32>} : memref<8x32xbf16, #tpu.memory_space<vmem>>, vector<8x32xbf16>,
    } else {
    }
    %c0 = arith.constant 0 : index
    %c0_1 = arith.constant 0 : index
    %c0_2 = arith.constant 0 : index
    %3 = vector.load %arg3[%c0, %c0_1, %c0_2] : memref<1x8x32xf32, #tpu.memory_space<vmem>>, vector<1x8x32xf32>
    %4 = vector.shape_cast %3 : vector<1x8x32xf32> to vector<8x32xf32>
    %5 = arith.truncf %4 : vector<8x32xf32> to vector<8x32xbf16>
    %c0_3 = arith.constant 0 : index
    %c0_4 = arith.constant 0 : index
    %6 = vector.load %arg5[%c0_3, %c0_4] : memref<32x32xbf16, #tpu.memory_space<vmem>>, vector<32x32xbf16>
    %cst = arith.constant dense<0.000000e+00> : vector<8x32xf32>
    %7 = tpu.matmul %5, %6, %cst {dimension_numbers = #tpu.dot_dimension_numbers<[1], [0], [0], [1], [0, 0, 1, 1], [], []>} : vector<8x32xbf16>, vector<32x32xbf16>, vector<8x32xf32> -> vector<8x32xf32>
    %c0_5 = arith.constant 0 : index
    %c0_6 = arith.constant 0 : index
    %8 = vector.load %arg6[%c0_5, %c0_6] : memref<1x32xf32, #tpu.memory_space<vmem>>, vector<1x32xf32>
    %9 = vector.broadcast %8 : vector<1x32xf32> to vector<8x32xf32>
    %10 = arith.addf %7, %9 : vector<8x32xf32>
    %cst_7 = arith.constant 0.353553385 : f32
    %11 = vector.broadcast %cst_7 : f32 to vector<8x32xf32>
    %12 = arith.mulf %10, %11 : vector<8x32xf32>
    %13 = arith.truncf %12 : vector<8x32xf32> to vector<8x32xbf16>
    %c0_8 = arith.constant 0 : index
    %c0_9 = arith.constant 0 : index
    %c0_10 = arith.constant 0 : index
    %14 = vector.load %arg4[%c0_8, %c0_9, %c0_10] : memref<1x1x8xf32, #tpu.memory_space<vmem>>, vector<1x1x8xf32>
    %15 = vector.shape_cast %14 : vector<1x1x8xf32> to vector<1x8xf32>
    %cst_11 = arith.constant 1.000000e+00 : f32
    %16 = vector.broadcast %cst_11 : f32 to vector<1x8xf32>
    %17 = arith.subf %15, %16 : vector<1x8xf32>
    %cst_12 = arith.constant 1.000000e+10 : f32
    %18 = vector.broadcast %cst_12 : f32 to vector<1x8xf32>
    %19 = arith.mulf %17, %18 : vector<1x8xf32>
    %20 = vector.shape_cast %19 : vector<1x8xf32> to vector<1x8xf32>
    %21 = vector.broadcast %20 : vector<1x8xf32> to vector<8x8xf32>
    %22 = vector.extract_strided_slice %13 {offsets = [0, 0], sizes = [8, 8], strides = [1, 1]} : vector<8x32xbf16> to vector<8x8xbf16>
    %c0_13 = arith.constant 0 : index
    %c0_14 = arith.constant 0 : index
    %23 = vector.load %arg22[%c0_13, %c0_14] : memref<8x32xbf16, #tpu.memory_space<vmem>>, vector<8x8xbf16>
    %cst_15 = arith.constant dense<0.000000e+00> : vector<8x8xf32>
    %24 = tpu.matmul %22, %23, %cst_15 {dimension_numbers = #tpu.dot_dimension_numbers<[1], [1], [0], [0], [0, 0, 1, 0], [], []>} : vector<8x8xbf16>, vector<8x8xbf16>, vector<8x8xf32> -> vector<8x8xf32>
    %25 = arith.addf %24, %21 : vector<8x8xf32>
    %cst_16 = arith.constant dense<0xFF800000> : vector<8xf32>
    %26 = vector.multi_reduction <maximumf>, %25, %cst_16 [1] : vector<8x8xf32> to vector<8xf32>
    %27 = vector.shape_cast %26 : vector<8xf32> to vector<8x1xf32>
    %28 = vector.broadcast %27 : vector<8x1xf32> to vector<8x8xf32>
    %29 = arith.subf %25, %28 : vector<8x8xf32>
    %30 = math.exp %29 : vector<8x8xf32>
    %cst_17 = arith.constant dense<0.000000e+00> : vector<8xf32>
    %31 = vector.multi_reduction <add>, %30, %cst_17 [1] : vector<8x8xf32> to vector<8xf32>
    %32 = vector.shape_cast %31 : vector<8xf32> to vector<8x1xf32>
    %33 = tpu.reciprocal %32 {approx = true} : vector<8x1xf32> -> vector<8x1xf32>
    %34 = vector.broadcast %33 : vector<8x1xf32> to vector<8x8xf32>
    %35 = arith.mulf %30, %34 : vector<8x8xf32>
    %36 = arith.truncf %35 : vector<8x8xf32> to vector<8x8xbf16>
    %c0_18 = arith.constant 0 : index
    %c0_19 = arith.constant 0 : index
    %37 = vector.load %arg23[%c0_18, %c0_19] : memref<8x32xbf16, #tpu.memory_space<vmem>>, vector<8x8xbf16>
    %cst_20 = arith.constant dense<0.000000e+00> : vector<8x8xf32>
    %38 = tpu.matmul %36, %37, %cst_20 {dimension_numbers = #tpu.dot_dimension_numbers<[1], [0], [0], [1], [0, 0, 1, 1], [], []>} : vector<8x8xbf16>, vector<8x8xbf16>, vector<8x8xf32> -> vector<8x8xf32>
    %39 = arith.truncf %38 : vector<8x8xf32> to vector<8x8xbf16>
    %c0_21 = arith.constant 0 : index
    %c0_22 = arith.constant 0 : index
    %40 = vector.load %arg24[%c0_21, %c0_22] : memref<8x32xbf16, #tpu.memory_space<vmem>>, vector<8x8xbf16>
    tpu.vector_store %arg24[%c0_21, %c0_22], %39 {strides = array<i32>} : memref<8x32xbf16, #tpu.memory_space<vmem>>, vector<8x8xbf16>,
    %41 = vector.extract_strided_slice %13 {offsets = [0, 8], sizes = [8, 8], strides = [1, 1]} : vector<8x32xbf16> to vector<8x8xbf16>
    %c0_23 = arith.constant 0 : index
    %c8 = arith.constant 8 : index
    %42 = vector.load %arg22[%c0_23, %c8] : memref<8x32xbf16, #tpu.memory_space<vmem>>, vector<8x8xbf16>
    %cst_24 = arith.constant dense<0.000000e+00> : vector<8x8xf32>
    %43 = tpu.matmul %41, %42, %cst_24 {dimension_numbers = #tpu.dot_dimension_numbers<[1], [1], [0], [0], [0, 0, 1, 0], [], []>} : vector<8x8xbf16>, vector<8x8xbf16>, vector<8x8xf32> -> vector<8x8xf32>
    %44 = arith.addf %43, %21 : vector<8x8xf32>
    %cst_25 = arith.constant dense<0xFF800000> : vector<8xf32>
    %45 = vector.multi_reduction <maximumf>, %44, %cst_25 [1] : vector<8x8xf32> to vector<8xf32>
    %46 = vector.shape_cast %45 : vector<8xf32> to vector<8x1xf32>
    %47 = vector.broadcast %46 : vector<8x1xf32> to vector<8x8xf32>
    %48 = arith.subf %44, %47 : vector<8x8xf32>
    %49 = math.exp %48 : vector<8x8xf32>
    %cst_26 = arith.constant dense<0.000000e+00> : vector<8xf32>
    %50 = vector.multi_reduction <add>, %49, %cst_26 [1] : vector<8x8xf32> to vector<8xf32>
    %51 = vector.shape_cast %50 : vector<8xf32> to vector<8x1xf32>
    %52 = tpu.reciprocal %51 {approx = true} : vector<8x1xf32> -> vector<8x1xf32>
    %53 = vector.broadcast %52 : vector<8x1xf32> to vector<8x8xf32>
    %54 = arith.mulf %49, %53 : vector<8x8xf32>
    %55 = arith.truncf %54 : vector<8x8xf32> to vector<8x8xbf16>
    %c0_27 = arith.constant 0 : index
    %c8_28 = arith.constant 8 : index
    %56 = vector.load %arg23[%c0_27, %c8_28] : memref<8x32xbf16, #tpu.memory_space<vmem>>, vector<8x8xbf16>
    %cst_29 = arith.constant dense<0.000000e+00> : vector<8x8xf32>
    %57 = tpu.matmul %55, %56, %cst_29 {dimension_numbers = #tpu.dot_dimension_numbers<[1], [0], [0], [1], [0, 0, 1, 1], [], []>} : vector<8x8xbf16>, vector<8x8xbf16>, vector<8x8xf32> -> vector<8x8xf32>
    %58 = arith.truncf %57 : vector<8x8xf32> to vector<8x8xbf16>
    %c0_30 = arith.constant 0 : index
    %c8_31 = arith.constant 8 : index
    %59 = vector.load %arg24[%c0_30, %c8_31] : memref<8x32xbf16, #tpu.memory_space<vmem>>, vector<8x8xbf16>
    tpu.vector_store %arg24[%c0_30, %c8_31], %58 {strides = array<i32>} : memref<8x32xbf16, #tpu.memory_space<vmem>>, vector<8x8xbf16>,
    %60 = vector.extract_strided_slice %13 {offsets = [0, 16], sizes = [8, 8], strides = [1, 1]} : vector<8x32xbf16> to vector<8x8xbf16>
    %c0_32 = arith.constant 0 : index
    %c16 = arith.constant 16 : index
    %61 = vector.load %arg22[%c0_32, %c16] : memref<8x32xbf16, #tpu.memory_space<vmem>>, vector<8x8xbf16>
    %cst_33 = arith.constant dense<0.000000e+00> : vector<8x8xf32>
    %62 = tpu.matmul %60, %61, %cst_33 {dimension_numbers = #tpu.dot_dimension_numbers<[1], [1], [0], [0], [0, 0, 1, 0], [], []>} : vector<8x8xbf16>, vector<8x8xbf16>, vector<8x8xf32> -> vector<8x8xf32>
    %63 = arith.addf %62, %21 : vector<8x8xf32>
    %cst_34 = arith.constant dense<0xFF800000> : vector<8xf32>
    %64 = vector.multi_reduction <maximumf>, %63, %cst_34 [1] : vector<8x8xf32> to vector<8xf32>
    %65 = vector.shape_cast %64 : vector<8xf32> to vector<8x1xf32>
    %66 = vector.broadcast %65 : vector<8x1xf32> to vector<8x8xf32>
    %67 = arith.subf %63, %66 : vector<8x8xf32>
    %68 = math.exp %67 : vector<8x8xf32>
    %cst_35 = arith.constant dense<0.000000e+00> : vector<8xf32>
    %69 = vector.multi_reduction <add>, %68, %cst_35 [1] : vector<8x8xf32> to vector<8xf32>
    %70 = vector.shape_cast %69 : vector<8xf32> to vector<8x1xf32>
    %71 = tpu.reciprocal %70 {approx = true} : vector<8x1xf32> -> vector<8x1xf32>
    %72 = vector.broadcast %71 : vector<8x1xf32> to vector<8x8xf32>
    %73 = arith.mulf %68, %72 : vector<8x8xf32>
    %74 = arith.truncf %73 : vector<8x8xf32> to vector<8x8xbf16>
    %c0_36 = arith.constant 0 : index
    %c16_37 = arith.constant 16 : index
    %75 = vector.load %arg23[%c0_36, %c16_37] : memref<8x32xbf16, #tpu.memory_space<vmem>>, vector<8x8xbf16>
    %cst_38 = arith.constant dense<0.000000e+00> : vector<8x8xf32>
    %76 = tpu.matmul %74, %75, %cst_38 {dimension_numbers = #tpu.dot_dimension_numbers<[1], [0], [0], [1], [0, 0, 1, 1], [], []>} : vector<8x8xbf16>, vector<8x8xbf16>, vector<8x8xf32> -> vector<8x8xf32>
    %77 = arith.truncf %76 : vector<8x8xf32> to vector<8x8xbf16>
    %c0_39 = arith.constant 0 : index
    %c16_40 = arith.constant 16 : index
    %78 = vector.load %arg24[%c0_39, %c16_40] : memref<8x32xbf16, #tpu.memory_space<vmem>>, vector<8x8xbf16>
    tpu.vector_store %arg24[%c0_39, %c16_40], %77 {strides = array<i32>} : memref<8x32xbf16, #tpu.memory_space<vmem>>, vector<8x8xbf16>,
    %79 = vector.extract_strided_slice %13 {offsets = [0, 24], sizes = [8, 8], strides = [1, 1]} : vector<8x32xbf16> to vector<8x8xbf16>
    %c0_41 = arith.constant 0 : index
    %c24 = arith.constant 24 : index
    %80 = vector.load %arg22[%c0_41, %c24] : memref<8x32xbf16, #tpu.memory_space<vmem>>, vector<8x8xbf16>
    %cst_42 = arith.constant dense<0.000000e+00> : vector<8x8xf32>
    %81 = tpu.matmul %79, %80, %cst_42 {dimension_numbers = #tpu.dot_dimension_numbers<[1], [1], [0], [0], [0, 0, 1, 0], [], []>} : vector<8x8xbf16>, vector<8x8xbf16>, vector<8x8xf32> -> vector<8x8xf32>
    %82 = arith.addf %81, %21 : vector<8x8xf32>
    %cst_43 = arith.constant dense<0xFF800000> : vector<8xf32>
    %83 = vector.multi_reduction <maximumf>, %82, %cst_43 [1] : vector<8x8xf32> to vector<8xf32>
    %84 = vector.shape_cast %83 : vector<8xf32> to vector<8x1xf32>
    %85 = vector.broadcast %84 : vector<8x1xf32> to vector<8x8xf32>
    %86 = arith.subf %82, %85 : vector<8x8xf32>
    %87 = math.exp %86 : vector<8x8xf32>
    %cst_44 = arith.constant dense<0.000000e+00> : vector<8xf32>
    %88 = vector.multi_reduction <add>, %87, %cst_44 [1] : vector<8x8xf32> to vector<8xf32>
    %89 = vector.shape_cast %88 : vector<8xf32> to vector<8x1xf32>
    %90 = tpu.reciprocal %89 {approx = true} : vector<8x1xf32> -> vector<8x1xf32>
    %91 = vector.broadcast %90 : vector<8x1xf32> to vector<8x8xf32>
    %92 = arith.mulf %87, %91 : vector<8x8xf32>
    %93 = arith.truncf %92 : vector<8x8xf32> to vector<8x8xbf16>
    %c0_45 = arith.constant 0 : index
    %c24_46 = arith.constant 24 : index
    %94 = vector.load %arg23[%c0_45, %c24_46] : memref<8x32xbf16, #tpu.memory_space<vmem>>, vector<8x8xbf16>
    %cst_47 = arith.constant dense<0.000000e+00> : vector<8x8xf32>
    %95 = tpu.matmul %93, %94, %cst_47 {dimension_numbers = #tpu.dot_dimension_numbers<[1], [0], [0], [1], [0, 0, 1, 1], [], []>} : vector<8x8xbf16>, vector<8x8xbf16>, vector<8x8xf32> -> vector<8x8xf32>
    %96 = arith.truncf %95 : vector<8x8xf32> to vector<8x8xbf16>
    %c0_48 = arith.constant 0 : index
    %c24_49 = arith.constant 24 : index
    %97 = vector.load %arg24[%c0_48, %c24_49] : memref<8x32xbf16, #tpu.memory_space<vmem>>, vector<8x8xbf16>
    tpu.vector_store %arg24[%c0_48, %c24_49], %96 {strides = array<i32>} : memref<8x32xbf16, #tpu.memory_space<vmem>>, vector<8x8xbf16>,
    %c0_50 = arith.constant 0 : index
    %c0_51 = arith.constant 0 : index
    %98 = vector.load %arg24[%c0_50, %c0_51] : memref<8x32xbf16, #tpu.memory_space<vmem>>, vector<8x32xbf16>
    %c0_52 = arith.constant 0 : index
    %c0_53 = arith.constant 0 : index
    %99 = vector.load %arg11[%c0_52, %c0_53] : memref<32x32xbf16, #tpu.memory_space<vmem>>, vector<32x32xbf16>
    %cst_54 = arith.constant dense<0.000000e+00> : vector<8x32xf32>
    %100 = tpu.matmul %98, %99, %cst_54 {dimension_numbers = #tpu.dot_dimension_numbers<[1], [0], [0], [1], [0, 0, 1, 1], [], []>} : vector<8x32xbf16>, vector<32x32xbf16>, vector<8x32xf32> -> vector<8x32xf32>
    %c0_55 = arith.constant 0 : index
    %c0_56 = arith.constant 0 : index
    %101 = vector.load %arg12[%c0_55, %c0_56] : memref<1x32xf32, #tpu.memory_space<vmem>>, vector<1x32xf32>
    %102 = vector.broadcast %101 : vector<1x32xf32> to vector<8x32xf32>
    %103 = arith.addf %100, %102 : vector<8x32xf32>
    %104 = arith.addf %4, %103 : vector<8x32xf32>
    %c0_57 = arith.constant 0 : index
    %c0_58 = arith.constant 0 : index
    %105 = vector.load %arg13[%c0_57, %c0_58] : memref<1x32xf32, #tpu.memory_space<vmem>>, vector<1x32xf32>
    %c0_59 = arith.constant 0 : index
    %c0_60 = arith.constant 0 : index
    %106 = vector.load %arg14[%c0_59, %c0_60] : memref<1x32xf32, #tpu.memory_space<vmem>>, vector<1x32xf32>
    %cst_61 = arith.constant dense<0.000000e+00> : vector<8xf32>
    %107 = vector.multi_reduction <add>, %104, %cst_61 [1] : vector<8x32xf32> to vector<8xf32>
    %108 = vector.shape_cast %107 : vector<8xf32> to vector<8x1xf32>
    %cst_62 = arith.constant 3.200000e+01 : f32
    %109 = vector.broadcast %cst_62 : f32 to vector<8x1xf32>
    %110 = arith.divf %108, %109 : vector<8x1xf32>
    %111 = vector.broadcast %110 : vector<8x1xf32> to vector<8x32xf32>
    %112 = arith.subf %104, %111 : vector<8x32xf32>
    %113 = arith.mulf %112, %112 : vector<8x32xf32>
    %cst_63 = arith.constant dense<0.000000e+00> : vector<8xf32>
    %114 = vector.multi_reduction <add>, %113, %cst_63 [1] : vector<8x32xf32> to vector<8xf32>
    %115 = vector.shape_cast %114 : vector<8xf32> to vector<8x1xf32>
    %cst_64 = arith.constant 3.200000e+01 : f32
    %116 = vector.broadcast %cst_64 : f32 to vector<8x1xf32>
    %117 = arith.divf %115, %116 : vector<8x1xf32>
    %118 = vector.broadcast %110 : vector<8x1xf32> to vector<8x32xf32>
    %119 = arith.subf %104, %118 : vector<8x32xf32>
    %cst_65 = arith.constant 9.99999997E-7 : f32
    %120 = vector.broadcast %cst_65 : f32 to vector<8x1xf32>
    %121 = arith.addf %117, %120 : vector<8x1xf32>
    %122 = math.rsqrt %121 : vector<8x1xf32>
    %123 = vector.broadcast %122 : vector<8x1xf32> to vector<8x32xf32>
    %124 = arith.mulf %119, %123 : vector<8x32xf32>
    %125 = vector.broadcast %105 : vector<1x32xf32> to vector<8x32xf32>
    %126 = arith.mulf %124, %125 : vector<8x32xf32>
    %127 = vector.broadcast %106 : vector<1x32xf32> to vector<8x32xf32>
    %128 = arith.addf %126, %127 : vector<8x32xf32>
    %129 = arith.truncf %128 : vector<8x32xf32> to vector<8x32xbf16>
    %c0_66 = arith.constant 0 : index
    %c0_67 = arith.constant 0 : index
    %130 = vector.load %arg15[%c0_66, %c0_67] : memref<32x64xbf16, #tpu.memory_space<vmem>>, vector<32x64xbf16>
    %cst_68 = arith.constant dense<0.000000e+00> : vector<8x64xf32>
    %131 = tpu.matmul %129, %130, %cst_68 {dimension_numbers = #tpu.dot_dimension_numbers<[1], [0], [0], [1], [0, 0, 1, 1], [], []>} : vector<8x32xbf16>, vector<32x64xbf16>, vector<8x64xf32> -> vector<8x64xf32>
    %c0_69 = arith.constant 0 : index
    %c0_70 = arith.constant 0 : index
    %132 = vector.load %arg16[%c0_69, %c0_70] : memref<1x64xf32, #tpu.memory_space<vmem>>, vector<1x64xf32>
    %133 = vector.broadcast %132 : vector<1x64xf32> to vector<8x64xf32>
    %134 = arith.addf %131, %133 : vector<8x64xf32>
    %cst_71 = arith.constant 0.000000e+00 : f32
    %135 = vector.broadcast %cst_71 : f32 to vector<8x64xf32>
    %136 = arith.maximumf %134, %135 : vector<8x64xf32>
    %137 = arith.truncf %136 : vector<8x64xf32> to vector<8x64xbf16>
    %c0_72 = arith.constant 0 : index
    %c0_73 = arith.constant 0 : index
    %138 = vector.load %arg17[%c0_72, %c0_73] : memref<64x32xbf16, #tpu.memory_space<vmem>>, vector<64x32xbf16>
    %cst_74 = arith.constant dense<0.000000e+00> : vector<8x32xf32>
    %139 = tpu.matmul %137, %138, %cst_74 {dimension_numbers = #tpu.dot_dimension_numbers<[1], [0], [0], [1], [0, 0, 1, 1], [], []>} : vector<8x64xbf16>, vector<64x32xbf16>, vector<8x32xf32> -> vector<8x32xf32>
    %c0_75 = arith.constant 0 : index
    %c0_76 = arith.constant 0 : index
    %140 = vector.load %arg18[%c0_75, %c0_76] : memref<1x32xf32, #tpu.memory_space<vmem>>, vector<1x32xf32>
    %141 = vector.broadcast %140 : vector<1x32xf32> to vector<8x32xf32>
    %142 = arith.addf %139, %141 : vector<8x32xf32>
    %143 = arith.addf %128, %142 : vector<8x32xf32>
    %c0_77 = arith.constant 0 : index
    %c0_78 = arith.constant 0 : index
    %144 = vector.load %arg19[%c0_77, %c0_78] : memref<1x32xf32, #tpu.memory_space<vmem>>, vector<1x32xf32>
    %c0_79 = arith.constant 0 : index
    %c0_80 = arith.constant 0 : index
    %145 = vector.load %arg20[%c0_79, %c0_80] : memref<1x32xf32, #tpu.memory_space<vmem>>, vector<1x32xf32>
    %cst_81 = arith.constant dense<0.000000e+00> : vector<8xf32>
    %146 = vector.multi_reduction <add>, %143, %cst_81 [1] : vector<8x32xf32> to vector<8xf32>
    %147 = vector.shape_cast %146 : vector<8xf32> to vector<8x1xf32>
    %cst_82 = arith.constant 3.200000e+01 : f32
    %148 = vector.broadcast %cst_82 : f32 to vector<8x1xf32>
    %149 = arith.divf %147, %148 : vector<8x1xf32>
    %150 = vector.broadcast %149 : vector<8x1xf32> to vector<8x32xf32>
    %151 = arith.subf %143, %150 : vector<8x32xf32>
    %152 = arith.mulf %151, %151 : vector<8x32xf32>
    %cst_83 = arith.constant dense<0.000000e+00> : vector<8xf32>
    %153 = vector.multi_reduction <add>, %152, %cst_83 [1] : vector<8x32xf32> to vector<8xf32>
    %154 = vector.shape_cast %153 : vector<8xf32> to vector<8x1xf32>
    %cst_84 = arith.constant 3.200000e+01 : f32
    %155 = vector.broadcast %cst_84 : f32 to vector<8x1xf32>
    %156 = arith.divf %154, %155 : vector<8x1xf32>
    %157 = vector.broadcast %149 : vector<8x1xf32> to vector<8x32xf32>
    %158 = arith.subf %143, %157 : vector<8x32xf32>
    %cst_85 = arith.constant 9.99999997E-7 : f32
    %159 = vector.broadcast %cst_85 : f32 to vector<8x1xf32>
    %160 = arith.addf %156, %159 : vector<8x1xf32>
    %161 = math.rsqrt %160 : vector<8x1xf32>
    %162 = vector.broadcast %161 : vector<8x1xf32> to vector<8x32xf32>
    %163 = arith.mulf %158, %162 : vector<8x32xf32>
    %164 = vector.broadcast %144 : vector<1x32xf32> to vector<8x32xf32>
    %165 = arith.mulf %163, %164 : vector<8x32xf32>
    %166 = vector.broadcast %145 : vector<1x32xf32> to vector<8x32xf32>
    %167 = arith.addf %165, %166 : vector<8x32xf32>
    %c0_86 = arith.constant 0 : index
    %c0_87 = arith.constant 0 : index
    %c0_88 = arith.constant 0 : index
    %168 = vector.load %arg21[%c0_86, %c0_87, %c0_88] : memref<1x8x32xf32, #tpu.memory_space<vmem>>, vector<1x8x32xf32>
    %169 = vector.shape_cast %168 : vector<1x8x32xf32> to vector<8x32xf32>
    %170 = vector.shape_cast %167 : vector<8x32xf32> to vector<1x8x32xf32>
    tpu.vector_store %arg21[%c0_86, %c0_87, %c0_88], %170 {strides = array<i32>} : memref<1x8x32xf32, #tpu.memory_space<vmem>>, vector<1x8x32xf32>,
    return
  }
  func.func @transform_0(%arg0: i32, %arg1: i32) -> (i32, i32, i32) {
    %c0_i32 = arith.constant 0 : i32
    %c0_i32_0 = arith.constant 0 : i32
    %c0_i32_1 = arith.constant 0 : i32
    return %arg0, %c0_i32, %c0_i32_0 : i32, i32, i32
  }
  func.func @transform_1(%arg0: i32, %arg1: i32) -> (i32, i32, i32) {
    %c0_i32 = arith.constant 0 : i32
    %c0_i32_0 = arith.constant 0 : i32
    return %arg0, %arg1, %c0_i32 : i32, i32, i32
  }
  func.func @transform_2(%arg0: i32, %arg1: i32) -> (i32, i32, i32) {
    %c0_i32 = arith.constant 0 : i32
    %c0_i32_0 = arith.constant 0 : i32
    %c0_i32_1 = arith.constant 0 : i32
    return %arg0, %c0_i32, %c0_i32_0 : i32, i32, i32
  }
  func.func @transform_3(%arg0: i32, %arg1: i32) -> (i32, i32) {
    %c0_i32 = arith.constant 0 : i32
    %c0_i32_0 = arith.constant 0 : i32
    %c0_i32_1 = arith.constant 0 : i32
    return %c0_i32, %c0_i32_0 : i32, i32
  }
  func.func @transform_4(%arg0: i32, %arg1: i32) -> (i32, i32) {
    %c0_i32 = arith.constant 0 : i32
    %c0_i32_0 = arith.constant 0 : i32
    %c0_i32_1 = arith.constant 0 : i32
    return %c0_i32, %c0_i32_0 : i32, i32
  }
  func.func @transform_5(%arg0: i32, %arg1: i32) -> (i32, i32) {
    %c0_i32 = arith.constant 0 : i32
    %c0_i32_0 = arith.constant 0 : i32
    %c0_i32_1 = arith.constant 0 : i32
    return %c0_i32, %c0_i32_0 : i32, i32
  }
  func.func @transform_6(%arg0: i32, %arg1: i32) -> (i32, i32) {
    %c0_i32 = arith.constant 0 : i32
    %c0_i32_0 = arith.constant 0 : i32
    %c0_i32_1 = arith.constant 0 : i32
    return %c0_i32, %c0_i32_0 : i32, i32
  }
  func.func @transform_7(%arg0: i32, %arg1: i32) -> (i32, i32) {
    %c0_i32 = arith.constant 0 : i32
    %c0_i32_0 = arith.constant 0 : i32
    %c0_i32_1 = arith.constant 0 : i32
    return %c0_i32, %c0_i32_0 : i32, i32
  }
  func.func @transform_8(%arg0: i32, %arg1: i32) -> (i32, i32) {
    %c0_i32 = arith.constant 0 : i32
    %c0_i32_0 = arith.constant 0 : i32
    %c0_i32_1 = arith.constant 0 : i32
    return %c0_i32, %c0_i32_0 : i32, i32
  }
  func.func @transform_9(%arg0: i32, %arg1: i32) -> (i32, i32) {
    %c0_i32 = arith.constant 0 : i32
    %c0_i32_0 = arith.constant 0 : i32
    %c0_i32_1 = arith.constant 0 : i32
    return %c0_i32, %c0_i32_0 : i32, i32
  }
  func.func @transform_10(%arg0: i32, %arg1: i32) -> (i32, i32) {
    %c0_i32 = arith.constant 0 : i32
    %c0_i32_0 = arith.constant 0 : i32
    %c0_i32_1 = arith.constant 0 : i32
    return %c0_i32, %c0_i32_0 : i32, i32
  }
  func.func @transform_11(%arg0: i32, %arg1: i32) -> (i32, i32) {
    %c0_i32 = arith.constant 0 : i32
    %c0_i32_0 = arith.constant 0 : i32
    %c0_i32_1 = arith.constant 0 : i32
    return %c0_i32, %c0_i32_0 : i32, i32
  }
  func.func @transform_12(%arg0: i32, %arg1: i32) -> (i32, i32) {
    %c0_i32 = arith.constant 0 : i32
    %c0_i32_0 = arith.constant 0 : i32
    %c0_i32_1 = arith.constant 0 : i32
    return %c0_i32, %c0_i32_0 : i32, i32
  }
  func.func @transform_13(%arg0: i32, %arg1: i32) -> (i32, i32) {
    %c0_i32 = arith.constant 0 : i32
    %c0_i32_0 = arith.constant 0 : i32
    %c0_i32_1 = arith.constant 0 : i32
    return %c0_i32, %c0_i32_0 : i32, i32
  }
  func.func @transform_14(%arg0: i32, %arg1: i32) -> (i32, i32) {
    %c0_i32 = arith.constant 0 : i32
    %c0_i32_0 = arith.constant 0 : i32
    %c0_i32_1 = arith.constant 0 : i32
    return %c0_i32, %c0_i32_0 : i32, i32
  }
  func.func @transform_15(%arg0: i32, %arg1: i32) -> (i32, i32) {
    %c0_i32 = arith.constant 0 : i32
    %c0_i32_0 = arith.constant 0 : i32
    %c0_i32_1 = arith.constant 0 : i32
    return %c0_i32, %c0_i32_0 : i32, i32
  }
  func.func @transform_16(%arg0: i32, %arg1: i32) -> (i32, i32) {
    %c0_i32 = arith.constant 0 : i32
    %c0_i32_0 = arith.constant 0 : i32
    %c0_i32_1 = arith.constant 0 : i32
    return %c0_i32, %c0_i32_0 : i32, i32
  }
  func.func @transform_17(%arg0: i32, %arg1: i32) -> (i32, i32) {
    %c0_i32 = arith.constant 0 : i32
    %c0_i32_0 = arith.constant 0 : i32
    %c0_i32_1 = arith.constant 0 : i32
    return %c0_i32, %c0_i32_0 : i32, i32
  }
  func.func @transform_18(%arg0: i32, %arg1: i32) -> (i32, i32) {
    %c0_i32 = arith.constant 0 : i32
    %c0_i32_0 = arith.constant 0 : i32
    %c0_i32_1 = arith.constant 0 : i32
    return %c0_i32, %c0_i32_0 : i32, i32
  }
  func.func @transform_19(%arg0: i32, %arg1: i32) -> (i32, i32, i32) {
    %c0_i32 = arith.constant 0 : i32
    %c0_i32_0 = arith.constant 0 : i32
    return %arg0, %arg1, %c0_i32 : i32, i32, i32
  }
}

module attributes {stable_mosaic.version = 11 : i64} {
  func.func @kernel(%arg0: i32, %arg1: i32, %arg2: memref<1x8x32xf32, #tpu.memory_space<vmem>>, %arg3: memref<1x8x32xf32, #tpu.memory_space<vmem>>, %arg4: memref<1x1x8xf32, #tpu.memory_space<vmem>>, %arg5: memref<32x32xbf16, #tpu.memory_space<vmem>>, %arg6: memref<1x32xf32, #tpu.memory_space<vmem>>, %arg7: memref<32x32xbf16, #tpu.memory_space<vmem>>, %arg8: memref<1x32xf32, #tpu.memory_space<vmem>>, %arg9: memref<32x32xbf16, #tpu.memory_space<vmem>>, %arg10: memref<1x32xf32, #tpu.memory_space<vmem>>, %arg11: memref<32x32xbf16, #tpu.memory_space<vmem>>, %arg12: memref<1x32xf32, #tpu.memory_space<vmem>>, %arg13: memref<1x32xf32, #tpu.memory_space<vmem>>, %arg14: memref<1x32xf32, #tpu.memory_space<vmem>>, %arg15: memref<32x64xbf16, #tpu.memory_space<vmem>>, %arg16: memref<1x64xf32, #tpu.memory_space<vmem>>, %arg17: memref<64x32xbf16, #tpu.memory_space<vmem>>, %arg18: memref<1x32xf32, #tpu.memory_space<vmem>>, %arg19: memref<1x32xf32, #tpu.memory_space<vmem>>, %arg20: memref<1x32xf32, #tpu.memory_space<vmem>>, %arg21: memref<1x8x32xf32, #tpu.memory_space<vmem>>, %arg22: memref<8x32xbf16, #tpu.memory_space<vmem>>, %arg23: memref<8x32xbf16, #tpu.memory_space<vmem>>, %arg24: memref<8x32xbf16, #tpu.memory_space<vmem>>) attributes {dimension_semantics = [#tpu.dimension_semantics<parallel>, #tpu.dimension_semantics<arbitrary>], iteration_bounds = array<i64: 2, 1>, scalar_prefetch = 0 : i64, scratch_operands = 3 : i64, tpu.core_type = #tpu.core_type<tc>, window_params = [{transform_indices = @transform_0, window_bounds = array<i64: 1, 8, 32>}, {transform_indices = @transform_1, window_bounds = array<i64: 1, 8, 32>}, {transform_indices = @transform_2, window_bounds = array<i64: 1, 1, 8>}, {pipeline_mode = #tpu.pipeline_mode<synchronous>, transform_indices = @transform_3, window_bounds = array<i64: 32, 32>}, {pipeline_mode = #tpu.pipeline_mode<synchronous>, transform_indices = @transform_4, window_bounds = array<i64: 1, 32>}, {pipeline_mode = #tpu.pipeline_mode<synchronous>, transform_indices = @transform_5, window_bounds = array<i64: 32, 32>}, {pipeline_mode = #tpu.pipeline_mode<synchronous>, transform_indices = @transform_6, window_bounds = array<i64: 1, 32>}, {pipeline_mode = #tpu.pipeline_mode<synchronous>, transform_indices = @transform_7, window_bounds = array<i64: 32, 32>}, {pipeline_mode = #tpu.pipeline_mode<synchronous>, transform_indices = @transform_8, window_bounds = array<i64: 1, 32>}, {pipeline_mode = #tpu.pipeline_mode<synchronous>, transform_indices = @transform_9, window_bounds = array<i64: 32, 32>}, {pipeline_mode = #tpu.pipeline_mode<synchronous>, transform_indices = @transform_10, window_bounds = array<i64: 1, 32>}, {pipeline_mode = #tpu.pipeline_mode<synchronous>, transform_indices = @transform_11, window_bounds = array<i64: 1, 32>}, {pipeline_mode = #tpu.pipeline_mode<synchronous>, transform_indices = @transform_12, window_bounds = array<i64: 1, 32>}, {pipeline_mode = #tpu.pipeline_mode<synchronous>, transform_indices = @transform_13, window_bounds = array<i64: 32, 64>}, {pipeline_mode = #tpu.pipeline_mode<synchronous>, transform_indices = @transform_14, window_bounds = array<i64: 1, 64>}, {pipeline_mode = #tpu.pipeline_mode<synchronous>, transform_indices = @transform_15, window_bounds = array<i64: 64, 32>}, {pipeline_mode = #tpu.pipeline_mode<synchronous>, transform_indices = @transform_16, window_bounds = array<i64: 1, 32>}, {pipeline_mode = #tpu.pipeline_mode<synchronous>, transform_indices = @transform_17, window_bounds = array<i64: 1, 32>}, {pipeline_mode = #tpu.pipeline_mode<synchronous>, transform_indices = @transform_18, window_bounds = array<i64: 1, 32>}, {transform_indices = @transform_19, window_bounds = array<i64: 1, 8, 32>}]} {
    %c0_i32 = arith.constant 0 : i32
    %0 = arith.cmpi eq, %arg1, %c0_i32 : i32
    %1 = arith.extui %0 : i1 to i32
    %c0_i32_0 = arith.constant 0 : i32
    %2 = arith.cmpi ne, %1, %c0_i32_0 : i32
    scf.if %2 {
      %c0_89 = arith.constant 0 : index
      %c0_90 = arith.constant 0 : index
      %c0_91 = arith.constant 0 : index
      %171 = vector.load %arg2[%c0_89, %c0_90, %c0_91] : memref<1x8x32xf32, #tpu.memory_space<vmem>>, vector<1x8x32xf32>
      %172 = vector.shape_cast %171 : vector<1x8x32xf32> to vector<8x32xf32>
      %173 = arith.truncf %172 : vector<8x32xf32> to vector<8x32xbf16>
      %c0_92 = arith.constant 0 : index
      %c0_93 = arith.constant 0 : index
      %174 = vector.load %arg7[%c0_92, %c0_93] : memref<32x32xbf16, #tpu.memory_space<vmem>>, vector<32x32xbf16>
      %cst_94 = arith.constant dense<0.000000e+00> : vector<8x32xf32>
      %175 = tpu.matmul %173, %174, %cst_94 {dimension_numbers = #tpu.dot_dimension_numbers<[1], [0], [0], [1], [0, 0, 1, 1], [], []>} : vector<8x32xbf16>, vector<32x32xbf16>, vector<8x32xf32> -> vector<8x32xf32>
      %c0_95 = arith.constant 0 : index
      %c0_96 = arith.constant 0 : index
      %176 = vector.load %arg8[%c0_95, %c0_96] : memref<1x32xf32, #tpu.memory_space<vmem>>, vector<1x32xf32>
      %177 = vector.broadcast %176 : vector<1x32xf32> to vector<8x32xf32>
      %178 = arith.addf %175, %177 : vector<8x32xf32>
      %c0_97 = arith.constant 0 : index
      %c0_98 = arith.constant 0 : index
      %179 = vector.load %arg9[%c0_97, %c0_98] : memref<32x32xbf16, #tpu.memory_space<vmem>>, vector<32x32xbf16>
      %cst_99 = arith.constant dense<0.000000e+00> : vector<8x32xf32>
      %180 = tpu.matmul %173, %179, %cst_99 {dimension_numbers = #tpu.dot_dimension_numbers<[1], [0], [0], [1], [0, 0, 1, 1], [], []>} : vector<8x32xbf16>, vector<32x32xbf16>, vector<8x32xf32> -> vector<8x32xf32>
      %c0_100 = arith.constant 0 : index
      %c0_101 = arith.constant 0 : index
      %181 = vector.load %arg10[%c0_100, %c0_101] : memref<1x32xf32, #tpu.memory_space<vmem>>, vector<1x32xf32>
      %182 = vector.broadcast %181 : vector<1x32xf32> to vector<8x32xf32>
      %183 = arith.addf %180, %182 : vector<8x32xf32>
      %184 = arith.truncf %178 : vector<8x32xf32> to vector<8x32xbf16>
      %c0_102 = arith.constant 0 : index
      %c0_103 = arith.constant 0 : index
      %185 = vector.load %arg22[%c0_102, %c0_103] : memref<8x32xbf16, #tpu.memory_space<vmem>>, vector<8x32xbf16>
      tpu.vector_store %arg22[%c0_102, %c0_103], %184 {strides = array<i32>} : memref<8x32xbf16, #tpu.memory_space<vmem>>, vector<8x32xbf16>,
      %186 = arith.truncf %183 : vector<8x32xf32> to vector<8x32xbf16>
      %c0_104 = arith.constant 0 : index
      %c0_105 = arith.constant 0 : index
      %187 = vector.load %arg23[%c0_104, %c0_105] : memref<8x32xbf16, #tpu.memory_space<vmem>>, vector<8x32xbf16>
      tpu.vector_store %arg23[%c0_104, %c0_105], %186 {strides = array<i32>} : memref<8x32xbf16, #tpu.memory_space<vmem>>, vector<8x32xbf16>,
    } else {
    }
    %c0 = arith.constant 0 : index
    %c0_1 = arith.constant 0 : index
    %c0_2 = arith.constant 0 : index
    %3 = vector.load %arg3[%c0, %c0_1, %c0_2] : memref<1x8x32xf32, #tpu.memory_space<vmem>>, vector<1x8x32xf32>
    %4 = vector.shape_cast %3 : vector<1x8x32xf32> to vector<8x32xf32>
    %5 = arith.truncf %4 : vector<8x32xf32> to vector<8x32xbf16>
    %c0_3 = arith.constant 0 : index
    %c0_4 = arith.constant 0 : index
    %6 = vector.load %arg5[%c0_3, %c0_4] : memref<32x32xbf16, #tpu.memory_space<vmem>>, vector<32x32xbf16>
    %cst = arith.constant dense<0.000000e+00> : vector<8x32xf32>
    %7 = tpu.matmul %5, %6, %cst {dimension_numbers = #tpu.dot_dimension_numbers<[1], [0], [0], [1], [0, 0, 1, 1], [], []>} : vector<8x32xbf16>, vector<32x32xbf16>, vector<8x32xf32> -> vector<8x32xf32>
    %c0_5 = arith.constant 0 : index
    %c0_6 = arith.constant 0 : index
    %8 = vector.load %arg6[%c0_5, %c0_6] : memref<1x32xf32, #tpu.memory_space<vmem>>, vector<1x32xf32>
    %9 = vector.broadcast %8 : vector<1x32xf32> to vector<8x32xf32>
    %10 = arith.addf %7, %9 : vector<8x32xf32>
    %cst_7 = arith.constant 0.353553385 : f32
    %11 = vector.broadcast %cst_7 : f32 to vector<8x32xf32>
    %12 = arith.mulf %10, %11 : vector<8x32xf32>
    %13 = arith.truncf %12 : vector<8x32xf32> to vector<8x32xbf16>
    %c0_8 = arith.constant 0 : index
    %c0_9 = arith.constant 0 : index
    %c0_10 = arith.constant 0 : index
    %14 = vector.load %arg4[%c0_8, %c0_9, %c0_10] : memref<1x1x8xf32, #tpu.memory_space<vmem>>, vector<1x1x8xf32>
    %15 = vector.shape_cast %14 : vector<1x1x8xf32> to vector<1x8xf32>
    %cst_11 = arith.constant 1.000000e+00 : f32
    %16 = vector.broadcast %cst_11 : f32 to vector<1x8xf32>
    %17 = arith.subf %15, %16 : vector<1x8xf32>
    %cst_12 = arith.constant 1.000000e+10 : f32
    %18 = vector.broadcast %cst_12 : f32 to vector<1x8xf32>
    %19 = arith.mulf %17, %18 : vector<1x8xf32>
    %20 = vector.shape_cast %19 : vector<1x8xf32> to vector<1x8xf32>
    %21 = vector.broadcast %20 : vector<1x8xf32> to vector<8x8xf32>
    %22 = vector.extract_strided_slice %13 {offsets = [0, 0], sizes = [8, 8], strides = [1, 1]} : vector<8x32xbf16> to vector<8x8xbf16>
    %c0_13 = arith.constant 0 : index
    %c0_14 = arith.constant 0 : index
    %23 = vector.load %arg22[%c0_13, %c0_14] : memref<8x32xbf16, #tpu.memory_space<vmem>>, vector<8x8xbf16>
    %cst_15 = arith.constant dense<0.000000e+00> : vector<8x8xf32>
    %24 = tpu.matmul %22, %23, %cst_15 {dimension_numbers = #tpu.dot_dimension_numbers<[1], [1], [0], [0], [0, 0, 1, 0], [], []>} : vector<8x8xbf16>, vector<8x8xbf16>, vector<8x8xf32> -> vector<8x8xf32>
    %25 = arith.addf %24, %21 : vector<8x8xf32>
    %cst_16 = arith.constant dense<0xFF800000> : vector<8xf32>
    %26 = vector.multi_reduction <maximumf>, %25, %cst_16 [1] : vector<8x8xf32> to vector<8xf32>
    %27 = vector.shape_cast %26 : vector<8xf32> to vector<8x1xf32>
    %28 = vector.broadcast %27 : vector<8x1xf32> to vector<8x8xf32>
    %29 = arith.subf %25, %28 : vector<8x8xf32>
    %30 = math.exp %29 : vector<8x8xf32>
    %cst_17 = arith.constant dense<0.000000e+00> : vector<8xf32>
    %31 = vector.multi_reduction <add>, %30, %cst_17 [1] : vector<8x8xf32> to vector<8xf32>
    %32 = vector.shape_cast %31 : vector<8xf32> to vector<8x1xf32>
    %33 = tpu.reciprocal %32 {approx = true} : vector<8x1xf32> -> vector<8x1xf32>
    %34 = vector.broadcast %33 : vector<8x1xf32> to vector<8x8xf32>
    %35 = arith.mulf %30, %34 : vector<8x8xf32>
    %36 = arith.truncf %35 : vector<8x8xf32> to vector<8x8xbf16>
    %c0_18 = arith.constant 0 : index
    %c0_19 = arith.constant 0 : index
    %37 = vector.load %arg23[%c0_18, %c0_19] : memref<8x32xbf16, #tpu.memory_space<vmem>>, vector<8x8xbf16>
    %cst_20 = arith.constant dense<0.000000e+00> : vector<8x8xf32>
    %38 = tpu.matmul %36, %37, %cst_20 {dimension_numbers = #tpu.dot_dimension_numbers<[1], [0], [0], [1], [0, 0, 1, 1], [], []>} : vector<8x8xbf16>, vector<8x8xbf16>, vector<8x8xf32> -> vector<8x8xf32>
    %39 = arith.truncf %38 : vector<8x8xf32> to vector<8x8xbf16>
    %c0_21 = arith.constant 0 : index
    %c0_22 = arith.constant 0 : index
    %40 = vector.load %arg24[%c0_21, %c0_22] : memref<8x32xbf16, #tpu.memory_space<vmem>>, vector<8x8xbf16>
    tpu.vector_store %arg24[%c0_21, %c0_22], %39 {strides = array<i32>} : memref<8x32xbf16, #tpu.memory_space<vmem>>, vector<8x8xbf16>,
    %41 = vector.extract_strided_slice %13 {offsets = [0, 8], sizes = [8, 8], strides = [1, 1]} : vector<8x32xbf16> to vector<8x8xbf16>
    %c0_23 = arith.constant 0 : index
    %c8 = arith.constant 8 : index
    %42 = vector.load %arg22[%c0_23, %c8] : memref<8x32xbf16, #tpu.memory_space<vmem>>, vector<8x8xbf16>
    %cst_24 = arith.constant dense<0.000000e+00> : vector<8x8xf32>
    %43 = tpu.matmul %41, %42, %cst_24 {dimension_numbers = #tpu.dot_dimension_numbers<[1], [1], [0], [0], [0, 0, 1, 0], [], []>} : vector<8x8xbf16>, vector<8x8xbf16>, vector<8x8xf32> -> vector<8x8xf32>
    %44 = arith.addf %43, %21 : vector<8x8xf32>
    %cst_25 = arith.constant dense<0xFF800000> : vector<8xf32>
    %45 = vector.multi_reduction <maximumf>, %44, %cst_25 [1] : vector<8x8xf32> to vector<8xf32>
    %46 = vector.shape_cast %45 : vector<8xf32> to vector<8x1xf32>
    %47 = vector.broadcast %46 : vector<8x1xf32> to vector<8x8xf32>
    %48 = arith.subf %44, %47 : vector<8x8xf32>
    %49 = math.exp %48 : vector<8x8xf32>
    %cst_26 = arith.constant dense<0.000000e+00> : vector<8xf32>
    %50 = vector.multi_reduction <add>, %49, %cst_26 [1] : vector<8x8xf32> to vector<8xf32>
    %51 = vector.shape_cast %50 : vector<8xf32> to vector<8x1xf32>
    %52 = tpu.reciprocal %51 {approx = true} : vector<8x1xf32> -> vector<8x1xf32>
    %53 = vector.broadcast %52 : vector<8x1xf32> to vector<8x8xf32>
    %54 = arith.mulf %49, %53 : vector<8x8xf32>
    %55 = arith.truncf %54 : vector<8x8xf32> to vector<8x8xbf16>
    %c0_27 = arith.constant 0 : index
    %c8_28 = arith.constant 8 : index
    %56 = vector.load %arg23[%c0_27, %c8_28] : memref<8x32xbf16, #tpu.memory_space<vmem>>, vector<8x8xbf16>
    %cst_29 = arith.constant dense<0.000000e+00> : vector<8x8xf32>
    %57 = tpu.matmul %55, %56, %cst_29 {dimension_numbers = #tpu.dot_dimension_numbers<[1], [0], [0], [1], [0, 0, 1, 1], [], []>} : vector<8x8xbf16>, vector<8x8xbf16>, vector<8x8xf32> -> vector<8x8xf32>
    %58 = arith.truncf %57 : vector<8x8xf32> to vector<8x8xbf16>
    %c0_30 = arith.constant 0 : index
    %c8_31 = arith.constant 8 : index
    %59 = vector.load %arg24[%c0_30, %c8_31] : memref<8x32xbf16, #tpu.memory_space<vmem>>, vector<8x8xbf16>
    tpu.vector_store %arg24[%c0_30, %c8_31], %58 {strides = array<i32>} : memref<8x32xbf16, #tpu.memory_space<vmem>>, vector<8x8xbf16>,
    %60 = vector.extract_strided_slice %13 {offsets = [0, 16], sizes = [8, 8], strides = [1, 1]} : vector<8x32xbf16> to vector<8x8xbf16>
    %c0_32 = arith.constant 0 : index
    %c16 = arith.constant 16 : index
    %61 = vector.load %arg22[%c0_32, %c16] : memref<8x32xbf16, #tpu.memory_space<vmem>>, vector<8x8xbf16>
    %cst_33 = arith.constant dense<0.000000e+00> : vector<8x8xf32>
    %62 = tpu.matmul %60, %61, %cst_33 {dimension_numbers = #tpu.dot_dimension_numbers<[1], [1], [0], [0], [0, 0, 1, 0], [], []>} : vector<8x8xbf16>, vector<8x8xbf16>, vector<8x8xf32> -> vector<8x8xf32>
    %63 = arith.addf %62, %21 : vector<8x8xf32>
    %cst_34 = arith.constant dense<0xFF800000> : vector<8xf32>
    %64 = vector.multi_reduction <maximumf>, %63, %cst_34 [1] : vector<8x8xf32> to vector<8xf32>
    %65 = vector.shape_cast %64 : vector<8xf32> to vector<8x1xf32>
    %66 = vector.broadcast %65 : vector<8x1xf32> to vector<8x8xf32>
    %67 = arith.subf %63, %66 : vector<8x8xf32>
    %68 = math.exp %67 : vector<8x8xf32>
    %cst_35 = arith.constant dense<0.000000e+00> : vector<8xf32>
    %69 = vector.multi_reduction <add>, %68, %cst_35 [1] : vector<8x8xf32> to vector<8xf32>
    %70 = vector.shape_cast %69 : vector<8xf32> to vector<8x1xf32>
    %71 = tpu.reciprocal %70 {approx = true} : vector<8x1xf32> -> vector<8x1xf32>
    %72 = vector.broadcast %71 : vector<8x1xf32> to vector<8x8xf32>
    %73 = arith.mulf %68, %72 : vector<8x8xf32>
    %74 = arith.truncf %73 : vector<8x8xf32> to vector<8x8xbf16>
    %c0_36 = arith.constant 0 : index
    %c16_37 = arith.constant 16 : index
    %75 = vector.load %arg23[%c0_36, %c16_37] : memref<8x32xbf16, #tpu.memory_space<vmem>>, vector<8x8xbf16>
    %cst_38 = arith.constant dense<0.000000e+00> : vector<8x8xf32>
    %76 = tpu.matmul %74, %75, %cst_38 {dimension_numbers = #tpu.dot_dimension_numbers<[1], [0], [0], [1], [0, 0, 1, 1], [], []>} : vector<8x8xbf16>, vector<8x8xbf16>, vector<8x8xf32> -> vector<8x8xf32>
    %77 = arith.truncf %76 : vector<8x8xf32> to vector<8x8xbf16>
    %c0_39 = arith.constant 0 : index
    %c16_40 = arith.constant 16 : index
    %78 = vector.load %arg24[%c0_39, %c16_40] : memref<8x32xbf16, #tpu.memory_space<vmem>>, vector<8x8xbf16>
    tpu.vector_store %arg24[%c0_39, %c16_40], %77 {strides = array<i32>} : memref<8x32xbf16, #tpu.memory_space<vmem>>, vector<8x8xbf16>,
    %79 = vector.extract_strided_slice %13 {offsets = [0, 24], sizes = [8, 8], strides = [1, 1]} : vector<8x32xbf16> to vector<8x8xbf16>
    %c0_41 = arith.constant 0 : index
    %c24 = arith.constant 24 : index
    %80 = vector.load %arg22[%c0_41, %c24] : memref<8x32xbf16, #tpu.memory_space<vmem>>, vector<8x8xbf16>
    %cst_42 = arith.constant dense<0.000000e+00> : vector<8x8xf32>
    %81 = tpu.matmul %79, %80, %cst_42 {dimension_numbers = #tpu.dot_dimension_numbers<[1], [1], [0], [0], [0, 0, 1, 0], [], []>} : vector<8x8xbf16>, vector<8x8xbf16>, vector<8x8xf32> -> vector<8x8xf32>
    %82 = arith.addf %81, %21 : vector<8x8xf32>
    %cst_43 = arith.constant dense<0xFF800000> : vector<8xf32>
    %83 = vector.multi_reduction <maximumf>, %82, %cst_43 [1] : vector<8x8xf32> to vector<8xf32>
    %84 = vector.shape_cast %83 : vector<8xf32> to vector<8x1xf32>
    %85 = vector.broadcast %84 : vector<8x1xf32> to vector<8x8xf32>
    %86 = arith.subf %82, %85 : vector<8x8xf32>
    %87 = math.exp %86 : vector<8x8xf32>
    %cst_44 = arith.constant dense<0.000000e+00> : vector<8xf32>
    %88 = vector.multi_reduction <add>, %87, %cst_44 [1] : vector<8x8xf32> to vector<8xf32>
    %89 = vector.shape_cast %88 : vector<8xf32> to vector<8x1xf32>
    %90 = tpu.reciprocal %89 {approx = true} : vector<8x1xf32> -> vector<8x1xf32>
    %91 = vector.broadcast %90 : vector<8x1xf32> to vector<8x8xf32>
    %92 = arith.mulf %87, %91 : vector<8x8xf32>
    %93 = arith.truncf %92 : vector<8x8xf32> to vector<8x8xbf16>
    %c0_45 = arith.constant 0 : index
    %c24_46 = arith.constant 24 : index
    %94 = vector.load %arg23[%c0_45, %c24_46] : memref<8x32xbf16, #tpu.memory_space<vmem>>, vector<8x8xbf16>
    %cst_47 = arith.constant dense<0.000000e+00> : vector<8x8xf32>
    %95 = tpu.matmul %93, %94, %cst_47 {dimension_numbers = #tpu.dot_dimension_numbers<[1], [0], [0], [1], [0, 0, 1, 1], [], []>} : vector<8x8xbf16>, vector<8x8xbf16>, vector<8x8xf32> -> vector<8x8xf32>
    %96 = arith.truncf %95 : vector<8x8xf32> to vector<8x8xbf16>
    %c0_48 = arith.constant 0 : index
    %c24_49 = arith.constant 24 : index
    %97 = vector.load %arg24[%c0_48, %c24_49] : memref<8x32xbf16, #tpu.memory_space<vmem>>, vector<8x8xbf16>
    tpu.vector_store %arg24[%c0_48, %c24_49], %96 {strides = array<i32>} : memref<8x32xbf16, #tpu.memory_space<vmem>>, vector<8x8xbf16>,
    %c0_50 = arith.constant 0 : index
    %c0_51 = arith.constant 0 : index
    %98 = vector.load %arg24[%c0_50, %c0_51] : memref<8x32xbf16, #tpu.memory_space<vmem>>, vector<8x32xbf16>
    %c0_52 = arith.constant 0 : index
    %c0_53 = arith.constant 0 : index
    %99 = vector.load %arg11[%c0_52, %c0_53] : memref<32x32xbf16, #tpu.memory_space<vmem>>, vector<32x32xbf16>
    %cst_54 = arith.constant dense<0.000000e+00> : vector<8x32xf32>
    %100 = tpu.matmul %98, %99, %cst_54 {dimension_numbers = #tpu.dot_dimension_numbers<[1], [0], [0], [1], [0, 0, 1, 1], [], []>} : vector<8x32xbf16>, vector<32x32xbf16>, vector<8x32xf32> -> vector<8x32xf32>
    %c0_55 = arith.constant 0 : index
    %c0_56 = arith.constant 0 : index
    %101 = vector.load %arg12[%c0_55, %c0_56] : memref<1x32xf32, #tpu.memory_space<vmem>>, vector<1x32xf32>
    %102 = vector.broadcast %101 : vector<1x32xf32> to vector<8x32xf32>
    %103 = arith.addf %100, %102 : vector<8x32xf32>
    %104 = arith.addf %4, %103 : vector<8x32xf32>
    %c0_57 = arith.constant 0 : index
    %c0_58 = arith.constant 0 : index
    %105 = vector.load %arg13[%c0_57, %c0_58] : memref<1x32xf32, #tpu.memory_space<vmem>>, vector<1x32xf32>
    %c0_59 = arith.constant 0 : index
    %c0_60 = arith.constant 0 : index
    %106 = vector.load %arg14[%c0_59, %c0_60] : memref<1x32xf32, #tpu.memory_space<vmem>>, vector<1x32xf32>
    %cst_61 = arith.constant dense<0.000000e+00> : vector<8xf32>
    %107 = vector.multi_reduction <add>, %104, %cst_61 [1] : vector<8x32xf32> to vector<8xf32>
    %108 = vector.shape_cast %107 : vector<8xf32> to vector<8x1xf32>
    %cst_62 = arith.constant 3.200000e+01 : f32
    %109 = vector.broadcast %cst_62 : f32 to vector<8x1xf32>
    %110 = arith.divf %108, %109 : vector<8x1xf32>
    %111 = vector.broadcast %110 : vector<8x1xf32> to vector<8x32xf32>
    %112 = arith.subf %104, %111 : vector<8x32xf32>
    %113 = arith.mulf %112, %112 : vector<8x32xf32>
    %cst_63 = arith.constant dense<0.000000e+00> : vector<8xf32>
    %114 = vector.multi_reduction <add>, %113, %cst_63 [1] : vector<8x32xf32> to vector<8xf32>
    %115 = vector.shape_cast %114 : vector<8xf32> to vector<8x1xf32>
    %cst_64 = arith.constant 3.200000e+01 : f32
    %116 = vector.broadcast %cst_64 : f32 to vector<8x1xf32>
    %117 = arith.divf %115, %116 : vector<8x1xf32>
    %118 = vector.broadcast %110 : vector<8x1xf32> to vector<8x32xf32>
    %119 = arith.subf %104, %118 : vector<8x32xf32>
    %cst_65 = arith.constant 9.99999997E-7 : f32
    %120 = vector.broadcast %cst_65 : f32 to vector<8x1xf32>
    %121 = arith.addf %117, %120 : vector<8x1xf32>
    %122 = math.rsqrt %121 : vector<8x1xf32>
    %123 = vector.broadcast %122 : vector<8x1xf32> to vector<8x32xf32>
    %124 = arith.mulf %119, %123 : vector<8x32xf32>
    %125 = vector.broadcast %105 : vector<1x32xf32> to vector<8x32xf32>
    %126 = arith.mulf %124, %125 : vector<8x32xf32>
    %127 = vector.broadcast %106 : vector<1x32xf32> to vector<8x32xf32>
    %128 = arith.addf %126, %127 : vector<8x32xf32>
    %129 = arith.truncf %128 : vector<8x32xf32> to vector<8x32xbf16>
    %c0_66 = arith.constant 0 : index
    %c0_67 = arith.constant 0 : index
    %130 = vector.load %arg15[%c0_66, %c0_67] : memref<32x64xbf16, #tpu.memory_space<vmem>>, vector<32x64xbf16>
    %cst_68 = arith.constant dense<0.000000e+00> : vector<8x64xf32>
    %131 = tpu.matmul %129, %130, %cst_68 {dimension_numbers = #tpu.dot_dimension_numbers<[1], [0], [0], [1], [0, 0, 1, 1], [], []>} : vector<8x32xbf16>, vector<32x64xbf16>, vector<8x64xf32> -> vector<8x64xf32>
    %c0_69 = arith.constant 0 : index
    %c0_70 = arith.constant 0 : index
    %132 = vector.load %arg16[%c0_69, %c0_70] : memref<1x64xf32, #tpu.memory_space<vmem>>, vector<1x64xf32>
    %133 = vector.broadcast %132 : vector<1x64xf32> to vector<8x64xf32>
    %134 = arith.addf %131, %133 : vector<8x64xf32>
    %cst_71 = arith.constant 0.000000e+00 : f32
    %135 = vector.broadcast %cst_71 : f32 to vector<8x64xf32>
    %136 = arith.maximumf %134, %135 : vector<8x64xf32>
    %137 = arith.truncf %136 : vector<8x64xf32> to vector<8x64xbf16>
    %c0_72 = arith.constant 0 : index
    %c0_73 = arith.constant 0 : index
    %138 = vector.load %arg17[%c0_72, %c0_73] : memref<64x32xbf16, #tpu.memory_space<vmem>>, vector<64x32xbf16>
    %cst_74 = arith.constant dense<0.000000e+00> : vector<8x32xf32>
    %139 = tpu.matmul %137, %138, %cst_74 {dimension_numbers = #tpu.dot_dimension_numbers<[1], [0], [0], [1], [0, 0, 1, 1], [], []>} : vector<8x64xbf16>, vector<64x32xbf16>, vector<8x32xf32> -> vector<8x32xf32>
    %c0_75 = arith.constant 0 : index
    %c0_76 = arith.constant 0 : index
    %140 = vector.load %arg18[%c0_75, %c0_76] : memref<1x32xf32, #tpu.memory_space<vmem>>, vector<1x32xf32>
    %141 = vector.broadcast %140 : vector<1x32xf32> to vector<8x32xf32>
    %142 = arith.addf %139, %141 : vector<8x32xf32>
    %143 = arith.addf %128, %142 : vector<8x32xf32>
    %c0_77 = arith.constant 0 : index
    %c0_78 = arith.constant 0 : index
    %144 = vector.load %arg19[%c0_77, %c0_78] : memref<1x32xf32, #tpu.memory_space<vmem>>, vector<1x32xf32>
    %c0_79 = arith.constant 0 : index
    %c0_80 = arith.constant 0 : index
    %145 = vector.load %arg20[%c0_79, %c0_80] : memref<1x32xf32, #tpu.memory_space<vmem>>, vector<1x32xf32>
    %cst_81 = arith.constant dense<0.000000e+00> : vector<8xf32>
    %146 = vector.multi_reduction <add>, %143, %cst_81 [1] : vector<8x32xf32> to vector<8xf32>
    %147 = vector.shape_cast %146 : vector<8xf32> to vector<8x1xf32>
    %cst_82 = arith.constant 3.200000e+01 : f32
    %148 = vector.broadcast %cst_82 : f32 to vector<8x1xf32>
    %149 = arith.divf %147, %148 : vector<8x1xf32>
    %150 = vector.broadcast %149 : vector<8x1xf32> to vector<8x32xf32>
    %151 = arith.subf %143, %150 : vector<8x32xf32>
    %152 = arith.mulf %151, %151 : vector<8x32xf32>
    %cst_83 = arith.constant dense<0.000000e+00> : vector<8xf32>
    %153 = vector.multi_reduction <add>, %152, %cst_83 [1] : vector<8x32xf32> to vector<8xf32>
    %154 = vector.shape_cast %153 : vector<8xf32> to vector<8x1xf32>
    %cst_84 = arith.constant 3.200000e+01 : f32
    %155 = vector.broadcast %cst_84 : f32 to vector<8x1xf32>
    %156 = arith.divf %154, %155 : vector<8x1xf32>
    %157 = vector.broadcast %149 : vector<8x1xf32> to vector<8x32xf32>
    %158 = arith.subf %143, %157 : vector<8x32xf32>
    %cst_85 = arith.constant 9.99999997E-7 : f32
    %159 = vector.broadcast %cst_85 : f32 to vector<8x1xf32>
    %160 = arith.addf %156, %159 : vector<8x1xf32>
    %161 = math.rsqrt %160 : vector<8x1xf32>
    %162 = vector.broadcast %161 : vector<8x1xf32> to vector<8x32xf32>
    %163 = arith.mulf %158, %162 : vector<8x32xf32>
    %164 = vector.broadcast %144 : vector<1x32xf32> to vector<8x32xf32>
    %165 = arith.mulf %163, %164 : vector<8x32xf32>
    %166 = vector.broadcast %145 : vector<1x32xf32> to vector<8x32xf32>
    %167 = arith.addf %165, %166 : vector<8x32xf32>
    %c0_86 = arith.constant 0 : index
    %c0_87 = arith.constant 0 : index
    %c0_88 = arith.constant 0 : index
    %168 = vector.load %arg21[%c0_86, %c0_87, %c0_88] : memref<1x8x32xf32, #tpu.memory_space<vmem>>, vector<1x8x32xf32>
    %169 = vector.shape_cast %168 : vector<1x8x32xf32> to vector<8x32xf32>
    %170 = vector.shape_cast %167 : vector<8x32xf32> to vector<1x8x32xf32>
    tpu.vector_store %arg21[%c0_86, %c0_87, %c0_88], %170 {strides = array<i32>} : memref<1x8x32xf32, #tpu.memory_space<vmem>>, vector<1x8x32xf32>,
    return
  }
  func.func @transform_0(%arg0: i32, %arg1: i32) -> (i32, i32, i32) {
    %c0_i32 = arith.constant 0 : i32
    %c0_i32_0 = arith.constant 0 : i32
    %c0_i32_1 = arith.constant 0 : i32
    return %arg0, %c0_i32, %c0_i32_0 : i32, i32, i32
  }
  func.func @transform_1(%arg0: i32, %arg1: i32) -> (i32, i32, i32) {
    %c0_i32 = arith.constant 0 : i32
    %c0_i32_0 = arith.constant 0 : i32
    return %arg0, %arg1, %c0_i32 : i32, i32, i32
  }
  func.func @transform_2(%arg0: i32, %arg1: i32) -> (i32, i32, i32) {
    %c0_i32 = arith.constant 0 : i32
    %c0_i32_0 = arith.constant 0 : i32
    %c0_i32_1 = arith.constant 0 : i32
    return %arg0, %c0_i32, %c0_i32_0 : i32, i32, i32
  }
  func.func @transform_3(%arg0: i32, %arg1: i32) -> (i32, i32) {
    %c0_i32 = arith.constant 0 : i32
    %c0_i32_0 = arith.constant 0 : i32
    %c0_i32_1 = arith.constant 0 : i32
    return %c0_i32, %c0_i32_0 : i32, i32
  }
  func.func @transform_4(%arg0: i32, %arg1: i32) -> (i32, i32) {
    %c0_i32 = arith.constant 0 : i32
    %c0_i32_0 = arith.constant 0 : i32
    %c0_i32_1 = arith.constant 0 : i32
    return %c0_i32, %c0_i32_0 : i32, i32
  }
  func.func @transform_5(%arg0: i32, %arg1: i32) -> (i32, i32) {
    %c0_i32 = arith.constant 0 : i32
    %c0_i32_0 = arith.constant 0 : i32
    %c0_i32_1 = arith.constant 0 : i32
    return %c0_i32, %c0_i32_0 : i32, i32
  }
  func.func @transform_6(%arg0: i32, %arg1: i32) -> (i32, i32) {
    %c0_i32 = arith.constant 0 : i32
    %c0_i32_0 = arith.constant 0 : i32
    %c0_i32_1 = arith.constant 0 : i32
    return %c0_i32, %c0_i32_0 : i32, i32
  }
  func.func @transform_7(%arg0: i32, %arg1: i32) -> (i32, i32) {
    %c0_i32 = arith.constant 0 : i32
    %c0_i32_0 = arith.constant 0 : i32
    %c0_i32_1 = arith.constant 0 : i32
    return %c0_i32, %c0_i32_0 : i32, i32
  }
  func.func @transform_8(%arg0: i32, %arg1: i32) -> (i32, i32) {
    %c0_i32 = arith.constant 0 : i32
    %c0_i32_0 = arith.constant 0 : i32
    %c0_i32_1 = arith.constant 0 : i32
    return %c0_i32, %c0_i32_0 : i32, i32
  }
  func.func @transform_9(%arg0: i32, %arg1: i32) -> (i32, i32) {
    %c0_i32 = arith.constant 0 : i32
    %c0_i32_0 = arith.constant 0 : i32
    %c0_i32_1 = arith.constant 0 : i32
    return %c0_i32, %c0_i32_0 : i32, i32
  }
  func.func @transform_10(%arg0: i32, %arg1: i32) -> (i32, i32) {
    %c0_i32 = arith.constant 0 : i32
    %c0_i32_0 = arith.constant 0 : i32
    %c0_i32_1 = arith.constant 0 : i32
    return %c0_i32, %c0_i32_0 : i32, i32
  }
  func.func @transform_11(%arg0: i32, %arg1: i32) -> (i32, i32) {
    %c0_i32 = arith.constant 0 : i32
    %c0_i32_0 = arith.constant 0 : i32
    %c0_i32_1 = arith.constant 0 : i32
    return %c0_i32, %c0_i32_0 : i32, i32
  }
  func.func @transform_12(%arg0: i32, %arg1: i32) -> (i32, i32) {
    %c0_i32 = arith.constant 0 : i32
    %c0_i32_0 = arith.constant 0 : i32
    %c0_i32_1 = arith.constant 0 : i32
    return %c0_i32, %c0_i32_0 : i32, i32
  }
  func.func @transform_13(%arg0: i32, %arg1: i32) -> (i32, i32) {
    %c0_i32 = arith.constant 0 : i32
    %c0_i32_0 = arith.constant 0 : i32
    %c0_i32_1 = arith.constant 0 : i32
    return %c0_i32, %c0_i32_0 : i32, i32
  }
  func.func @transform_14(%arg0: i32, %arg1: i32) -> (i32, i32) {
    %c0_i32 = arith.constant 0 : i32
    %c0_i32_0 = arith.constant 0 : i32
    %c0_i32_1 = arith.constant 0 : i32
    return %c0_i32, %c0_i32_0 : i32, i32
  }
  func.func @transform_15(%arg0: i32, %arg1: i32) -> (i32, i32) {
    %c0_i32 = arith.constant 0 : i32
    %c0_i32_0 = arith.constant 0 : i32
    %c0_i32_1 = arith.constant 0 : i32
    return %c0_i32, %c0_i32_0 : i32, i32
  }
  func.func @transform_16(%arg0: i32, %arg1: i32) -> (i32, i32) {
    %c0_i32 = arith.constant 0 : i32
    %c0_i32_0 = arith.constant 0 : i32
    %c0_i32_1 = arith.constant 0 : i32
    return %c0_i32, %c0_i32_0 : i32, i32
  }
  func.func @transform_17(%arg0: i32, %arg1: i32) -> (i32, i32) {
    %c0_i32 = arith.constant 0 : i32
    %c0_i32_0 = arith.constant 0 : i32
    %c0_i32_1 = arith.constant 0 : i32
    return %c0_i32, %c0_i32_0 : i32, i32
  }
  func.func @transform_18(%arg0: i32, %arg1: i32) -> (i32, i32) {
    %c0_i32 = arith.constant 0 : i32
    %c0_i32_0 = arith.constant 0 : i32
    %c0_i32_1 = arith.constant 0 : i32
    return %c0_i32, %c0_i32_0 : i32, i32
  }
  func.func @transform_19(%arg0: i32, %arg1: i32) -> (i32, i32, i32) {
    %c0_i32 = arith.constant 0 : i32
    %c0_i32_0 = arith.constant 0 : i32
    return %arg0, %arg1, %c0_i32 : i32, i32, i32
  }
}

</mosaic_0001>

<bundles_post_ra>
// kernel: tpu_custom_call.1
= control target key start
LH: loop header
LB: loop body
LE: loop exit
PB: predicated region body
PF: predicated region fallthrough
CT: control target
= control target key end

     0   :  { %s3302_s0 = inlined_call_operand.vmem [shape: f32[2,8,32], index: 0, kind: input, shape index: {}]   ;;  %s3303_s1 = inlined_call_operand.vmem [shape: f32[2,8,32], index: 1, kind: input, shape index: {}]   ;;  %s3304_s2 = inlined_call_operand.hbm [shape: f32[2,1,8], index: 2, kind: input, shape index: {}]   ;;  %s3305_s3 = inlined_call_operand.vmem [shape: bf16[32,32], index: 3, kind: input, shape index: {}]   ;;  %s3306_s4 = inlined_call_operand.vmem [shape: f32[1,32], index: 4, kind: input, shape index: {}]   ;;  %s3307_s5 = inlined_call_operand.hbm [shape: bf16[32,32], index: 5, kind: input, shape index: {}]   ;;  %s3308_s6 = inlined_call_operand.hbm [shape: f32[1,32], index: 6, kind: input, shape index: {}]   ;;  %s3309_s7 = inlined_call_operand.hbm [shape: bf16[32,32], index: 7, kind: input, shape index: {}]   ;;  %s3310_s8 = inlined_call_operand.hbm [shape: f32[1,32], index: 8, kind: input, shape index: {}]   ;;  %s3311_s9 = inlined_call_operand.vmem [shape: bf16[32,32], index: 9, kind: input, shape index: {}]   ;;  %s3312_s10 = inlined_call_operand.hbm [shape: f32[1,32], index: 10, kind: input, shape index: {}]   ;;  %s3313_s11 = inlined_call_operand.hbm [shape: f32[1,32], index: 11, kind: input, shape index: {}]   ;;  %s3314_s12 = inlined_call_operand.hbm [shape: f32[1,32], index: 12, kind: input, shape index: {}]   ;;  %s3315_s13 = inlined_call_operand.vmem [shape: bf16[32,64], index: 13, kind: input, shape index: {}]   ;;  %s3316_s14 = inlined_call_operand.vmem [shape: f32[1,64], index: 14, kind: input, shape index: {}]   ;;  %s3317_s15 = inlined_call_operand.vmem [shape: bf16[64,32], index: 15, kind: input, shape index: {}]   ;;  %s3318_s16 = inlined_call_operand.vmem [shape: f32[1,32], index: 16, kind: input, shape index: {}]   ;;  %s3319_s17 = inlined_call_operand.vmem [shape: f32[1,32], index: 17, kind: input, shape index: {}]   ;;  %s3320_s18 = inlined_call_operand.vmem [shape: f32[1,32], index: 18, kind: input, shape index: {}]   ;;  %s3321_s19 = inlined_call_operand.hbm [shape: f32[2,8,32], index: 19, kind: output, shape index: {}]  }
   0x1   :  { %3334 = sst [smem:[#allocation26_spill]] %s3302_s0 }
   0x2   :  { %3335 = sst [smem:[#allocation27_spill]] %s3303_s1 }
   0x3   :  { %3336 = sst [smem:[#allocation28_spill]] %s3304_s2 }
   0x4   :  { %3337 = sst [smem:[#allocation29_spill]] %s3305_s3 }
   0x5   :  { %3338 = sst [smem:[#allocation30_spill]] %s3306_s4 }
   0x6   :  { %3339 = sst [smem:[#allocation31_spill]] %s3307_s5 }
   0x7   :  { %3340 = sst [smem:[#allocation32_spill]] %s3308_s6 }
   0x8   :  { %3341 = sst [smem:[#allocation33_spill]] %s3309_s7 }
   0x9   :  { %3342 = sst [smem:[#allocation34_spill]] %s3310_s8 }
   0xa   :  { %3343 = sst [smem:[#allocation35_spill]] %s3311_s9 }
   0xb   :  { %3344 = sst [smem:[#allocation36_spill]] %s3312_s10 }
   0xc   :  { %3345 = sst [smem:[#allocation37_spill]] %s3315_s13 }
   0xd   :  { %3346 = sst [smem:[#allocation38_spill]] %s3316_s14 }
   0xe   :  { %3347 = sst [smem:[#allocation39_spill]] %s3317_s15 }
   0xf   :  { %3348 = sst [smem:[#allocation40_spill]] %s3318_s16 }
  0x10   :  { %3349 = sst [smem:[#allocation41_spill]] %s3319_s17 }
  0x11   :  { %3350 = sst [smem:[#allocation42_spill]] %s3320_s18 }
  0x12   :  { %3351 = sst [smem:[#allocation43_spill]] %s3321_s19 }
  0x13   :  { %24 = vsyncpa [#allocation6], 0 }
  0x14   :  { %26 = vsyncpa [#allocation6 + $0x1], 0 }
  0x15   :  { %27 = vsyncpa [#allocation9], 0 }
  0x16   :  { %28 = vsyncpa [#allocation12], 0 }
  0x17   :  { %29 = vsyncpa [#allocation15], 0 }
  0x18   :  { %30 = vsyncpa [#allocation18], 0 }
  0x19   :  { %31 = vsyncpa [#allocation7], 0 }
  0x1a   :  { %33 = vsyncpa [#allocation7 + $0x1], 0  ;;  %s2789_s0 = smov 0   ;;  %s2791_s30 = smov 0  }
  0x1b   :  { %s2793_s20 = smov 0   ;;  %s2795_s21 = smov 0  }
  0x1c   :  { %s2797_s1 = smov 0   ;;  %s2799_s22 = smov 0  }
  0x1d LB: > { %s3324_s2 = sadd.s32 4294967295, %s2668_s22   ;;  %p1949_p0 = scmp.ge.s32.totalorder %s2668_s22, 1  ;;  %s2668_s22 = sphi %s2799_s22, %s39_s22   ;;  %s2664_s1 = sphi %s2797_s1, %s3391_s1   ;;  %s2660_s21 = sphi %s2795_s21, %s3390_s21   ;;  %s2656_s20 = sphi %s2793_s20, %s3389_s20   ;;  %s2652_s30 = sphi %s2791_s30, %s3388_s30   ;;  %s2648_s0 = sphi %s2789_s0, %s3387_s0  }
  0x1e   : > { %p2823_p1 = scmp.eq.s32.totalorder %s3324_s2, 0  ;;  %p500_p2 = scmp.lt.s32.totalorder %s2668_s22, 3 }
  0x1f   : > { %s2670_s25 = smov [#allocation8]   ;;  %s2671_s27 = smov [#allocation11]  }
  0x20   : > { %s3352_s23 = scalar_select %p2823_p1, 1, 0 }
  0x21   : > { %p2828_p3 = pnand %p1949_p0, %p500_p2  ;;  %s518_s3 = sshll.u32 %s2670_s25, 4  ;;  %s2832_s3 = int_to_ptr.vmem [resolvable:$true] %s518_s3 }
  0x22   : > { %s542_s28 = sshll.u32 %s2671_s27, 4  ;;  %s2672_s29 = smov [#allocation14]   ;;  %s2843_s28 = int_to_ptr.vmem [resolvable:$true] %s542_s28 }
  0x23   : > { %s3353_s24 = scalar_select %p2828_p3, 1, 0 }
  0x24   : > { %p2193_p4 = pneg %p2828_p3  ;;  %s2845_s2 = sshll.u32 %s2672_s29, 4  ;;  %s571_s2 = int_to_ptr.vmem [resolvable:$true] %s2845_s2 }
  0x25   : > { %s3355_s5 = sld [smem:[#allocation31_spill]] }
  0x26   : > { %p2839_p6 = pnand %p2193_p4, %p2823_p1 }
  0x28   : > { %p2855_p8 = pneg %p2839_p6 }
  0x2b   : > { %s2344_s18 = scalar_lea.hbm %s3355_s5, 256 }
  0x2c   : > { %p2345_p7 = scmp.ne.s32.totalorder %s3355_s5, %s2344_s18  ;;  %p2351_p11 = scmp.lt.u32.totalorder %s2344_s18, %s3355_s5 }
  0x2e   : > { %p2347_p9 = pnand %p2855_p8, %p2345_p7 }
  0x30   : > { %p2348_p10 = pneg %p2347_p9 }
  0x32   : > { %p2353_p12 = pnand %p2351_p11, %p2348_p10 }
  0x34   : > { %2356 = shalt.err (!%p2353_p12)
}
  0x35   : > { %s2357_s16 = scalar_lea.vmem %s2832_s3, 256  ;;  %p2365_p4 = scmp.lt.s32.totalorder %s2832_s3, %s2832_s3 }
  0x36   : > { %p2358_p13 = scmp.ne.s32.totalorder %s2832_s3, %s2357_s16  ;;  %p2366_p5 = scmp.lt.s32.totalorder %s2357_s16, %s2357_s16 }
  0x38   : > { %p2360_p0 = pnand %p2358_p13, %p2855_p8  ;;  %p2367_p7 = por %p2366_p5, %p2365_p4 }
  0x3a   : > { %p2361_p2 = pneg %p2360_p0 }
  0x3c   : > { %p2368_p9 = pnand %p2367_p7, %p2361_p2 }
  0x3e   : > { %2371 = shalt.err (!%p2368_p9)
}
  0x3f   : > { %s2673_s17 = smov 64   ;;  %s2674_s18 = smov 4  }
  0x40   : > { %2196 = dma.hbm_to_vmem [thread:$0]  (!%p2839_p6), %s3355_s5, 256, %s2832_s3, [#allocation9], %s2673_s17, %s2673_s17, %s2674_s18  }
  0x41   : > { %s3357_s7 = sld [smem:[#allocation33_spill]] }
  0x47   : > { %s2372_s15 = scalar_lea.hbm %s3357_s7, 256 }
  0x48   : > { %p2373_p5 = scmp.ne.s32.totalorder %s3357_s7, %s2372_s15  ;;  %p2379_p12 = scmp.lt.u32.totalorder %s2372_s15, %s3357_s7 }
  0x4a   : > { %p2375_p10 = pnand %p2373_p5, %p2855_p8 }
  0x4c   : > { %p2376_p11 = pneg %p2375_p10 }
  0x4e   : > { %p2381_p13 = pnand %p2379_p12, %p2376_p11 }
  0x50   : > { %2384 = shalt.err (!%p2381_p13)
}
  0x51   : > { %s2385_s3 = scalar_lea.vmem %s2843_s28, 256  ;;  %p2393_p7 = scmp.lt.s32.totalorder %s2843_s28, %s2843_s28 }
  0x52   : > { %p2386_p0 = scmp.ne.s32.totalorder %s2843_s28, %s2385_s3  ;;  %p2394_p9 = scmp.lt.s32.totalorder %s2385_s3, %s2385_s3 }
  0x54   : > { %p2388_p2 = pnand %p2386_p0, %p2855_p8  ;;  %p2395_p5 = por %p2394_p9, %p2393_p7 }
  0x56   : > { %p2389_p4 = pneg %p2388_p2 }
  0x58   : > { %p2396_p10 = pnand %p2395_p5, %p2389_p4 }
  0x5a   : > { %2399 = shalt.err (!%p2396_p10)
}
  0x5b   : > { %2202 = dma.hbm_to_vmem [thread:$0]  (!%p2839_p6), %s3357_s7, 256, %s2843_s28, [#allocation12], %s2673_s17, %s2673_s17, %s2674_s18  }
  0x5c   : > { %s3358_s10 = sld [smem:[#allocation36_spill]] }
  0x62   : > { %s2400_s19 = scalar_lea.hbm %s3358_s10, 16 }
  0x63   : > { %p2401_p11 = scmp.ne.s32.totalorder %s3358_s10, %s2400_s19  ;;  %p2407_p0 = scmp.lt.u32.totalorder %s2400_s19, %s3358_s10 }
  0x65   : > { %p2403_p12 = pnand %p2401_p11, %p2855_p8 }
  0x67   : > { %p2404_p13 = pneg %p2403_p12 }
  0x69   : > { %p2409_p2 = pnand %p2407_p0, %p2404_p13 }
  0x6b   : > { %2412 = shalt.err (!%p2409_p2)
}
  0x6c   : > { %s2413_s3 = scalar_lea.vmem %s571_s2, 16  ;;  %s2420_s28 = scalar_lea.vmem %s571_s2, 32 }
  0x6d   : > { %p2414_p4 = scmp.ne.s32.totalorder %s571_s2, %s2413_s3  ;;  %p2421_p5 = scmp.lt.s32.totalorder %s571_s2, %s571_s2 }
  0x6e   : > { %p2422_p10 = scmp.lt.s32.totalorder %s2420_s28, %s2413_s3 }
  0x6f   : > { %p2416_p7 = pnand %p2414_p4, %p2855_p8 }
  0x70   : > { %p2423_p3 = por %p2422_p10, %p2421_p5 }
  0x71   : > { %p2417_p9 = pneg %p2416_p7 }
  0x73   : > { %p2424_p1 = pnand %p2423_p3, %p2417_p9 }
  0x75   : > { %2427 = shalt.err (!%p2424_p1)
}
  0x76   : > { %2208 = dma.hbm_to_vmem [thread:$0]  (!%p2839_p6), %s3358_s10, 16, %s571_s2, [#allocation15]  }
  0x77   : > { %s2675_s4 = smov [#allocation10]   ;;  %s2676_s13 = smov [#allocation13]  }
  0x78   : > { %s532_s9 = sshll.u32 %s2675_s4, 4  ;;  %s556_s15 = sshll.u32 %s2676_s13, 4  ;;  %s533_s9 = int_to_ptr.vmem [resolvable:$true] %s532_s9  ;;  %s557_s15 = int_to_ptr.vmem [resolvable:$true] %s556_s15 }
  0x79   : > { %s3359_s6 = sld [smem:[#allocation32_spill]] }
  0x7f   : > { %s2428_s27 = scalar_lea.hbm %s3359_s6, 16 }
  0x80   : > { %p2429_p1 = scmp.ne.s32.totalorder %s3359_s6, %s2428_s27  ;;  %p2435_p12 = scmp.lt.u32.totalorder %s2428_s27, %s3359_s6 }
  0x82   : > { %p2431_p3 = pnand %p2429_p1, %p2855_p8 }
  0x84   : > { %p2432_p11 = pneg %p2431_p3 }
  0x86   : > { %p2437_p13 = pnand %p2435_p12, %p2432_p11 }
  0x88   : > { %2440 = shalt.err (!%p2437_p13)
}
  0x89   : > { %s2441_s2 = scalar_lea.vmem %s533_s9, 16  ;;  %s2448_s17 = scalar_lea.vmem %s533_s9, 32 }
  0x8a   : > { %p2442_p0 = scmp.ne.s32.totalorder %s533_s9, %s2441_s2  ;;  %p2449_p7 = scmp.lt.s32.totalorder %s533_s9, %s533_s9 }
  0x8b   : > { %p2450_p9 = scmp.lt.s32.totalorder %s2448_s17, %s2441_s2 }
  0x8c   : > { %p2444_p2 = pnand %p2442_p0, %p2855_p8 }
  0x8d   : > { %p2451_p5 = por %p2450_p9, %p2449_p7 }
  0x8e   : > { %p2445_p4 = pneg %p2444_p2 }
  0x90   : > { %p2452_p10 = pnand %p2451_p5, %p2445_p4 }
  0x92   : > { %2455 = shalt.err (!%p2452_p10)
}
  0x93   : > { %2199 = dma.hbm_to_vmem [thread:$0]  (!%p2839_p6), %s3359_s6, 16, %s533_s9, [#allocation9]  }
  0x94   : > { %s3360_s8 = sld [smem:[#allocation34_spill]] }
  0x9a   : > { %s2456_s25 = scalar_lea.hbm %s3360_s8, 16 }
  0x9b   : > { %p2457_p1 = scmp.ne.s32.totalorder %s3360_s8, %s2456_s25  ;;  %p2463_p12 = scmp.lt.u32.totalorder %s2456_s25, %s3360_s8 }
  0x9d   : > { %p2459_p3 = pnand %p2457_p1, %p2855_p8 }
  0x9f   : > { %p2460_p11 = pneg %p2459_p3 }
  0xa1   : > { %p2465_p13 = pnand %p2463_p12, %p2460_p11 }
  0xa3   : > { %2468 = shalt.err (!%p2465_p13)
}
  0xa4   : > { %s2469_s28 = scalar_lea.vmem %s557_s15, 16  ;;  %s2476_s9 = scalar_lea.vmem %s557_s15, 32 }
  0xa5   : > { %p2470_p0 = scmp.ne.s32.totalorder %s557_s15, %s2469_s28  ;;  %p2477_p7 = scmp.lt.s32.totalorder %s557_s15, %s557_s15 }
  0xa6   : > { %p2478_p9 = scmp.lt.s32.totalorder %s2476_s9, %s2469_s28 }
  0xa7   : > { %p2472_p2 = pnand %p2470_p0, %p2855_p8 }
  0xa8   : > { %p2479_p5 = por %p2478_p9, %p2477_p7 }
  0xa9   : > { %p2473_p4 = pneg %p2472_p2 }
  0xab   : > { %p2480_p10 = pnand %p2479_p5, %p2473_p4 }
  0xad   : > { %2483 = shalt.err (!%p2480_p10)
}
  0xae   : > { %2205 = dma.hbm_to_vmem [thread:$0]  (!%p2839_p6), %s3360_s8, 16, %s557_s15, [#allocation12]  }
  0xaf   : > { %s2677_s18 = smov [#allocation16]   ;;  %s2678_s13 = smov [#allocation17]  }
  0xb0   : > { %s581_s4 = sshll.u32 %s2677_s18, 4  ;;  %s592_s19 = sshll.u32 %s2678_s13, 4  ;;  %s582_s4 = int_to_ptr.vmem [resolvable:$true] %s581_s4  ;;  %s593_s19 = int_to_ptr.vmem [resolvable:$true] %s592_s19 }
  0xb1   : > { %s2484_s29 = scalar_lea.hbm %s3313_s11, 16 }
  0xb2   : > { %p2485_p1 = scmp.ne.s32.totalorder %s3313_s11, %s2484_s29  ;;  %p2491_p12 = scmp.lt.u32.totalorder %s2484_s29, %s3313_s11 }
  0xb4   : > { %p2487_p3 = pnand %p2485_p1, %p2855_p8 }
  0xb6   : > { %p2488_p11 = pneg %p2487_p3 }
  0xb8   : > { %p2493_p13 = pnand %p2491_p12, %p2488_p11 }
  0xba   : > { %2496 = shalt.err (!%p2493_p13)
}
  0xbb   : > { %s2497_s15 = scalar_lea.vmem %s582_s4, 16  ;;  %s2504_s2 = scalar_lea.vmem %s582_s4, 32 }
  0xbc   : > { %p2498_p0 = scmp.ne.s32.totalorder %s582_s4, %s2497_s15  ;;  %p2505_p7 = scmp.lt.s32.totalorder %s582_s4, %s582_s4 }
  0xbd   : > { %p2506_p9 = scmp.lt.s32.totalorder %s2504_s2, %s2497_s15 }
  0xbe   : > { %p2500_p2 = pnand %p2498_p0, %p2855_p8 }
  0xbf   : > { %p2507_p5 = por %p2506_p9, %p2505_p7 }
  0xc0   : > { %p2501_p4 = pneg %p2500_p2 }
  0xc2   : > { %p2508_p10 = pnand %p2507_p5, %p2501_p4 }
  0xc4   : > { %2511 = shalt.err (!%p2508_p10)
}
  0xc5   : > { %2211 = dma.hbm_to_vmem [thread:$0]  (!%p2839_p6), %s3313_s11, 16, %s582_s4, [#allocation15]  }
  0xc6   : > { %s2512_s27 = scalar_lea.hbm %s3314_s12, 16 }
  0xc7   : > { %p2513_p1 = scmp.ne.s32.totalorder %s3314_s12, %s2512_s27  ;;  %p2519_p12 = scmp.lt.u32.totalorder %s2512_s27, %s3314_s12 }
  0xc9   : > { %p2515_p3 = pnand %p2513_p1, %p2855_p8 }
  0xcb   : > { %p2516_p11 = pneg %p2515_p3 }
  0xcd   : > { %p2521_p13 = pnand %p2519_p12, %p2516_p11 }
  0xcf   : > { %2524 = shalt.err (!%p2521_p13)
}
  0xd0   : > { %s2525_s9 = scalar_lea.vmem %s593_s19, 16  ;;  %s2532_s4 = scalar_lea.vmem %s593_s19, 32 }
  0xd1   : > { %p2526_p0 = scmp.ne.s32.totalorder %s593_s19, %s2525_s9  ;;  %p2533_p7 = scmp.lt.s32.totalorder %s593_s19, %s593_s19 }
  0xd2   : > { %p2534_p9 = scmp.lt.s32.totalorder %s2532_s4, %s2525_s9 }
  0xd3   : > { %p2528_p2 = pnand %p2526_p0, %p2855_p8 }
  0xd4   : > { %p2535_p5 = por %p2534_p9, %p2533_p7 }
  0xd5   : > { %p2529_p4 = pneg %p2528_p2 }
  0xd7   : > { %p2536_p10 = pnand %p2535_p5, %p2529_p4 }
  0xd9   : > { %2539 = shalt.err (!%p2536_p10)
}
  0xda   : > { %2214 = dma.hbm_to_vmem [thread:$0]  (!%p2839_p6), %s3314_s12, 16, %s593_s19, [#allocation18]  }
  0xdb   : > { %s1948_s14 = sadd.s32 4294967294, %s2668_s22   ;;  %s51_s17 = sadd.s32 1, %s2664_s1 }
  0xdc   : > { %s112_s26 = sadd.s32 1, %s2656_s20  ;;  %p53_p8 = scmp.ge.s32.totalorder %s51_s17, 2 }
  0xdd   : > { %p119_p1 = scmp.ne.s32.totalorder %s2656_s20, %s2652_s30  ;;  %p120_p3 = scmp.eq.s32.totalorder %s2668_s22, 0 }
  0xde   : > { %p125_p11 = scmp.ne.s32.totalorder %s2652_s30, %s2648_s0  ;;  %s3393_s17 = smov (%p53_p8, %s51_s17), 0 }
  0xdf   : > { %p3000_p12 = por %p120_p3, %p119_p1  ;;  %p3362_p13 = scmp.ne.s32.totalorder %s3352_s23, 0 }
  0xe0   : > { %s109_s13 = ssub.s32 %s2664_s1, %s3393_s17  ;;  %s3364_s25 = sadd.s32 4294967295, %s2668_s22  }
  0xe1   : > { %p3006_p6 = por %p3362_p13, %p125_p11  ;;  %p487_p0 = scmp.eq.s32.totalorder %s3364_s25, 1 }
  0xe2   : > { %p110_p2 = scmp.eq.s32.totalorder %s109_s13, 0  ;;  %p493_p4 = scmp.eq.s32.totalorder %s1948_s14, 1 }
  0xe3   : > { %p3014_p7 = por %p487_p0, %p119_p1  ;;  %p2230_p9 = scmp.lt.s32.totalorder %s2668_s22, 2 }
  0xe4   : > { %s3020_s29 = scalar_select %p110_p2, %s2656_s20, %s112_s26  }
  0xe5   : > { %s3365_s27 = scalar_select %p3014_p7, 1, 0 }
  0xe6   : > { %p3022_p5 = por %p493_p4, %p125_p11  ;;  %s638_s3 = sand.u32 1, %s2656_s20  }
  0xe7   : > { %s1958_s28 = sshll.u32 %s2664_s1, 4  ;;  %s641_s9 = scalar_lea.vmem [#allocation5], %s638_s3 }
  0xe8   : > { %s3366_s16 = scalar_select %p3022_p5, 1, 0 }
  0xe9   : > { %s648_s4 = sshll.u32 %s641_s9, 4  ;;  %s3367_s25 = sld [smem:[#allocation28_spill]]  ;;  %s3033_s4 = int_to_ptr.vmem [resolvable:$true] %s648_s4 }
  0xea   : > { %p3037_p10 = pnand %p2230_p9, %p3000_p12  ;;  %s639_s26 = scalar_lea.sflag [#allocation6], %s638_s3 }
  0xec   : > { %p2542_p1 = pneg %p3037_p10 }
  0xef   : > { %s3031_s13 = scalar_lea.hbm %s3367_s25, %s1958_s28  ;;  %s2545_s2 = scalar_lea.hbm %s3367_s25, 32 }
  0xf0   : > { %s2540_s9 = scalar_lea.hbm %s3031_s13, 16  ;;  %p2546_p12 = scmp.lt.u32.totalorder %s3031_s13, %s3367_s25 }
  0xf1   : > { %p2541_p8 = scmp.ne.s32.totalorder %s3031_s13, %s2540_s9  ;;  %p2547_p13 = scmp.lt.u32.totalorder %s2545_s2, %s2540_s9 }
  0xf2   : > { %p2549_p2 = scmp.lt.u32.totalorder %s2540_s9, %s3031_s13 }
  0xf3   : > { %p2543_p3 = pnand %p2542_p1, %p2541_p8  ;;  %p2548_p0 = por %p2547_p13, %p2546_p12 }
  0xf5   : > { %p2544_p11 = pneg %p2543_p3  ;;  %p2550_p4 = por %p2549_p2, %p2548_p0 }
  0xf7   : > { %p2551_p9 = pnand %p2550_p4, %p2544_p11 }
  0xf9   : > { %2554 = shalt.err (!%p2551_p9)
}
  0xfa   : > { %s2555_s3 = scalar_lea.vmem %s3033_s4, 16  ;;  %s2679_s28 = smov [#allocation5]  }
  0xfb   : > { %p2556_p8 = scmp.ne.s32.totalorder %s3033_s4, %s2555_s3  ;;  %s2560_s15 = sshll.u32 %s2679_s28, 4  ;;  %s2561_s15 = int_to_ptr.vmem [resolvable:$false] %s2560_s15 }
  0xfc   : > { %s2562_s5 = scalar_lea.vmem %s2561_s15, 32  ;;  %p2563_p7 = scmp.lt.s32.totalorder %s3033_s4, %s2561_s15 }
  0xfd   : > { %p2558_p3 = pnand %p2556_p8, %p2542_p1  ;;  %p2564_p12 = scmp.lt.s32.totalorder %s2562_s5, %s2555_s3 }
  0xff   : > { %p2559_p5 = pneg %p2558_p3  ;;  %p2565_p13 = por %p2564_p12, %p2563_p7 }
 0x101   : > { %p2566_p0 = pnand %p2565_p13, %p2559_p5 }
 0x103   : > { %2569 = shalt.err (!%p2566_p0)
}
 0x104   : > { %2218 = dma.hbm_to_vmem [thread:$0]  (!%p3037_p10), %s3031_s13, 16, %s3033_s4, %s639_s26  }
 0x105   : > { %p3369_p11 = scmp.ne.s32.totalorder %s3353_s24, 0 }
 0x106   : > { %s3069_s9 = sand.u32 (!%p3369_p11), 1, %s2652_s30  }
 0x107   : > { %657 = sbr.rel (%p3369_p11) target bundleno = 2815 (0xaff), region = 96  ;;  %s660_s2 = scalar_lea.sflag (!%p3369_p11), [#allocation6], %s3069_s9 }
 0x10e   : > { %2623 = dma.done.wait (%p3006_p6), %s660_s2, 16  }
 0x10f   : > { %2625 = vsyncadd (%p3006_p6), %s660_s2, 4294967280  ;;  %p3370_p7 = scmp.ne.s32.totalorder %s3352_s23, 0 }
 0x111   : > { %2627 = dma.done.wait (%p3370_p7), [#allocation9], 272  }
 0x112   : > { %2629 = vsyncadd (%p3370_p7), [#allocation9], 4294967024 }
 0x113   : > { %2631 = dma.done.wait (%p3370_p7), [#allocation12], 272  }
 0x114   : > { %2633 = vsyncadd (%p3370_p7), [#allocation12], 4294967024 }
 0x115   : > { %2635 = dma.done.wait (%p3370_p7), [#allocation15], 32  }
 0x116   : > { %2637 = vsyncadd (%p3370_p7), [#allocation15], 4294967264 }
 0x117   : > { %2639 = dma.done.wait (%p3370_p7), [#allocation18], 16  }
 0x118   : > { %2641 = vsyncadd (%p3370_p7), [#allocation18], 4294967280  ;;  %p755_p6 = scmp.lt.s32.totalorder %s2660_s21, 1  ;;  %v2680_v0 = vmov 0.0   ;;  %vm2681_vm0 = vmmov 0   ;;  %s3371_s13 = sld [smem:[#allocation26_spill]]  ;;  %v983_v49 = vlaneseq }
 0x119   : > { %2061 = vmatprep.subr.bf16.mxu0 %v2680_v0  ;;  %2065 = vmatprep.mubr.msk.bf16.mxu0 %vm2681_vm0, %v2680_v0  ;;  %v2304_v1 = vld [vmem:[#allocation8] sm:$0xff]   ;;  %v2305_v2 = vld [vmem:[#allocation8 + $0x8] sm:$0xff]   ;;  %vm796_vm1 = vcmask 261120   ;;  %s3372_s28 = sld [smem:[#allocation29_spill]]  ;;  %s3373_s2 = sld [smem:[#allocation27_spill]]  ;;  %v2308_v9 = vld [vmem:[#allocation11] sm:$0xff]  }
 0x11a   : > { %s756_s24 = scalar_select %p755_p6, %s2660_s21, 1  ;;  %2069 = vmatprep.subr.bf16.mxu1 %v2680_v0  ;;  %2073 = vmatprep.mubr.msk.bf16.mxu1 %vm2681_vm0, %v2680_v0  ;;  %v2309_v10 = vld [vmem:[#allocation11 + $0x8] sm:$0xff]   ;;  %v1970_v11 = vld [vmem:[#allocation10] ss:$0 sm:$0xff]  ;;  %vm904_vm2 = vcmask 257024   ;;  %vm989_vm3 = vcmask 64512  }
 0x11b   : > { %2062 = vmatpush3.bf16.msra.mxu0 %v2304_v1  ;;  %2070 = vmatpush3.bf16.msra.mxu1 %v2308_v9  ;;  %s3374_s23 = sld [smem:[#allocation30_spill]]  ;;  %s2684_s26 = smov 104   ;;  %v1974_v31 = vld [vmem:[#allocation13] ss:$0 sm:$0xff]  ;;  %vm1052_vm4 = vcmask 1043456   ;;  %v984_v52 = vshrl.u32 %v983_v49, 7 }
 0x11c   : > { %s1968_s19 = sshll.u32 %s756_s24, 3  ;;  %2063 = vmatprep.subr.bf16.mxu0 %v2680_v0  ;;  %2071 = vmatprep.subr.bf16.mxu1 %v2680_v0  ;;  %s3375_s3 = scalar_lea.vmem [#allocation5], %s3069_s9  ;;  %vm1097_vm5 = vcmask 60416   ;;  %vm1225_vm6 = vcmask 126016   ;;  %vm1352_vm7 = vcmask 191616   ;;  %vm1479_vm8 = vcmask 257216  }
 0x11d   : > { %v979_v50 = vld [vmem:[%s3375_s3] sm:$0x1]  ;;  %v985_v54 = vsub.s32 0, %v984_v52  ;;  %s2685_s15 = smov 8   ;;  %s3376_s24 = sld [smem:[#allocation35_spill]]  ;;  %vm1687_vm9 = vcmask 523264  }
 0x11e   : > { %s758_s14 = scalar_lea.vmem %s3371_s13, %s1968_s19  ;;  %s2682_s13 = smov 112   ;;  %v1982_v51 = vadd.f32 -1.0, %v979_v50 }
 0x11f   : > { %v771_v3 = vld [vmem:[%s758_s14] sm:$0xff]  ;;  %s765_s18 = scalar_lea.vmem %s3373_s2, %s1968_s19  ;;  %2064 = vmatpush3.bf16.msra.mxu0 %v2305_v2  ;;  %v2307_v7 = vld [vmem:[%s3372_s28 + $0x8] sm:$0xff]   ;;  %2072 = vmatpush3.bf16.msra.mxu1 %v2309_v10  ;;  %s2683_s14 = smov 120  }
 0x120   : > { %v2306_v4 = vld [vmem:[%s3372_s28] sm:$0xff]   ;;  %v772_v5 = vpack.c.bf16 %v771_v3, %v771_v3  ;;  %2077 = vmatprep.subr.bf16.mxu0 %v2680_v0  ;;  %2085 = vmatprep.subr.bf16.mxu1 %v2680_v0  ;;  %v981_v53 = vmul.f32 1e+10, %v1982_v51  ;;  %s2686_s19 = smov 16   ;;  %s3378_s4 = sld [smem:[#allocation39_spill]] }
 0x121   : > { %v3112_v6 = vld [vmem:[%s765_s18] sm:$0xff]  ;;  %s3379_s2 = sld [smem:[#allocation38_spill]]  ;;  %s3382_s18 = sld [smem:[#allocation42_spill]] }
 0x122   : > { %2066 = vmatmul.mubr.msk.bf16.vlgmr.msra.gmra.mrb[0].mxu0 %vm796_vm1, %v772_v5  ;;  %v909_v8 = vpack.c.bf16 %v3112_v6, %v3112_v6  ;;  %2074 = vmatmul.mubr.msk.bf16.vlgmr.msra.gmra.mrb[0].mxu1 %vm796_vm1, %v772_v5  ;;  %v1978_v18 = vld [vmem:[%s3374_s23] ss:$0 sm:$0xff]  ;;  %v986_v55 = vrot.slane %v981_v53, %v985_v54  ;;  %s2687_s23 = smov 24   ;;  %s3383_s8 = sld [smem:[#allocation43_spill]] }
 0x123   : > { %2078 = vmatpush3.bf16.msra.mxu0 %v2306_v4  ;;  %2081 = vmatprep.mubr.msk.bf16.mxu0 %vm2681_vm0, %v2680_v0  ;;  %p3384_p10 = scmp.ne.s32.totalorder %s3365_s27, 0 }
 0x124   : > { %2079 = vmatprep.subr.bf16.mxu0 %v2680_v0  ;;  %2087 = vmatprep.mubr.msk.bf16.mxu1 %vm2681_vm0, %v2680_v0 }
 0x127   : > { %2080 = vmatpush3.bf16.msra.mxu0 %v2307_v7 }
 0x128   : > { %2091 = vmatprep.subr.bf16.mxu0 %v2680_v0 }
 0x12a   : > { %2082 = vmatmul.mubr.msk.bf16.vlgmr.msra.gmra.mrb[4].mxu0 %vm796_vm1, %v909_v8 }
 0x12b   : > { %2093 = vmatprep.mubr.msk.bf16.mxu0 %vm2681_vm0, %v2680_v0 }
 0x1f5   : > { %v834_v12 = vpop.f32.mrb[0].mxu0  ;;  %v897_v32 = vpop.f32.mrb[0].mxu1 }
 0x1f6   : > { %v835_v13 = vadd.f32 %v1970_v11, %v834_v12  ;;  %v2067_v14 = vpop.f32.mrb[1].mxu0  ;;  %v898_v33 = vadd.f32 %v1974_v31, %v897_v32  ;;  %v2075_v34 = vpop.f32.mrb[1].mxu1 }
 0x1f7   : > { %v837_v15 = vpop.f32.mrb[2].mxu0  ;;  %v900_v35 = vpop.f32.mrb[2].mxu1 }
 0x1f8   : > { %v903_v16 = vpack.c.bf16 %v835_v13, %v835_v13  ;;  %v2068_v17 = vpop.f32.mrb[3].mxu0  ;;  %v906_v36 = vpack.c.bf16 %v898_v33, %v898_v33  ;;  %v2076_v37 = vpop.f32.mrb[3].mxu1 }
 0x1fa   : > { %905 = vst.msk [vmem:[#allocation2] sm:$0xf] %vm904_vm2, %v903_v16  ;;  %907 = vst.msk [vmem:[#allocation3] sm:$0xf] %vm904_vm2, %v906_v36 }
 0x1fd   : > { %v971_v19 = vpop.f32.mrb[4].mxu0 }
 0x1fe   : > { %v972_v20 = vadd.f32 %v1978_v18, %v971_v19  ;;  %v2083_v21 = vpop.f32.mrb[5].mxu0 }
 0x1ff   : > { %v974_v22 = vpop.f32.mrb[6].mxu0 }
 0x200   : > { %v977_v23 = vmul.f32 0.35355338, %v972_v20  ;;  %v2084_v24 = vpop.f32.mrb[7].mxu0 }
 0x201   : > { %v988_v25 = vld [vmem:[#allocation2] sm:$0xf]  ;;  %v1048_v38 = vld [vmem:[#allocation3] sm:$0xf] }
 0x202   : > { %v2310_v26 = vld [vmem:[#allocation2] ss:$0 sps:$4 sm:$0xff]   ;;  %v994_v27 = vsel %vm989_vm3, %v988_v25, 0  ;;  %v978_v29 = vpack.c.bf16 %v977_v23, %v977_v23  ;;  %v1054_v39 = vsel %vm1052_vm4, %v1048_v38, 0  ;;  %v2313_v23 = vld [vmem:[#allocation3] ss:$0 sps:$4 sm:$0xff]  }
 0x203   : > { %v2311_v28 = vld [vmem:[#allocation2] ss:$0 sps:$4 sm:$0xff]   ;;  %2086 = vmatpush3.bf16.xpose.msra.mxu1 %v994_v27  ;;  %1233 = vrot.lane.b32.xlu1 %v2310_v26, %s2682_s13 }
 0x204   : > { %1106 = vrot.lane.b32.xlu0 %v2311_v28, %s2683_s14  ;;  %2097 = vmatprep.subr.bf16.mxu1 %v2680_v0  ;;  %v2312_v30 = vld [vmem:[#allocation2] ss:$0 sps:$4 sm:$0xff]  }
 0x205   : > { %2092 = vmatpush3.bf16.msra.mxu0 %v1054_v39  ;;  %v2314_v39 = vld [vmem:[#allocation3] ss:$0 sps:$4 sm:$0xff]  }
 0x206   : > { %2103 = vmatprep.subr.bf16.mxu0 %v2680_v0 }
 0x207   : > { %1228 = vrot.lane.b32.xlu1 %v978_v29, %s2682_s13 }
 0x208   : > { %1101 = vrot.lane.b32.xlu0 %v978_v29, %s2683_s14 }
 0x20a   : > { %2088 = vmatmul.mubr.msk.bf16.vlgmr.msra.gmra.mrb[4].mxu1 %vm989_vm3, %v978_v29 }
 0x20b   : > { %1355 = vrot.lane.b32.xlu1 %v978_v29, %s2684_s26  ;;  %2099 = vmatprep.mubr.msk.bf16.mxu1 %vm2681_vm0, %v2680_v0 }
 0x20c   : > { %1360 = vrot.lane.b32.xlu0 %v2312_v30, %s2684_s26 }
 0x275   : > { %v1234_v42 = vpop.permute.xlu1 %1233 }
 0x276   : > { %v1107_v40 = vpop.permute.xlu0 %1106  ;;  %v1239_v44 = vsel %vm989_vm3, %v1234_v42, 0 }
 0x277   : > { %v1112_v41 = vsel %vm989_vm3, %v1107_v40, 0 }
 0x278   : > { %2098 = vmatpush3.bf16.xpose.msra.mxu1 %v1112_v41 }
 0x279   : > { %2109 = vmatprep.subr.bf16.mxu1 %v2680_v0  ;;  %v1229_v46 = vpop.permute.xlu1 %1228 }
 0x27a   : > { %v1102_v43 = vpop.permute.xlu0 %1101 }
 0x27d   : > { %v1356_v48 = vpop.permute.xlu1 %1355 }
 0x27e   : > { %v1361_v45 = vpop.permute.xlu0 %1360 }
 0x27f   : > { %2100 = vmatmul.mubr.msk.bf16.vlgmr.msra.gmra.mrb[8].mxu1 %vm989_vm3, %v1102_v43  ;;  %v1366_v47 = vsel %vm989_vm3, %v1361_v45, 0  ;;  %v2315_v43 = vld [vmem:[#allocation3] ss:$0 sps:$4 sm:$0xff]  }
 0x280   : > { %2110 = vmatpush3.bf16.xpose.msra.mxu1 %v1239_v44  ;;  %2111 = vmatprep.mubr.msk.bf16.mxu1 %vm2681_vm0, %v2680_v0 }
 0x281   : > { %2121 = vmatprep.subr.bf16.mxu1 %v2680_v0 }
 0x287   : > { %2112 = vmatmul.mubr.msk.bf16.vlgmr.msra.gmra.mrb[12].mxu1 %vm989_vm3, %v1229_v46 }
 0x288   : > { %2122 = vmatpush3.bf16.xpose.msra.mxu1 %v1366_v47  ;;  %2123 = vmatprep.mubr.msk.bf16.mxu1 %vm2681_vm0, %v2680_v0 }
 0x289   : > { %2133 = vmatprep.subr.bf16.mxu1 %v2680_v0 }
 0x28f   : > { %2124 = vmatmul.mubr.msk.bf16.vlgmr.msra.gmra.mrb[16].mxu1 %vm989_vm3, %v1356_v48 }
 0x290   : > { %2137 = vmatprep.mubr.msk.bf16.mxu1 %vm2681_vm0, %v2680_v0 }
 0x2dd   : > { %v1030_v56 = vpop.f32.mrb[4].mxu1 }
 0x2de   : > { %v1031_v57 = vadd.f32 %v1030_v56, %v986_v55  ;;  %v2089_v58 = vpop.f32.mrb[5].mxu1 }
 0x2df   : > { %v1033_v59 = vpop.f32.mrb[6].mxu1 }
 0x2e0   : > { %v2090_v60 = vpop.f32.mrb[7].mxu1  ;;  %v1036_v61 = vsel %vm989_vm3, %v1031_v57, -inf }
 0x2e1   : > { %1037 = vmax.xlane.f32.xlu0 %v1036_v61 }
 0x352   : > { %v1148_v62 = vpop.f32.mrb[8].mxu1 }
 0x353   : > { %v1149_v63 = vadd.f32 %v1148_v62, %v986_v55  ;;  %v2101_v1 = vpop.f32.mrb[9].mxu1 }
 0x354   : > { %v1151_v2 = vpop.f32.mrb[10].mxu1 }
 0x355   : > { %v2102_v3 = vpop.f32.mrb[11].mxu1  ;;  %v1154_v4 = vsel %vm989_vm3, %v1149_v63, -inf }
 0x356   : > { %1155 = vmax.xlane.f32.xlu1 %v1154_v4 }
 0x35a   : > { %v1275_v5 = vpop.f32.mrb[12].mxu1 }
 0x35b   : > { %v1276_v7 = vadd.f32 %v1275_v5, %v986_v55  ;;  %v2113_v8 = vpop.f32.mrb[13].mxu1 }
 0x35c   : > { %v1278_v9 = vpop.f32.mrb[14].mxu1 }
 0x35d   : > { %v2114_v10 = vpop.f32.mrb[15].mxu1  ;;  %v1281_v11 = vsel %vm989_vm3, %v1276_v7, -inf }
 0x35e   : > { %1282 = vmax.xlane.f32.xlu0 %v1281_v11  ;;  %v2316_v11 = vld [vmem:[%s3376_s24] sm:$0xff]  }
 0x35f   : > { %2134 = vmatpush3.bf16.msra.mxu1 %v2316_v11 }
 0x360   : > { %2135 = vmatprep.subr.bf16.mxu1 %v2680_v0 }
 0x362   : > { %v1402_v12 = vpop.f32.mrb[16].mxu1 }
 0x363   : > { %v1403_v13 = vadd.f32 %v1402_v12, %v986_v55  ;;  %v2125_v14 = vpop.f32.mrb[17].mxu1 }
 0x364   : > { %v1405_v15 = vpop.f32.mrb[18].mxu1 }
 0x365   : > { %v2126_v16 = vpop.f32.mrb[19].mxu1  ;;  %v1408_v17 = vsel %vm989_vm3, %v1403_v13, -inf }
 0x366   : > { %1409 = vmax.xlane.f32.xlu0 %v1408_v17 }
 0x36e   : > { %v1038_v18 = vpop.xlane.xlu0 %1037 }
 0x36f   : > { %v1039_v19 = vsub.f32 %v1031_v57, %v1038_v18 }
 0x371   : > { %v1040_v20 = vmul.f32 1.442695, %v1039_v19 }
 0x373   : > { %2324 = vpow2.f32 %v1040_v20 }
 0x37d   : > { %v2325_v21 = vpop.eup %2324 }
 0x37e   : > { %v1042_v22 = vsel %vm989_vm3, %v2325_v21, 0.0 }
 0x37f   : > { %1043 = vadd.xlane.f32.xlu1 %v1042_v22 }
 0x390   : > { %1170 = vrot.lane.b32.xlu1 %v2313_v23, %s2683_s14  ;;  %s1763_s14 = scalar_lea.sflag [#allocation7], %s3069_s9 }
 0x3e3   : > { %v1156_v24 = vpop.xlane.xlu1 %1155 }
 0x3e4   : > { %v1157_v25 = vsub.f32 %v1149_v63, %v1156_v24 }
 0x3e6   : > { %v1158_v26 = vmul.f32 1.442695, %v1157_v25 }
 0x3e8   : > { %2326 = vpow2.f32 %v1158_v26 }
 0x3eb   : > { %v1283_v27 = vpop.xlane.xlu0 %1282 }
 0x3ec   : > { %v1284_v28 = vsub.f32 %v1276_v7, %v1283_v27  ;;  %v2000_v27 = vld [vmem:[#allocation14] ss:$0 sm:$0xff] }
 0x3ee   : > { %v1285_v29 = vmul.f32 1.442695, %v1284_v28 }
 0x3f0   : > { %2328 = vpow2.f32 %v1285_v29 }
 0x3f2   : > { %v2327_v30 = vpop.eup %2326 }
 0x3f3   : > { %v1410_v31 = vpop.xlane.xlu0 %1409  ;;  %v1160_v32 = vsel %vm989_vm3, %v2327_v30, 0.0 }
 0x3f4   : > { %v1411_v33 = vsub.f32 %v1403_v13, %v1410_v31  ;;  %1161 = vadd.xlane.f32.xlu0 %v1160_v32  ;;  %v2317_v13 = vld [vmem:[%s3376_s24 + $0x8] sm:$0xff]  }
 0x3f5   : > { %2136 = vmatpush3.bf16.msra.mxu1 %v2317_v13 }
 0x3f6   : > { %v1412_v34 = vmul.f32 1.442695, %v1411_v33  ;;  %2149 = vmatprep.subr.bf16.mxu1 %v2680_v0 }
 0x3f8   : > { %2330 = vpow2.f32 %v1412_v34 }
 0x3fa   : > { %v2329_v35 = vpop.eup %2328 }
 0x3fb   : > { %v1287_v36 = vsel %vm989_vm3, %v2329_v35, 0.0 }
 0x3fc   : > { %1288 = vadd.xlane.f32.xlu1 %v1287_v36 }
 0x402   : > { %v2331_v37 = vpop.eup %2330 }
 0x403   : > { %v1414_v38 = vsel %vm989_vm3, %v2331_v37, 0.0 }
 0x404   : > { %1415 = vadd.xlane.f32.xlu0 %v1414_v38 }
 0x40c   : > { %v1044_v40 = vpop.xlane.xlu1 %1043 }
 0x40d   : > { %2332 = vrcp.f32 %v1044_v40  ;;  %1424 = vrot.lane.b32.xlu1 %v2314_v39, %s2684_s26  ;;  %s3377_s26 = sld [smem:[#allocation37_spill]] }
 0x410   : > { %v1171_v44 = vpop.permute.xlu1 %1170 }
 0x411   : > { %v1176_v46 = vsel %vm1052_vm4, %v1171_v44, 0 }
 0x413   : > { %v2318_v40 = vld [vmem:[%s3377_s26] sm:$0xff]  }
 0x417   : > { %v2333_v41 = vpop.eup %2332 }
 0x418   : > { %v1046_v42 = vmul.f32 %v2333_v41, %v2325_v21  ;;  %v2319_v41 = vld [vmem:[%s3377_s26 + $0x8] sm:$0xff]  }
 0x41a   : > { %1297 = vrot.lane.b32.xlu0 %v2315_v43, %s2682_s13  ;;  %v1047_v45 = vpack.c.bf16 %v1046_v42, %v1046_v42  ;;  %v2321_v42 = vld [vmem:[%s3378_s4 + $0x8] sm:$0xff]   ;;  %s1967_s13 = sshll.u32 %s3069_s9, 3 }
 0x41c   : > { %2094 = vmatmul.mubr.msk.bf16.vlgmr.msra.gmra.mrb[8].mxu0 %vm989_vm3, %v1047_v45 }
 0x41d   : > { %2104 = vmatpush3.bf16.msra.mxu0 %v1176_v46  ;;  %2105 = vmatprep.mubr.msk.bf16.mxu0 %vm2681_vm0, %v2680_v0 }
 0x41e   : > { %2115 = vmatprep.subr.bf16.mxu0 %v2680_v0 }
 0x481   : > { %v1162_v47 = vpop.xlane.xlu0 %1161 }
 0x482   : > { %2334 = vrcp.f32 %v1162_v47  ;;  %v2004_v47 = vld [vmem:[#allocation16] ss:$0 sm:$0xff] }
 0x489   : > { %v1289_v48 = vpop.xlane.xlu1 %1288 }
 0x48a   : > { %2336 = vrcp.f32 %v1289_v48 }
 0x48c   : > { %v2335_v49 = vpop.eup %2334 }
 0x48d   : > { %v1164_v50 = vmul.f32 %v2335_v49, %v2327_v30  ;;  %v1425_v57 = vpop.permute.xlu1 %1424  ;;  %v2005_v49 = vld [vmem:[#allocation17] ss:$0 sm:$0xff] }
 0x48e   : > { %v1430_v59 = vsel %vm1052_vm4, %v1425_v57, 0 }
 0x48f   : > { %v1165_v51 = vpack.c.bf16 %v1164_v50, %v1164_v50 }
 0x491   : > { %2106 = vmatmul.mubr.msk.bf16.vlgmr.msra.gmra.mrb[12].mxu0 %vm989_vm3, %v1165_v51  ;;  %v1416_v52 = vpop.xlane.xlu0 %1415 }
 0x492   : > { %2338 = vrcp.f32 %v1416_v52  ;;  %2117 = vmatprep.mubr.msk.bf16.mxu0 %vm2681_vm0, %v2680_v0 }
 0x494   : > { %v2337_v53 = vpop.eup %2336 }
 0x495   : > { %v1291_v54 = vmul.f32 %v2337_v53, %v2329_v35  ;;  %v1298_v55 = vpop.permute.xlu0 %1297  ;;  %v2322_v53 = vld [vmem:[%s3378_s4 + $0x10] sm:$0xff]  }
 0x496   : > { %v1303_v56 = vsel %vm1052_vm4, %v1298_v55, 0  ;;  %v2006_v55 = vld [vmem:[%s3379_s2] ss:$0 sm:$0xff] }
 0x497   : > { %2116 = vmatpush3.bf16.msra.mxu0 %v1303_v56  ;;  %v1292_v58 = vpack.c.bf16 %v1291_v54, %v1291_v54  ;;  %v2323_v54 = vld [vmem:[%s3378_s4 + $0x18] sm:$0xff]  }
 0x498   : > { %2127 = vmatprep.subr.bf16.mxu0 %v2680_v0 }
 0x49a   : > { %2118 = vmatmul.mubr.msk.bf16.vlgmr.msra.gmra.mrb[16].mxu0 %vm989_vm3, %v1292_v58 }
 0x49b   : > { %2128 = vmatpush3.bf16.msra.mxu0 %v1430_v59  ;;  %2129 = vmatprep.mubr.msk.bf16.mxu0 %vm2681_vm0, %v2680_v0 }
 0x49c   : > { %v2339_v60 = vpop.eup %2338  ;;  %2141 = vmatprep.subr.bf16.mxu0 %v2680_v0 }
 0x49d   : > { %v1418_v61 = vmul.f32 %v2339_v60, %v2331_v37 }
 0x49f   : > { %v1419_v62 = vpack.c.bf16 %v1418_v61, %v1418_v61 }
 0x4a2   : > { %2130 = vmatmul.mubr.msk.bf16.vlgmr.msra.gmra.mrb[20].mxu0 %vm989_vm3, %v1419_v62 }
 0x4a3   : > { %2145 = vmatprep.mubr.msk.bf16.mxu0 %vm2681_vm0, %v2680_v0  ;;  %2142 = vmatpush3.bf16.msra.mxu0 %v2318_v40 }
 0x4a4   : > { %2143 = vmatprep.subr.bf16.mxu0 %v2680_v0 }
 0x4a7   : > { %2144 = vmatpush3.bf16.msra.mxu0 %v2319_v41 }
 0x4ef   : > { %v1090_v63 = vpop.f32.mrb[8].mxu0 }
 0x4f0   : > { %v1096_v1 = vpack.c.bf16 %v1090_v63, %v1090_v63  ;;  %v2095_v2 = vpop.f32.mrb[9].mxu0 }
 0x4f1   : > { %v1093_v3 = vpop.f32.mrb[10].mxu0 }
 0x4f2   : > { %1098 = vst.msk [vmem:[#allocation4] sm:$0xf] %vm1097_vm5, %v1096_v1  ;;  %v2096_v4 = vpop.f32.mrb[11].mxu0 }
 0x564   : > { %v1212_v5 = vpop.f32.mrb[12].mxu0 }
 0x565   : > { %v2022_v7 = vpack.c.bf16 %v1212_v5, %v1212_v5  ;;  %v2107_v8 = vpop.f32.mrb[13].mxu0 }
 0x566   : > { %v1215_v9 = vpop.f32.mrb[14].mxu0 }
 0x567   : > { %1222 = vrot.lane.b32.xlu1 %v2022_v7, %s2685_s15  ;;  %v2108_v10 = vpop.f32.mrb[15].mxu0  ;;  %s3381_s15 = sld [smem:[#allocation41_spill]] }
 0x56d   : > { %v1339_v12 = vpop.f32.mrb[16].mxu0 }
 0x56e   : > { %v2023_v14 = vpack.c.bf16 %v1339_v12, %v1339_v12  ;;  %v2119_v15 = vpop.f32.mrb[17].mxu0 }
 0x56f   : > { %v1342_v16 = vpop.f32.mrb[18].mxu0 }
 0x570   : > { %1349 = vrot.lane.b32.xlu0 %v2023_v14, %s2686_s19  ;;  %v2120_v17 = vpop.f32.mrb[19].mxu0  ;;  %s2019_s19 = sshll.u32 %s2660_s21, 7  ;;  %s2688_s21 = smov [#allocation19]  }
 0x571   : > { %v2016_v17 = vld [vmem:[%s3381_s15] ss:$0 sm:$0xff]  ;;  %s3252_s10 = scalar_lea.hbm %s3383_s8, %s2019_s19 }
 0x575   : > { %v1466_v18 = vpop.f32.mrb[20].mxu0 }
 0x576   : > { %v2024_v19 = vpack.c.bf16 %v1466_v18, %v1466_v18  ;;  %v2131_v20 = vpop.f32.mrb[21].mxu0 }
 0x577   : > { %v1469_v21 = vpop.f32.mrb[22].mxu0 }
 0x578   : > { %1476 = vrot.lane.b32.xlu1 %v2024_v19, %s2687_s23  ;;  %v2132_v22 = vpop.f32.mrb[23].mxu0  ;;  %s3380_s23 = sld [smem:[#allocation40_spill]]  ;;  %v2017_v19 = vld [vmem:[%s3382_s18] ss:$0 sm:$0xff] }
 0x5d9   : > { %v1223_v23 = vpop.permute.xlu1 %1222 }
 0x5da   : > { %1226 = vst.msk [vmem:[#allocation4] sm:$0xf] %vm1225_vm6, %v1223_v23 }
 0x5e2   : > { %v1350_v24 = vpop.permute.xlu0 %1349 }
 0x5e3   : > { %1353 = vst.msk [vmem:[#allocation4] sm:$0xf] %vm1352_vm7, %v1350_v24 }
 0x5ea   : > { %v1477_v25 = vpop.permute.xlu1 %1476 }
 0x5eb   : > { %1480 = vst.msk [vmem:[#allocation4] sm:$0xf] %vm1479_vm8, %v1477_v25 }
 0x5f2   : > { %v1481_v26 = vld [vmem:[#allocation4] sm:$0xf] }
 0x5f3   : > { %2138 = vmatmul.mubr.msk.bf16.vlgmr.msra.gmra.mrb[20].mxu1 %vm796_vm1, %v1481_v26 }
 0x5f4   : > { %2157 = vmatprep.mubr.msk.bf16.mxu1 %vm2681_vm0, %v2680_v0 }
 0x6c6   : > { %v1542_v28 = vpop.f32.mrb[20].mxu1 }
 0x6c7   : > { %v1543_v29 = vadd.f32 %v2000_v27, %v1542_v28  ;;  %v2139_v30 = vpop.f32.mrb[21].mxu1 }
 0x6c8   : > { %v1545_v31 = vpop.f32.mrb[22].mxu1 }
 0x6c9   : > { %v2140_v32 = vpop.f32.mrb[23].mxu1  ;;  %v1548_v33 = vadd.f32 %v1543_v29, %v3112_v6  ;;  %v2320_v6 = vld [vmem:[%s3378_s4] sm:$0xff]  }
 0x6ca   : > { %2150 = vmatpush3.bf16.msra.mxu1 %v2320_v6 }
 0x6cb   : > { %v1551_v34 = vsel %vm796_vm1, %v1548_v33, 0.0  ;;  %2151 = vmatprep.subr.bf16.mxu1 %v2680_v0 }
 0x6cc   : > { %1552 = vadd.xlane.f32.xlu0 %v1551_v34 }
 0x6ce   : > { %2152 = vmatpush3.bf16.msra.mxu1 %v2321_v42 }
 0x6cf   : > { %2153 = vmatprep.subr.bf16.mxu1 %v2680_v0 }
 0x6d2   : > { %2154 = vmatpush3.bf16.msra.mxu1 %v2322_v53 }
 0x6d3   : > { %2155 = vmatprep.subr.bf16.mxu1 %v2680_v0  ;;  %v2010_v0 = vld [vmem:[%s3380_s23] ss:$0 sm:$0xff]  ;;  %s754_s23 = scalar_lea.vmem [#allocation19], %s1967_s13  ;;  %s2574_s13 = sshll.u32 %s2688_s21, 4  ;;  %s2575_s13 = int_to_ptr.vmem [resolvable:$false] %s2574_s13 }
 0x6d4   : > { %s1777_s4 = sshll.u32 %s754_s23, 4  ;;  %s2576_s15 = scalar_lea.vmem %s2575_s13, 256  ;;  %s3254_s4 = int_to_ptr.vmem [resolvable:$true] %s1777_s4 }
 0x6d5   : > { %s2570_s3 = scalar_lea.vmem %s3254_s4, 128  ;;  %p2577_p4 = scmp.lt.s32.totalorder %s3254_s4, %s2575_s13 }
 0x6d6   : > { %2156 = vmatpush3.bf16.msra.mxu1 %v2323_v54  ;;  %p2571_p5 = scmp.ne.s32.totalorder %s3254_s4, %s2570_s3  ;;  %p2578_p9 = scmp.lt.s32.totalorder %s2576_s15, %s2570_s3 }
 0x6d8   : > { %p2572_p1 = pnand %p2571_p5, %p3384_p10  ;;  %p2579_p8 = por %p2578_p9, %p2577_p4 }
 0x6da   : > { %p2573_p2 = pneg %p2572_p1 }
 0x6dc   : > { %p2580_p3 = pnand %p2579_p8, %p2573_p2 }
 0x759   : > { %v1553_v35 = vpop.xlane.xlu0 %1552 }
 0x75a   : > { %v1555_v36 = vmul.f32 0.03125, %v1553_v35 }
 0x75c   : > { %v1556_v37 = vsub.f32 %v1548_v33, %v1555_v36 }
 0x75e   : > { %v1557_v38 = vmul.f32 %v1556_v37, %v1556_v37 }
 0x760   : > { %v1558_v39 = vsel %vm796_vm1, %v1557_v38, 0.0 }
 0x761   : > { %1559 = vadd.xlane.f32.xlu1 %v1558_v39 }
 0x7ee   : > { %v1560_v43 = vpop.xlane.xlu1 %1559 }
 0x7ef   : > { %v1561_v44 = vmul.f32 0.03125, %v1560_v43 }
 0x7f1   : > { %v1562_v45 = vadd.f32 1e-06, %v1561_v44 }
 0x7f3   : > { %2340 = vrsqrt.f32 %v1562_v45 }
 0x7fd   : > { %v2341_v46 = vpop.eup %2340 }
 0x7fe   : > { %v1564_v48 = vmul.f32 %v2341_v46, %v1556_v37 }
 0x800   : > { %v1571_v50 = vmul.f32 %v2004_v47, %v1564_v48 }
 0x802   : > { %v1578_v51 = vadd.f32 %v2005_v49, %v1571_v50 }
 0x804   : > { %v1579_v52 = vpack.c.bf16 %v1578_v51, %v1578_v51 }
 0x806   : > { %2146 = vmatmul.mubr.msk.bf16.vlgmr.msra.gmra.mrb[24].mxu0 %vm796_vm1, %v1579_v52 }
 0x8d9   : > { %v1640_v56 = vpop.f32.mrb[24].mxu0 }
 0x8da   : > { %v1641_v57 = vadd.f32 %v2006_v55, %v1640_v56  ;;  %v2147_v58 = vpop.f32.mrb[25].mxu0 }
 0x8db   : > { %v1643_v59 = vpop.f32.mrb[26].mxu0 }
 0x8dc   : > { %v1646_v60 = vmax.f32 %v1641_v57, 0.0  ;;  %v2148_v61 = vpop.f32.mrb[27].mxu0 }
 0x8de   : > { %v1647_v62 = vpack.c.bf16 %v1646_v60, %v1646_v60 }
 0x8e0   : > { %2158 = vmatmul.mubr.msk.bf16.vlgmr.msra.gmra.mrb[24].mxu1 %vm1687_vm9, %v1647_v62 }
 0x9b3   : > { %v1725_v63 = vpop.f32.mrb[24].mxu1 }
 0x9b4   : > { %v1726_v1 = vadd.f32 %v2010_v0, %v1725_v63  ;;  %v2159_v2 = vpop.f32.mrb[25].mxu1 }
 0x9b5   : > { %v1728_v3 = vpop.f32.mrb[26].mxu1 }
 0x9b6   : > { %v2160_v4 = vpop.f32.mrb[27].mxu1  ;;  %v1731_v5 = vadd.f32 %v1726_v1, %v1578_v51 }
 0x9b8   : > { %v1734_v7 = vsel %vm796_vm1, %v1731_v5, 0.0 }
 0x9b9   : > { %1735 = vadd.xlane.f32.xlu0 %v1734_v7 }
 0xa46   : > { %v1736_v8 = vpop.xlane.xlu0 %1735 }
 0xa47   : > { %v1737_v9 = vmul.f32 0.03125, %v1736_v8 }
 0xa49   : > { %v1738_v10 = vsub.f32 %v1731_v5, %v1737_v9 }
 0xa4b   : > { %v1739_v11 = vmul.f32 %v1738_v10, %v1738_v10 }
 0xa4d   : > { %v1740_v12 = vsel %vm796_vm1, %v1739_v11, 0.0 }
 0xa4e   : > { %1741 = vadd.xlane.f32.xlu0 %v1740_v12 }
 0xadb   : > { %v1742_v13 = vpop.xlane.xlu0 %1741 }
 0xadc   : > { %v1743_v14 = vmul.f32 0.03125, %v1742_v13 }
 0xade   : > { %v1744_v15 = vadd.f32 1e-06, %v1743_v14 }
 0xae0   : > { %2342 = vrsqrt.f32 %v1744_v15 }
 0xaea   : > { %v2343_v16 = vpop.eup %2342 }
 0xaeb   : > { %v1746_v18 = vmul.f32 %v2343_v16, %v1738_v10 }
 0xaed   : > { %v1753_v20 = vmul.f32 %v2016_v17, %v1746_v18 }
 0xaef   : > { %v1760_v21 = vadd.f32 %v2017_v19, %v1753_v20 }
 0xaf1   : > { %1761 = vst.msk [vmem:[%s754_s23] sm:$0xff] %vm796_vm1, %v1760_v21 }
 0xaf2   : > { %2583 = shalt.err (!%p2580_p3)
}
 0xaf3   : > { %s2584_s6 = scalar_lea.hbm %s3252_s10, 128  ;;  %s2588_s5 = scalar_lea.hbm %s3383_s8, 256 }
 0xaf4   : > { %p2585_p12 = scmp.ne.s32.totalorder %s3252_s10, %s2584_s6  ;;  %p2589_p11 = scmp.lt.u32.totalorder %s3252_s10, %s3383_s8 }
 0xaf5   : > { %p2590_p7 = scmp.lt.u32.totalorder %s2588_s5, %s2584_s6  ;;  %p2592_p5 = scmp.lt.u32.totalorder %s2584_s6, %s3252_s10 }
 0xaf6   : > { %p2586_p13 = pnand %p2585_p12, %p3384_p10 }
 0xaf7   : > { %p2591_p6 = por %p2590_p7, %p2589_p11 }
 0xaf8   : > { %p2587_p0 = pneg %p2586_p13 }
 0xaf9   : > { %p2593_p1 = por %p2592_p5, %p2591_p6 }
 0xafb   : > { %p2594_p2 = pnand %p2593_p1, %p2587_p0 }
 0xafd   : > { %2597 = shalt.err (!%p2594_p2)
}
 0xafe   : > { %2191 = dma.vmem_to_hbm [thread:$0]  (%p3384_p10), %s3254_s4, 128, %s3252_s10, %s1763_s14  }
 0xaff PF: > { %s1789_s19 = sand.u32 1, %s2648_s0   ;;  %p3385_p4 = scmp.ne.s32.totalorder %s3366_s16, 0 }
 0xb00   : > { %p3386_p9 = scmp.ge.s32.totalorder %s2668_s22, 2  ;;  %s1790_s23 = scalar_lea.sflag [#allocation7], %s1789_s19 }
 0xb02   : > { %p2220_p8 = pnand %p3386_p9, %p3385_p4 }
 0xb04   : > { %2643 = dma.done.wait (!%p2220_p8), %s1790_s23, 128  }
 0xb05   : > { %2645 = vsyncadd (!%p2220_p8), %s1790_s23, 4294967168  ;;  %s39_s22 = sadd.s32 1, %s2668_s22   ;;  %s3387_s0 = smov %s2652_s30 }
 0xb06   : > { %p36_p3 = scmp.ge.s32.totalorder %s39_s22, 4   ;;  %s3388_s30 = smov %s2656_s20 }
 0xb07   : > { %s3389_s20 = smov %s3020_s29  ;;  %s3390_s21 = smov %s2664_s1 }
 0xb08   : > { %s3391_s1 = smov %s3393_s17  ;;  %38 = sbr.rel (!%p36_p3) target bundleno = 29 (0x1d), region = 179 }
 0xb0f   :  { %1795 = vsyncpa [#allocation6], 1 }
 0xb10   :  { %1797 = vsyncpa [#allocation6 + $0x1], 1 }
 0xb11   :  { %1798 = vsyncpa [#allocation9], 1 }
 0xb12   :  { %1799 = vsyncpa [#allocation12], 1 }
 0xb13   :  { %1800 = vsyncpa [#allocation15], 1 }
 0xb14   :  { %1801 = vsyncpa [#allocation18], 1 }
 0xb15   :  { %1802 = vsyncpa [#allocation7], 1 }
 0xb16   :  { %1804 = vsyncpa [#allocation7 + $0x1], 1 }

// kernel: tpu_custom_call.1
= control target key start
LH: loop header
LB: loop body
LE: loop exit
PB: predicated region body
PF: predicated region fallthrough
CT: control target
= control target key end

     0   :  { %s3302_s0 = inlined_call_operand.vmem [shape: f32[2,8,32], index: 0, kind: input, shape index: {}]   ;;  %s3303_s1 = inlined_call_operand.vmem [shape: f32[2,8,32], index: 1, kind: input, shape index: {}]   ;;  %s3304_s2 = inlined_call_operand.hbm [shape: f32[2,1,8], index: 2, kind: input, shape index: {}]   ;;  %s3305_s3 = inlined_call_operand.vmem [shape: bf16[32,32], index: 3, kind: input, shape index: {}]   ;;  %s3306_s4 = inlined_call_operand.vmem [shape: f32[1,32], index: 4, kind: input, shape index: {}]   ;;  %s3307_s5 = inlined_call_operand.hbm [shape: bf16[32,32], index: 5, kind: input, shape index: {}]   ;;  %s3308_s6 = inlined_call_operand.hbm [shape: f32[1,32], index: 6, kind: input, shape index: {}]   ;;  %s3309_s7 = inlined_call_operand.hbm [shape: bf16[32,32], index: 7, kind: input, shape index: {}]   ;;  %s3310_s8 = inlined_call_operand.hbm [shape: f32[1,32], index: 8, kind: input, shape index: {}]   ;;  %s3311_s9 = inlined_call_operand.vmem [shape: bf16[32,32], index: 9, kind: input, shape index: {}]   ;;  %s3312_s10 = inlined_call_operand.hbm [shape: f32[1,32], index: 10, kind: input, shape index: {}]   ;;  %s3313_s11 = inlined_call_operand.hbm [shape: f32[1,32], index: 11, kind: input, shape index: {}]   ;;  %s3314_s12 = inlined_call_operand.hbm [shape: f32[1,32], index: 12, kind: input, shape index: {}]   ;;  %s3315_s13 = inlined_call_operand.vmem [shape: bf16[32,64], index: 13, kind: input, shape index: {}]   ;;  %s3316_s14 = inlined_call_operand.vmem [shape: f32[1,64], index: 14, kind: input, shape index: {}]   ;;  %s3317_s15 = inlined_call_operand.vmem [shape: bf16[64,32], index: 15, kind: input, shape index: {}]   ;;  %s3318_s16 = inlined_call_operand.vmem [shape: f32[1,32], index: 16, kind: input, shape index: {}]   ;;  %s3319_s17 = inlined_call_operand.vmem [shape: f32[1,32], index: 17, kind: input, shape index: {}]   ;;  %s3320_s18 = inlined_call_operand.vmem [shape: f32[1,32], index: 18, kind: input, shape index: {}]   ;;  %s3321_s19 = inlined_call_operand.hbm [shape: f32[2,8,32], index: 19, kind: output, shape index: {}]  }
   0x1   :  { %3334 = sst [smem:[#allocation26_spill]] %s3302_s0 }
   0x2   :  { %3335 = sst [smem:[#allocation27_spill]] %s3303_s1 }
   0x3   :  { %3336 = sst [smem:[#allocation28_spill]] %s3304_s2 }
   0x4   :  { %3337 = sst [smem:[#allocation29_spill]] %s3305_s3 }
   0x5   :  { %3338 = sst [smem:[#allocation30_spill]] %s3306_s4 }
   0x6   :  { %3339 = sst [smem:[#allocation31_spill]] %s3307_s5 }
   0x7   :  { %3340 = sst [smem:[#allocation32_spill]] %s3308_s6 }
   0x8   :  { %3341 = sst [smem:[#allocation33_spill]] %s3309_s7 }
   0x9   :  { %3342 = sst [smem:[#allocation34_spill]] %s3310_s8 }
   0xa   :  { %3343 = sst [smem:[#allocation35_spill]] %s3311_s9 }
   0xb   :  { %3344 = sst [smem:[#allocation36_spill]] %s3312_s10 }
   0xc   :  { %3345 = sst [smem:[#allocation37_spill]] %s3315_s13 }
   0xd   :  { %3346 = sst [smem:[#allocation38_spill]] %s3316_s14 }
   0xe   :  { %3347 = sst [smem:[#allocation39_spill]] %s3317_s15 }
   0xf   :  { %3348 = sst [smem:[#allocation40_spill]] %s3318_s16 }
  0x10   :  { %3349 = sst [smem:[#allocation41_spill]] %s3319_s17 }
  0x11   :  { %3350 = sst [smem:[#allocation42_spill]] %s3320_s18 }
  0x12   :  { %3351 = sst [smem:[#allocation43_spill]] %s3321_s19 }
  0x13   :  { %24 = vsyncpa [#allocation6], 0 }
  0x14   :  { %26 = vsyncpa [#allocation6 + $0x1], 0 }
  0x15   :  { %27 = vsyncpa [#allocation9], 0 }
  0x16   :  { %28 = vsyncpa [#allocation12], 0 }
  0x17   :  { %29 = vsyncpa [#allocation15], 0 }
  0x18   :  { %30 = vsyncpa [#allocation18], 0 }
  0x19   :  { %31 = vsyncpa [#allocation7], 0 }
  0x1a   :  { %33 = vsyncpa [#allocation7 + $0x1], 0  ;;  %s2789_s0 = smov 0   ;;  %s2791_s30 = smov 0  }
  0x1b   :  { %s2793_s20 = smov 0   ;;  %s2795_s21 = smov 0  }
  0x1c   :  { %s2797_s1 = smov 0   ;;  %s2799_s22 = smov 0  }
  0x1d LB: > { %s3324_s2 = sadd.s32 4294967295, %s2668_s22   ;;  %p1949_p0 = scmp.ge.s32.totalorder %s2668_s22, 1  ;;  %s2668_s22 = sphi %s2799_s22, %s39_s22   ;;  %s2664_s1 = sphi %s2797_s1, %s3391_s1   ;;  %s2660_s21 = sphi %s2795_s21, %s3390_s21   ;;  %s2656_s20 = sphi %s2793_s20, %s3389_s20   ;;  %s2652_s30 = sphi %s2791_s30, %s3388_s30   ;;  %s2648_s0 = sphi %s2789_s0, %s3387_s0  }
  0x1e   : > { %p2823_p1 = scmp.eq.s32.totalorder %s3324_s2, 0  ;;  %p500_p2 = scmp.lt.s32.totalorder %s2668_s22, 3 }
  0x1f   : > { %s2670_s25 = smov [#allocation8]   ;;  %s2671_s27 = smov [#allocation11]  }
  0x20   : > { %s3352_s23 = scalar_select %p2823_p1, 1, 0 }
  0x21   : > { %p2828_p3 = pnand %p1949_p0, %p500_p2  ;;  %s518_s3 = sshll.u32 %s2670_s25, 4  ;;  %s2832_s3 = int_to_ptr.vmem [resolvable:$true] %s518_s3 }
  0x22   : > { %s542_s28 = sshll.u32 %s2671_s27, 4  ;;  %s2672_s29 = smov [#allocation14]   ;;  %s2843_s28 = int_to_ptr.vmem [resolvable:$true] %s542_s28 }
  0x23   : > { %s3353_s24 = scalar_select %p2828_p3, 1, 0 }
  0x24   : > { %p2193_p4 = pneg %p2828_p3  ;;  %s2845_s2 = sshll.u32 %s2672_s29, 4  ;;  %s571_s2 = int_to_ptr.vmem [resolvable:$true] %s2845_s2 }
  0x25   : > { %s3355_s5 = sld [smem:[#allocation31_spill]] }
  0x26   : > { %p2839_p6 = pnand %p2193_p4, %p2823_p1 }
  0x28   : > { %p2855_p8 = pneg %p2839_p6 }
  0x2b   : > { %s2344_s18 = scalar_lea.hbm %s3355_s5, 256 }
  0x2c   : > { %p2345_p7 = scmp.ne.s32.totalorder %s3355_s5, %s2344_s18  ;;  %p2351_p11 = scmp.lt.u32.totalorder %s2344_s18, %s3355_s5 }
  0x2e   : > { %p2347_p9 = pnand %p2855_p8, %p2345_p7 }
  0x30   : > { %p2348_p10 = pneg %p2347_p9 }
  0x32   : > { %p2353_p12 = pnand %p2351_p11, %p2348_p10 }
  0x34   : > { %2356 = shalt.err (!%p2353_p12)
}
  0x35   : > { %s2357_s16 = scalar_lea.vmem %s2832_s3, 256  ;;  %p2365_p4 = scmp.lt.s32.totalorder %s2832_s3, %s2832_s3 }
  0x36   : > { %p2358_p13 = scmp.ne.s32.totalorder %s2832_s3, %s2357_s16  ;;  %p2366_p5 = scmp.lt.s32.totalorder %s2357_s16, %s2357_s16 }
  0x38   : > { %p2360_p0 = pnand %p2358_p13, %p2855_p8  ;;  %p2367_p7 = por %p2366_p5, %p2365_p4 }
  0x3a   : > { %p2361_p2 = pneg %p2360_p0 }
  0x3c   : > { %p2368_p9 = pnand %p2367_p7, %p2361_p2 }
  0x3e   : > { %2371 = shalt.err (!%p2368_p9)
}
  0x3f   : > { %s2673_s17 = smov 64   ;;  %s2674_s18 = smov 4  }
  0x40   : > { %2196 = dma.hbm_to_vmem [thread:$0]  (!%p2839_p6), %s3355_s5, 256, %s2832_s3, [#allocation9], %s2673_s17, %s2673_s17, %s2674_s18  }
  0x41   : > { %s3357_s7 = sld [smem:[#allocation33_spill]] }
  0x47   : > { %s2372_s15 = scalar_lea.hbm %s3357_s7, 256 }
  0x48   : > { %p2373_p5 = scmp.ne.s32.totalorder %s3357_s7, %s2372_s15  ;;  %p2379_p12 = scmp.lt.u32.totalorder %s2372_s15, %s3357_s7 }
  0x4a   : > { %p2375_p10 = pnand %p2373_p5, %p2855_p8 }
  0x4c   : > { %p2376_p11 = pneg %p2375_p10 }
  0x4e   : > { %p2381_p13 = pnand %p2379_p12, %p2376_p11 }
  0x50   : > { %2384 = shalt.err (!%p2381_p13)
}
  0x51   : > { %s2385_s3 = scalar_lea.vmem %s2843_s28, 256  ;;  %p2393_p7 = scmp.lt.s32.totalorder %s2843_s28, %s2843_s28 }
  0x52   : > { %p2386_p0 = scmp.ne.s32.totalorder %s2843_s28, %s2385_s3  ;;  %p2394_p9 = scmp.lt.s32.totalorder %s2385_s3, %s2385_s3 }
  0x54   : > { %p2388_p2 = pnand %p2386_p0, %p2855_p8  ;;  %p2395_p5 = por %p2394_p9, %p2393_p7 }
  0x56   : > { %p2389_p4 = pneg %p2388_p2 }
  0x58   : > { %p2396_p10 = pnand %p2395_p5, %p2389_p4 }
  0x5a   : > { %2399 = shalt.err (!%p2396_p10)
}
  0x5b   : > { %2202 = dma.hbm_to_vmem [thread:$0]  (!%p2839_p6), %s3357_s7, 256, %s2843_s28, [#allocation12], %s2673_s17, %s2673_s17, %s2674_s18  }
  0x5c   : > { %s3358_s10 = sld [smem:[#allocation36_spill]] }
  0x62   : > { %s2400_s19 = scalar_lea.hbm %s3358_s10, 16 }
  0x63   : > { %p2401_p11 = scmp.ne.s32.totalorder %s3358_s10, %s2400_s19  ;;  %p2407_p0 = scmp.lt.u32.totalorder %s2400_s19, %s3358_s10 }
  0x65   : > { %p2403_p12 = pnand %p2401_p11, %p2855_p8 }
  0x67   : > { %p2404_p13 = pneg %p2403_p12 }
  0x69   : > { %p2409_p2 = pnand %p2407_p0, %p2404_p13 }
  0x6b   : > { %2412 = shalt.err (!%p2409_p2)
}
  0x6c   : > { %s2413_s3 = scalar_lea.vmem %s571_s2, 16  ;;  %s2420_s28 = scalar_lea.vmem %s571_s2, 32 }
  0x6d   : > { %p2414_p4 = scmp.ne.s32.totalorder %s571_s2, %s2413_s3  ;;  %p2421_p5 = scmp.lt.s32.totalorder %s571_s2, %s571_s2 }
  0x6e   : > { %p2422_p10 = scmp.lt.s32.totalorder %s2420_s28, %s2413_s3 }
  0x6f   : > { %p2416_p7 = pnand %p2414_p4, %p2855_p8 }
  0x70   : > { %p2423_p3 = por %p2422_p10, %p2421_p5 }
  0x71   : > { %p2417_p9 = pneg %p2416_p7 }
  0x73   : > { %p2424_p1 = pnand %p2423_p3, %p2417_p9 }
  0x75   : > { %2427 = shalt.err (!%p2424_p1)
}
  0x76   : > { %2208 = dma.hbm_to_vmem [thread:$0]  (!%p2839_p6), %s3358_s10, 16, %s571_s2, [#allocation15]  }
  0x77   : > { %s2675_s4 = smov [#allocation10]   ;;  %s2676_s13 = smov [#allocation13]  }
  0x78   : > { %s532_s9 = sshll.u32 %s2675_s4, 4  ;;  %s556_s15 = sshll.u32 %s2676_s13, 4  ;;  %s533_s9 = int_to_ptr.vmem [resolvable:$true] %s532_s9  ;;  %s557_s15 = int_to_ptr.vmem [resolvable:$true] %s556_s15 }
  0x79   : > { %s3359_s6 = sld [smem:[#allocation32_spill]] }
  0x7f   : > { %s2428_s27 = scalar_lea.hbm %s3359_s6, 16 }
  0x80   : > { %p2429_p1 = scmp.ne.s32.totalorder %s3359_s6, %s2428_s27  ;;  %p2435_p12 = scmp.lt.u32.totalorder %s2428_s27, %s3359_s6 }
  0x82   : > { %p2431_p3 = pnand %p2429_p1, %p2855_p8 }
  0x84   : > { %p2432_p11 = pneg %p2431_p3 }
  0x86   : > { %p2437_p13 = pnand %p2435_p12, %p2432_p11 }
  0x88   : > { %2440 = shalt.err (!%p2437_p13)
}
  0x89   : > { %s2441_s2 = scalar_lea.vmem %s533_s9, 16  ;;  %s2448_s17 = scalar_lea.vmem %s533_s9, 32 }
  0x8a   : > { %p2442_p0 = scmp.ne.s32.totalorder %s533_s9, %s2441_s2  ;;  %p2449_p7 = scmp.lt.s32.totalorder %s533_s9, %s533_s9 }
  0x8b   : > { %p2450_p9 = scmp.lt.s32.totalorder %s2448_s17, %s2441_s2 }
  0x8c   : > { %p2444_p2 = pnand %p2442_p0, %p2855_p8 }
  0x8d   : > { %p2451_p5 = por %p2450_p9, %p2449_p7 }
  0x8e   : > { %p2445_p4 = pneg %p2444_p2 }
  0x90   : > { %p2452_p10 = pnand %p2451_p5, %p2445_p4 }
  0x92   : > { %2455 = shalt.err (!%p2452_p10)
}
  0x93   : > { %2199 = dma.hbm_to_vmem [thread:$0]  (!%p2839_p6), %s3359_s6, 16, %s533_s9, [#allocation9]  }
  0x94   : > { %s3360_s8 = sld [smem:[#allocation34_spill]] }
  0x9a   : > { %s2456_s25 = scalar_lea.hbm %s3360_s8, 16 }
  0x9b   : > { %p2457_p1 = scmp.ne.s32.totalorder %s3360_s8, %s2456_s25  ;;  %p2463_p12 = scmp.lt.u32.totalorder %s2456_s25, %s3360_s8 }
  0x9d   : > { %p2459_p3 = pnand %p2457_p1, %p2855_p8 }
  0x9f   : > { %p2460_p11 = pneg %p2459_p3 }
  0xa1   : > { %p2465_p13 = pnand %p2463_p12, %p2460_p11 }
  0xa3   : > { %2468 = shalt.err (!%p2465_p13)
}
  0xa4   : > { %s2469_s28 = scalar_lea.vmem %s557_s15, 16  ;;  %s2476_s9 = scalar_lea.vmem %s557_s15, 32 }
  0xa5   : > { %p2470_p0 = scmp.ne.s32.totalorder %s557_s15, %s2469_s28  ;;  %p2477_p7 = scmp.lt.s32.totalorder %s557_s15, %s557_s15 }
  0xa6   : > { %p2478_p9 = scmp.lt.s32.totalorder %s2476_s9, %s2469_s28 }
  0xa7   : > { %p2472_p2 = pnand %p2470_p0, %p2855_p8 }
  0xa8   : > { %p2479_p5 = por %p2478_p9, %p2477_p7 }
  0xa9   : > { %p2473_p4 = pneg %p2472_p2 }
  0xab   : > { %p2480_p10 = pnand %p2479_p5, %p2473_p4 }
  0xad   : > { %2483 = shalt.err (!%p2480_p10)
}
  0xae   : > { %2205 = dma.hbm_to_vmem [thread:$0]  (!%p2839_p6), %s3360_s8, 16, %s557_s15, [#allocation12]  }
  0xaf   : > { %s2677_s18 = smov [#allocation16]   ;;  %s2678_s13 = smov [#allocation17]  }
  0xb0   : > { %s581_s4 = sshll.u32 %s2677_s18, 4  ;;  %s592_s19 = sshll.u32 %s2678_s13, 4  ;;  %s582_s4 = int_to_ptr.vmem [resolvable:$true] %s581_s4  ;;  %s593_s19 = int_to_ptr.vmem [resolvable:$true] %s592_s19 }
  0xb1   : > { %s2484_s29 = scalar_lea.hbm %s3313_s11, 16 }
  0xb2   : > { %p2485_p1 = scmp.ne.s32.totalorder %s3313_s11, %s2484_s29  ;;  %p2491_p12 = scmp.lt.u32.totalorder %s2484_s29, %s3313_s11 }
  0xb4   : > { %p2487_p3 = pnand %p2485_p1, %p2855_p8 }
  0xb6   : > { %p2488_p11 = pneg %p2487_p3 }
  0xb8   : > { %p2493_p13 = pnand %p2491_p12, %p2488_p11 }
  0xba   : > { %2496 = shalt.err (!%p2493_p13)
}
  0xbb   : > { %s2497_s15 = scalar_lea.vmem %s582_s4, 16  ;;  %s2504_s2 = scalar_lea.vmem %s582_s4, 32 }
  0xbc   : > { %p2498_p0 = scmp.ne.s32.totalorder %s582_s4, %s2497_s15  ;;  %p2505_p7 = scmp.lt.s32.totalorder %s582_s4, %s582_s4 }
  0xbd   : > { %p2506_p9 = scmp.lt.s32.totalorder %s2504_s2, %s2497_s15 }
  0xbe   : > { %p2500_p2 = pnand %p2498_p0, %p2855_p8 }
  0xbf   : > { %p2507_p5 = por %p2506_p9, %p2505_p7 }
  0xc0   : > { %p2501_p4 = pneg %p2500_p2 }
  0xc2   : > { %p2508_p10 = pnand %p2507_p5, %p2501_p4 }
  0xc4   : > { %2511 = shalt.err (!%p2508_p10)
}
  0xc5   : > { %2211 = dma.hbm_to_vmem [thread:$0]  (!%p2839_p6), %s3313_s11, 16, %s582_s4, [#allocation15]  }
  0xc6   : > { %s2512_s27 = scalar_lea.hbm %s3314_s12, 16 }
  0xc7   : > { %p2513_p1 = scmp.ne.s32.totalorder %s3314_s12, %s2512_s27  ;;  %p2519_p12 = scmp.lt.u32.totalorder %s2512_s27, %s3314_s12 }
  0xc9   : > { %p2515_p3 = pnand %p2513_p1, %p2855_p8 }
  0xcb   : > { %p2516_p11 = pneg %p2515_p3 }
  0xcd   : > { %p2521_p13 = pnand %p2519_p12, %p2516_p11 }
  0xcf   : > { %2524 = shalt.err (!%p2521_p13)
}
  0xd0   : > { %s2525_s9 = scalar_lea.vmem %s593_s19, 16  ;;  %s2532_s4 = scalar_lea.vmem %s593_s19, 32 }
  0xd1   : > { %p2526_p0 = scmp.ne.s32.totalorder %s593_s19, %s2525_s9  ;;  %p2533_p7 = scmp.lt.s32.totalorder %s593_s19, %s593_s19 }
  0xd2   : > { %p2534_p9 = scmp.lt.s32.totalorder %s2532_s4, %s2525_s9 }
  0xd3   : > { %p2528_p2 = pnand %p2526_p0, %p2855_p8 }
  0xd4   : > { %p2535_p5 = por %p2534_p9, %p2533_p7 }
  0xd5   : > { %p2529_p4 = pneg %p2528_p2 }
  0xd7   : > { %p2536_p10 = pnand %p2535_p5, %p2529_p4 }
  0xd9   : > { %2539 = shalt.err (!%p2536_p10)
}
  0xda   : > { %2214 = dma.hbm_to_vmem [thread:$0]  (!%p2839_p6), %s3314_s12, 16, %s593_s19, [#allocation18]  }
  0xdb   : > { %s1948_s14 = sadd.s32 4294967294, %s2668_s22   ;;  %s51_s17 = sadd.s32 1, %s2664_s1 }
  0xdc   : > { %s112_s26 = sadd.s32 1, %s2656_s20  ;;  %p53_p8 = scmp.ge.s32.totalorder %s51_s17, 2 }
  0xdd   : > { %p119_p1 = scmp.ne.s32.totalorder %s2656_s20, %s2652_s30  ;;  %p120_p3 = scmp.eq.s32.totalorder %s2668_s22, 0 }
  0xde   : > { %p125_p11 = scmp.ne.s32.totalorder %s2652_s30, %s2648_s0  ;;  %s3393_s17 = smov (%p53_p8, %s51_s17), 0 }
  0xdf   : > { %p3000_p12 = por %p120_p3, %p119_p1  ;;  %p3362_p13 = scmp.ne.s32.totalorder %s3352_s23, 0 }
  0xe0   : > { %s109_s13 = ssub.s32 %s2664_s1, %s3393_s17  ;;  %s3364_s25 = sadd.s32 4294967295, %s2668_s22  }
  0xe1   : > { %p3006_p6 = por %p3362_p13, %p125_p11  ;;  %p487_p0 = scmp.eq.s32.totalorder %s3364_s25, 1 }
  0xe2   : > { %p110_p2 = scmp.eq.s32.totalorder %s109_s13, 0  ;;  %p493_p4 = scmp.eq.s32.totalorder %s1948_s14, 1 }
  0xe3   : > { %p3014_p7 = por %p487_p0, %p119_p1  ;;  %p2230_p9 = scmp.lt.s32.totalorder %s2668_s22, 2 }
  0xe4   : > { %s3020_s29 = scalar_select %p110_p2, %s2656_s20, %s112_s26  }
  0xe5   : > { %s3365_s27 = scalar_select %p3014_p7, 1, 0 }
  0xe6   : > { %p3022_p5 = por %p493_p4, %p125_p11  ;;  %s638_s3 = sand.u32 1, %s2656_s20  }
  0xe7   : > { %s1958_s28 = sshll.u32 %s2664_s1, 4  ;;  %s641_s9 = scalar_lea.vmem [#allocation5], %s638_s3 }
  0xe8   : > { %s3366_s16 = scalar_select %p3022_p5, 1, 0 }
  0xe9   : > { %s648_s4 = sshll.u32 %s641_s9, 4  ;;  %s3367_s25 = sld [smem:[#allocation28_spill]]  ;;  %s3033_s4 = int_to_ptr.vmem [resolvable:$true] %s648_s4 }
  0xea   : > { %p3037_p10 = pnand %p2230_p9, %p3000_p12  ;;  %s639_s26 = scalar_lea.sflag [#allocation6], %s638_s3 }
  0xec   : > { %p2542_p1 = pneg %p3037_p10 }
  0xef   : > { %s3031_s13 = scalar_lea.hbm %s3367_s25, %s1958_s28  ;;  %s2545_s2 = scalar_lea.hbm %s3367_s25, 32 }
  0xf0   : > { %s2540_s9 = scalar_lea.hbm %s3031_s13, 16  ;;  %p2546_p12 = scmp.lt.u32.totalorder %s3031_s13, %s3367_s25 }
  0xf1   : > { %p2541_p8 = scmp.ne.s32.totalorder %s3031_s13, %s2540_s9  ;;  %p2547_p13 = scmp.lt.u32.totalorder %s2545_s2, %s2540_s9 }
  0xf2   : > { %p2549_p2 = scmp.lt.u32.totalorder %s2540_s9, %s3031_s13 }
  0xf3   : > { %p2543_p3 = pnand %p2542_p1, %p2541_p8  ;;  %p2548_p0 = por %p2547_p13, %p2546_p12 }
  0xf5   : > { %p2544_p11 = pneg %p2543_p3  ;;  %p2550_p4 = por %p2549_p2, %p2548_p0 }
  0xf7   : > { %p2551_p9 = pnand %p2550_p4, %p2544_p11 }
  0xf9   : > { %2554 = shalt.err (!%p2551_p9)
}
  0xfa   : > { %s2555_s3 = scalar_lea.vmem %s3033_s4, 16  ;;  %s2679_s28 = smov [#allocation5]  }
  0xfb   : > { %p2556_p8 = scmp.ne.s32.totalorder %s3033_s4, %s2555_s3  ;;  %s2560_s15 = sshll.u32 %s2679_s28, 4  ;;  %s2561_s15 = int_to_ptr.vmem [resolvable:$false] %s2560_s15 }
  0xfc   : > { %s2562_s5 = scalar_lea.vmem %s2561_s15, 32  ;;  %p2563_p7 = scmp.lt.s32.totalorder %s3033_s4, %s2561_s15 }
  0xfd   : > { %p2558_p3 = pnand %p2556_p8, %p2542_p1  ;;  %p2564_p12 = scmp.lt.s32.totalorder %s2562_s5, %s2555_s3 }
  0xff   : > { %p2559_p5 = pneg %p2558_p3  ;;  %p2565_p13 = por %p2564_p12, %p2563_p7 }
 0x101   : > { %p2566_p0 = pnand %p2565_p13, %p2559_p5 }
 0x103   : > { %2569 = shalt.err (!%p2566_p0)
}
 0x104   : > { %2218 = dma.hbm_to_vmem [thread:$0]  (!%p3037_p10), %s3031_s13, 16, %s3033_s4, %s639_s26  }
 0x105   : > { %p3369_p11 = scmp.ne.s32.totalorder %s3353_s24, 0 }
 0x106   : > { %s3069_s9 = sand.u32 (!%p3369_p11), 1, %s2652_s30  }
 0x107   : > { %657 = sbr.rel (%p3369_p11) target bundleno = 2815 (0xaff), region = 96  ;;  %s660_s2 = scalar_lea.sflag (!%p3369_p11), [#allocation6], %s3069_s9 }
 0x10e   : > { %2623 = dma.done.wait (%p3006_p6), %s660_s2, 16  }
 0x10f   : > { %2625 = vsyncadd (%p3006_p6), %s660_s2, 4294967280  ;;  %p3370_p7 = scmp.ne.s32.totalorder %s3352_s23, 0 }
 0x111   : > { %2627 = dma.done.wait (%p3370_p7), [#allocation9], 272  }
 0x112   : > { %2629 = vsyncadd (%p3370_p7), [#allocation9], 4294967024 }
 0x113   : > { %2631 = dma.done.wait (%p3370_p7), [#allocation12], 272  }
 0x114   : > { %2633 = vsyncadd (%p3370_p7), [#allocation12], 4294967024 }
 0x115   : > { %2635 = dma.done.wait (%p3370_p7), [#allocation15], 32  }
 0x116   : > { %2637 = vsyncadd (%p3370_p7), [#allocation15], 4294967264 }
 0x117   : > { %2639 = dma.done.wait (%p3370_p7), [#allocation18], 16  }
 0x118   : > { %2641 = vsyncadd (%p3370_p7), [#allocation18], 4294967280  ;;  %p755_p6 = scmp.lt.s32.totalorder %s2660_s21, 1  ;;  %v2680_v0 = vmov 0.0   ;;  %vm2681_vm0 = vmmov 0   ;;  %s3371_s13 = sld [smem:[#allocation26_spill]]  ;;  %v983_v49 = vlaneseq }
 0x119   : > { %2061 = vmatprep.subr.bf16.mxu0 %v2680_v0  ;;  %2065 = vmatprep.mubr.msk.bf16.mxu0 %vm2681_vm0, %v2680_v0  ;;  %v2304_v1 = vld [vmem:[#allocation8] sm:$0xff]   ;;  %v2305_v2 = vld [vmem:[#allocation8 + $0x8] sm:$0xff]   ;;  %vm796_vm1 = vcmask 261120   ;;  %s3372_s28 = sld [smem:[#allocation29_spill]]  ;;  %s3373_s2 = sld [smem:[#allocation27_spill]]  ;;  %v2308_v9 = vld [vmem:[#allocation11] sm:$0xff]  }
 0x11a   : > { %s756_s24 = scalar_select %p755_p6, %s2660_s21, 1  ;;  %2069 = vmatprep.subr.bf16.mxu1 %v2680_v0  ;;  %2073 = vmatprep.mubr.msk.bf16.mxu1 %vm2681_vm0, %v2680_v0  ;;  %v2309_v10 = vld [vmem:[#allocation11 + $0x8] sm:$0xff]   ;;  %v1970_v11 = vld [vmem:[#allocation10] ss:$0 sm:$0xff]  ;;  %vm904_vm2 = vcmask 257024   ;;  %vm989_vm3 = vcmask 64512  }
 0x11b   : > { %2062 = vmatpush3.bf16.msra.mxu0 %v2304_v1  ;;  %2070 = vmatpush3.bf16.msra.mxu1 %v2308_v9  ;;  %s3374_s23 = sld [smem:[#allocation30_spill]]  ;;  %s2684_s26 = smov 104   ;;  %v1974_v31 = vld [vmem:[#allocation13] ss:$0 sm:$0xff]  ;;  %vm1052_vm4 = vcmask 1043456   ;;  %v984_v52 = vshrl.u32 %v983_v49, 7 }
 0x11c   : > { %s1968_s19 = sshll.u32 %s756_s24, 3  ;;  %2063 = vmatprep.subr.bf16.mxu0 %v2680_v0  ;;  %2071 = vmatprep.subr.bf16.mxu1 %v2680_v0  ;;  %s3375_s3 = scalar_lea.vmem [#allocation5], %s3069_s9  ;;  %vm1097_vm5 = vcmask 60416   ;;  %vm1225_vm6 = vcmask 126016   ;;  %vm1352_vm7 = vcmask 191616   ;;  %vm1479_vm8 = vcmask 257216  }
 0x11d   : > { %v979_v50 = vld [vmem:[%s3375_s3] sm:$0x1]  ;;  %v985_v54 = vsub.s32 0, %v984_v52  ;;  %s2685_s15 = smov 8   ;;  %s3376_s24 = sld [smem:[#allocation35_spill]]  ;;  %vm1687_vm9 = vcmask 523264  }
 0x11e   : > { %s758_s14 = scalar_lea.vmem %s3371_s13, %s1968_s19  ;;  %s2682_s13 = smov 112   ;;  %v1982_v51 = vadd.f32 -1.0, %v979_v50 }
 0x11f   : > { %v771_v3 = vld [vmem:[%s758_s14] sm:$0xff]  ;;  %s765_s18 = scalar_lea.vmem %s3373_s2, %s1968_s19  ;;  %2064 = vmatpush3.bf16.msra.mxu0 %v2305_v2  ;;  %v2307_v7 = vld [vmem:[%s3372_s28 + $0x8] sm:$0xff]   ;;  %2072 = vmatpush3.bf16.msra.mxu1 %v2309_v10  ;;  %s2683_s14 = smov 120  }
 0x120   : > { %v2306_v4 = vld [vmem:[%s3372_s28] sm:$0xff]   ;;  %v772_v5 = vpack.c.bf16 %v771_v3, %v771_v3  ;;  %2077 = vmatprep.subr.bf16.mxu0 %v2680_v0  ;;  %2085 = vmatprep.subr.bf16.mxu1 %v2680_v0  ;;  %v981_v53 = vmul.f32 1e+10, %v1982_v51  ;;  %s2686_s19 = smov 16   ;;  %s3378_s4 = sld [smem:[#allocation39_spill]] }
 0x121   : > { %v3112_v6 = vld [vmem:[%s765_s18] sm:$0xff]  ;;  %s3379_s2 = sld [smem:[#allocation38_spill]]  ;;  %s3382_s18 = sld [smem:[#allocation42_spill]] }
 0x122   : > { %2066 = vmatmul.mubr.msk.bf16.vlgmr.msra.gmra.mrb[0].mxu0 %vm796_vm1, %v772_v5  ;;  %v909_v8 = vpack.c.bf16 %v3112_v6, %v3112_v6  ;;  %2074 = vmatmul.mubr.msk.bf16.vlgmr.msra.gmra.mrb[0].mxu1 %vm796_vm1, %v772_v5  ;;  %v1978_v18 = vld [vmem:[%s3374_s23] ss:$0 sm:$0xff]  ;;  %v986_v55 = vrot.slane %v981_v53, %v985_v54  ;;  %s2687_s23 = smov 24   ;;  %s3383_s8 = sld [smem:[#allocation43_spill]] }
 0x123   : > { %2078 = vmatpush3.bf16.msra.mxu0 %v2306_v4  ;;  %2081 = vmatprep.mubr.msk.bf16.mxu0 %vm2681_vm0, %v2680_v0  ;;  %p3384_p10 = scmp.ne.s32.totalorder %s3365_s27, 0 }
 0x124   : > { %2079 = vmatprep.subr.bf16.mxu0 %v2680_v0  ;;  %2087 = vmatprep.mubr.msk.bf16.mxu1 %vm2681_vm0, %v2680_v0 }
 0x127   : > { %2080 = vmatpush3.bf16.msra.mxu0 %v2307_v7 }
 0x128   : > { %2091 = vmatprep.subr.bf16.mxu0 %v2680_v0 }
 0x12a   : > { %2082 = vmatmul.mubr.msk.bf16.vlgmr.msra.gmra.mrb[4].mxu0 %vm796_vm1, %v909_v8 }
 0x12b   : > { %2093 = vmatprep.mubr.msk.bf16.mxu0 %vm2681_vm0, %v2680_v0 }
 0x1f5   : > { %v834_v12 = vpop.f32.mrb[0].mxu0  ;;  %v897_v32 = vpop.f32.mrb[0].mxu1 }
 0x1f6   : > { %v835_v13 = vadd.f32 %v1970_v11, %v834_v12  ;;  %v2067_v14 = vpop.f32.mrb[1].mxu0  ;;  %v898_v33 = vadd.f32 %v1974_v31, %v897_v32  ;;  %v2075_v34 = vpop.f32.mrb[1].mxu1 }
 0x1f7   : > { %v837_v15 = vpop.f32.mrb[2].mxu0  ;;  %v900_v35 = vpop.f32.mrb[2].mxu1 }
 0x1f8   : > { %v903_v16 = vpack.c.bf16 %v835_v13, %v835_v13  ;;  %v2068_v17 = vpop.f32.mrb[3].mxu0  ;;  %v906_v36 = vpack.c.bf16 %v898_v33, %v898_v33  ;;  %v2076_v37 = vpop.f32.mrb[3].mxu1 }
 0x1fa   : > { %905 = vst.msk [vmem:[#allocation2] sm:$0xf] %vm904_vm2, %v903_v16  ;;  %907 = vst.msk [vmem:[#allocation3] sm:$0xf] %vm904_vm2, %v906_v36 }
 0x1fd   : > { %v971_v19 = vpop.f32.mrb[4].mxu0 }
 0x1fe   : > { %v972_v20 = vadd.f32 %v1978_v18, %v971_v19  ;;  %v2083_v21 = vpop.f32.mrb[5].mxu0 }
 0x1ff   : > { %v974_v22 = vpop.f32.mrb[6].mxu0 }
 0x200   : > { %v977_v23 = vmul.f32 0.35355338, %v972_v20  ;;  %v2084_v24 = vpop.f32.mrb[7].mxu0 }
 0x201   : > { %v988_v25 = vld [vmem:[#allocation2] sm:$0xf]  ;;  %v1048_v38 = vld [vmem:[#allocation3] sm:$0xf] }
 0x202   : > { %v2310_v26 = vld [vmem:[#allocation2] ss:$0 sps:$4 sm:$0xff]   ;;  %v994_v27 = vsel %vm989_vm3, %v988_v25, 0  ;;  %v978_v29 = vpack.c.bf16 %v977_v23, %v977_v23  ;;  %v1054_v39 = vsel %vm1052_vm4, %v1048_v38, 0  ;;  %v2313_v23 = vld [vmem:[#allocation3] ss:$0 sps:$4 sm:$0xff]  }
 0x203   : > { %v2311_v28 = vld [vmem:[#allocation2] ss:$0 sps:$4 sm:$0xff]   ;;  %2086 = vmatpush3.bf16.xpose.msra.mxu1 %v994_v27  ;;  %1233 = vrot.lane.b32.xlu1 %v2310_v26, %s2682_s13 }
 0x204   : > { %1106 = vrot.lane.b32.xlu0 %v2311_v28, %s2683_s14  ;;  %2097 = vmatprep.subr.bf16.mxu1 %v2680_v0  ;;  %v2312_v30 = vld [vmem:[#allocation2] ss:$0 sps:$4 sm:$0xff]  }
 0x205   : > { %2092 = vmatpush3.bf16.msra.mxu0 %v1054_v39  ;;  %v2314_v39 = vld [vmem:[#allocation3] ss:$0 sps:$4 sm:$0xff]  }
 0x206   : > { %2103 = vmatprep.subr.bf16.mxu0 %v2680_v0 }
 0x207   : > { %1228 = vrot.lane.b32.xlu1 %v978_v29, %s2682_s13 }
 0x208   : > { %1101 = vrot.lane.b32.xlu0 %v978_v29, %s2683_s14 }
 0x20a   : > { %2088 = vmatmul.mubr.msk.bf16.vlgmr.msra.gmra.mrb[4].mxu1 %vm989_vm3, %v978_v29 }
 0x20b   : > { %1355 = vrot.lane.b32.xlu1 %v978_v29, %s2684_s26  ;;  %2099 = vmatprep.mubr.msk.bf16.mxu1 %vm2681_vm0, %v2680_v0 }
 0x20c   : > { %1360 = vrot.lane.b32.xlu0 %v2312_v30, %s2684_s26 }
 0x275   : > { %v1234_v42 = vpop.permute.xlu1 %1233 }
 0x276   : > { %v1107_v40 = vpop.permute.xlu0 %1106  ;;  %v1239_v44 = vsel %vm989_vm3, %v1234_v42, 0 }
 0x277   : > { %v1112_v41 = vsel %vm989_vm3, %v1107_v40, 0 }
 0x278   : > { %2098 = vmatpush3.bf16.xpose.msra.mxu1 %v1112_v41 }
 0x279   : > { %2109 = vmatprep.subr.bf16.mxu1 %v2680_v0  ;;  %v1229_v46 = vpop.permute.xlu1 %1228 }
 0x27a   : > { %v1102_v43 = vpop.permute.xlu0 %1101 }
 0x27d   : > { %v1356_v48 = vpop.permute.xlu1 %1355 }
 0x27e   : > { %v1361_v45 = vpop.permute.xlu0 %1360 }
 0x27f   : > { %2100 = vmatmul.mubr.msk.bf16.vlgmr.msra.gmra.mrb[8].mxu1 %vm989_vm3, %v1102_v43  ;;  %v1366_v47 = vsel %vm989_vm3, %v1361_v45, 0  ;;  %v2315_v43 = vld [vmem:[#allocation3] ss:$0 sps:$4 sm:$0xff]  }
 0x280   : > { %2110 = vmatpush3.bf16.xpose.msra.mxu1 %v1239_v44  ;;  %2111 = vmatprep.mubr.msk.bf16.mxu1 %vm2681_vm0, %v2680_v0 }
 0x281   : > { %2121 = vmatprep.subr.bf16.mxu1 %v2680_v0 }
 0x287   : > { %2112 = vmatmul.mubr.msk.bf16.vlgmr.msra.gmra.mrb[12].mxu1 %vm989_vm3, %v1229_v46 }
 0x288   : > { %2122 = vmatpush3.bf16.xpose.msra.mxu1 %v1366_v47  ;;  %2123 = vmatprep.mubr.msk.bf16.mxu1 %vm2681_vm0, %v2680_v0 }
 0x289   : > { %2133 = vmatprep.subr.bf16.mxu1 %v2680_v0 }
 0x28f   : > { %2124 = vmatmul.mubr.msk.bf16.vlgmr.msra.gmra.mrb[16].mxu1 %vm989_vm3, %v1356_v48 }
 0x290   : > { %2137 = vmatprep.mubr.msk.bf16.mxu1 %vm2681_vm0, %v2680_v0 }
 0x2dd   : > { %v1030_v56 = vpop.f32.mrb[4].mxu1 }
 0x2de   : > { %v1031_v57 = vadd.f32 %v1030_v56, %v986_v55  ;;  %v2089_v58 = vpop.f32.mrb[5].mxu1 }
 0x2df   : > { %v1033_v59 = vpop.f32.mrb[6].mxu1 }
 0x2e0   : > { %v2090_v60 = vpop.f32.mrb[7].mxu1  ;;  %v1036_v61 = vsel %vm989_vm3, %v1031_v57, -inf }
 0x2e1   : > { %1037 = vmax.xlane.f32.xlu0 %v1036_v61 }
 0x352   : > { %v1148_v62 = vpop.f32.mrb[8].mxu1 }
 0x353   : > { %v1149_v63 = vadd.f32 %v1148_v62, %v986_v55  ;;  %v2101_v1 = vpop.f32.mrb[9].mxu1 }
 0x354   : > { %v1151_v2 = vpop.f32.mrb[10].mxu1 }
 0x355   : > { %v2102_v3 = vpop.f32.mrb[11].mxu1  ;;  %v1154_v4 = vsel %vm989_vm3, %v1149_v63, -inf }
 0x356   : > { %1155 = vmax.xlane.f32.xlu1 %v1154_v4 }
 0x35a   : > { %v1275_v5 = vpop.f32.mrb[12].mxu1 }
 0x35b   : > { %v1276_v7 = vadd.f32 %v1275_v5, %v986_v55  ;;  %v2113_v8 = vpop.f32.mrb[13].mxu1 }
 0x35c   : > { %v1278_v9 = vpop.f32.mrb[14].mxu1 }
 0x35d   : > { %v2114_v10 = vpop.f32.mrb[15].mxu1  ;;  %v1281_v11 = vsel %vm989_vm3, %v1276_v7, -inf }
 0x35e   : > { %1282 = vmax.xlane.f32.xlu0 %v1281_v11  ;;  %v2316_v11 = vld [vmem:[%s3376_s24] sm:$0xff]  }
 0x35f   : > { %2134 = vmatpush3.bf16.msra.mxu1 %v2316_v11 }
 0x360   : > { %2135 = vmatprep.subr.bf16.mxu1 %v2680_v0 }
 0x362   : > { %v1402_v12 = vpop.f32.mrb[16].mxu1 }
 0x363   : > { %v1403_v13 = vadd.f32 %v1402_v12, %v986_v55  ;;  %v2125_v14 = vpop.f32.mrb[17].mxu1 }
 0x364   : > { %v1405_v15 = vpop.f32.mrb[18].mxu1 }
 0x365   : > { %v2126_v16 = vpop.f32.mrb[19].mxu1  ;;  %v1408_v17 = vsel %vm989_vm3, %v1403_v13, -inf }
 0x366   : > { %1409 = vmax.xlane.f32.xlu0 %v1408_v17 }
 0x36e   : > { %v1038_v18 = vpop.xlane.xlu0 %1037 }
 0x36f   : > { %v1039_v19 = vsub.f32 %v1031_v57, %v1038_v18 }
 0x371   : > { %v1040_v20 = vmul.f32 1.442695, %v1039_v19 }
 0x373   : > { %2324 = vpow2.f32 %v1040_v20 }
 0x37d   : > { %v2325_v21 = vpop.eup %2324 }
 0x37e   : > { %v1042_v22 = vsel %vm989_vm3, %v2325_v21, 0.0 }
 0x37f   : > { %1043 = vadd.xlane.f32.xlu1 %v1042_v22 }
 0x390   : > { %1170 = vrot.lane.b32.xlu1 %v2313_v23, %s2683_s14  ;;  %s1763_s14 = scalar_lea.sflag [#allocation7], %s3069_s9 }
 0x3e3   : > { %v1156_v24 = vpop.xlane.xlu1 %1155 }
 0x3e4   : > { %v1157_v25 = vsub.f32 %v1149_v63, %v1156_v24 }
 0x3e6   : > { %v1158_v26 = vmul.f32 1.442695, %v1157_v25 }
 0x3e8   : > { %2326 = vpow2.f32 %v1158_v26 }
 0x3eb   : > { %v1283_v27 = vpop.xlane.xlu0 %1282 }
 0x3ec   : > { %v1284_v28 = vsub.f32 %v1276_v7, %v1283_v27  ;;  %v2000_v27 = vld [vmem:[#allocation14] ss:$0 sm:$0xff] }
 0x3ee   : > { %v1285_v29 = vmul.f32 1.442695, %v1284_v28 }
 0x3f0   : > { %2328 = vpow2.f32 %v1285_v29 }
 0x3f2   : > { %v2327_v30 = vpop.eup %2326 }
 0x3f3   : > { %v1410_v31 = vpop.xlane.xlu0 %1409  ;;  %v1160_v32 = vsel %vm989_vm3, %v2327_v30, 0.0 }
 0x3f4   : > { %v1411_v33 = vsub.f32 %v1403_v13, %v1410_v31  ;;  %1161 = vadd.xlane.f32.xlu0 %v1160_v32  ;;  %v2317_v13 = vld [vmem:[%s3376_s24 + $0x8] sm:$0xff]  }
 0x3f5   : > { %2136 = vmatpush3.bf16.msra.mxu1 %v2317_v13 }
 0x3f6   : > { %v1412_v34 = vmul.f32 1.442695, %v1411_v33  ;;  %2149 = vmatprep.subr.bf16.mxu1 %v2680_v0 }
 0x3f8   : > { %2330 = vpow2.f32 %v1412_v34 }
 0x3fa   : > { %v2329_v35 = vpop.eup %2328 }
 0x3fb   : > { %v1287_v36 = vsel %vm989_vm3, %v2329_v35, 0.0 }
 0x3fc   : > { %1288 = vadd.xlane.f32.xlu1 %v1287_v36 }
 0x402   : > { %v2331_v37 = vpop.eup %2330 }
 0x403   : > { %v1414_v38 = vsel %vm989_vm3, %v2331_v37, 0.0 }
 0x404   : > { %1415 = vadd.xlane.f32.xlu0 %v1414_v38 }
 0x40c   : > { %v1044_v40 = vpop.xlane.xlu1 %1043 }
 0x40d   : > { %2332 = vrcp.f32 %v1044_v40  ;;  %1424 = vrot.lane.b32.xlu1 %v2314_v39, %s2684_s26  ;;  %s3377_s26 = sld [smem:[#allocation37_spill]] }
 0x410   : > { %v1171_v44 = vpop.permute.xlu1 %1170 }
 0x411   : > { %v1176_v46 = vsel %vm1052_vm4, %v1171_v44, 0 }
 0x413   : > { %v2318_v40 = vld [vmem:[%s3377_s26] sm:$0xff]  }
 0x417   : > { %v2333_v41 = vpop.eup %2332 }
 0x418   : > { %v1046_v42 = vmul.f32 %v2333_v41, %v2325_v21  ;;  %v2319_v41 = vld [vmem:[%s3377_s26 + $0x8] sm:$0xff]  }
 0x41a   : > { %1297 = vrot.lane.b32.xlu0 %v2315_v43, %s2682_s13  ;;  %v1047_v45 = vpack.c.bf16 %v1046_v42, %v1046_v42  ;;  %v2321_v42 = vld [vmem:[%s3378_s4 + $0x8] sm:$0xff]   ;;  %s1967_s13 = sshll.u32 %s3069_s9, 3 }
 0x41c   : > { %2094 = vmatmul.mubr.msk.bf16.vlgmr.msra.gmra.mrb[8].mxu0 %vm989_vm3, %v1047_v45 }
 0x41d   : > { %2104 = vmatpush3.bf16.msra.mxu0 %v1176_v46  ;;  %2105 = vmatprep.mubr.msk.bf16.mxu0 %vm2681_vm0, %v2680_v0 }
 0x41e   : > { %2115 = vmatprep.subr.bf16.mxu0 %v2680_v0 }
 0x481   : > { %v1162_v47 = vpop.xlane.xlu0 %1161 }
 0x482   : > { %2334 = vrcp.f32 %v1162_v47  ;;  %v2004_v47 = vld [vmem:[#allocation16] ss:$0 sm:$0xff] }
 0x489   : > { %v1289_v48 = vpop.xlane.xlu1 %1288 }
 0x48a   : > { %2336 = vrcp.f32 %v1289_v48 }
 0x48c   : > { %v2335_v49 = vpop.eup %2334 }
 0x48d   : > { %v1164_v50 = vmul.f32 %v2335_v49, %v2327_v30  ;;  %v1425_v57 = vpop.permute.xlu1 %1424  ;;  %v2005_v49 = vld [vmem:[#allocation17] ss:$0 sm:$0xff] }
 0x48e   : > { %v1430_v59 = vsel %vm1052_vm4, %v1425_v57, 0 }
 0x48f   : > { %v1165_v51 = vpack.c.bf16 %v1164_v50, %v1164_v50 }
 0x491   : > { %2106 = vmatmul.mubr.msk.bf16.vlgmr.msra.gmra.mrb[12].mxu0 %vm989_vm3, %v1165_v51  ;;  %v1416_v52 = vpop.xlane.xlu0 %1415 }
 0x492   : > { %2338 = vrcp.f32 %v1416_v52  ;;  %2117 = vmatprep.mubr.msk.bf16.mxu0 %vm2681_vm0, %v2680_v0 }
 0x494   : > { %v2337_v53 = vpop.eup %2336 }
 0x495   : > { %v1291_v54 = vmul.f32 %v2337_v53, %v2329_v35  ;;  %v1298_v55 = vpop.permute.xlu0 %1297  ;;  %v2322_v53 = vld [vmem:[%s3378_s4 + $0x10] sm:$0xff]  }
 0x496   : > { %v1303_v56 = vsel %vm1052_vm4, %v1298_v55, 0  ;;  %v2006_v55 = vld [vmem:[%s3379_s2] ss:$0 sm:$0xff] }
 0x497   : > { %2116 = vmatpush3.bf16.msra.mxu0 %v1303_v56  ;;  %v1292_v58 = vpack.c.bf16 %v1291_v54, %v1291_v54  ;;  %v2323_v54 = vld [vmem:[%s3378_s4 + $0x18] sm:$0xff]  }
 0x498   : > { %2127 = vmatprep.subr.bf16.mxu0 %v2680_v0 }
 0x49a   : > { %2118 = vmatmul.mubr.msk.bf16.vlgmr.msra.gmra.mrb[16].mxu0 %vm989_vm3, %v1292_v58 }
 0x49b   : > { %2128 = vmatpush3.bf16.msra.mxu0 %v1430_v59  ;;  %2129 = vmatprep.mubr.msk.bf16.mxu0 %vm2681_vm0, %v2680_v0 }
 0x49c   : > { %v2339_v60 = vpop.eup %2338  ;;  %2141 = vmatprep.subr.bf16.mxu0 %v2680_v0 }
 0x49d   : > { %v1418_v61 = vmul.f32 %v2339_v60, %v2331_v37 }
 0x49f   : > { %v1419_v62 = vpack.c.bf16 %v1418_v61, %v1418_v61 }
 0x4a2   : > { %2130 = vmatmul.mubr.msk.bf16.vlgmr.msra.gmra.mrb[20].mxu0 %vm989_vm3, %v1419_v62 }
 0x4a3   : > { %2145 = vmatprep.mubr.msk.bf16.mxu0 %vm2681_vm0, %v2680_v0  ;;  %2142 = vmatpush3.bf16.msra.mxu0 %v2318_v40 }
 0x4a4   : > { %2143 = vmatprep.subr.bf16.mxu0 %v2680_v0 }
 0x4a7   : > { %2144 = vmatpush3.bf16.msra.mxu0 %v2319_v41 }
 0x4ef   : > { %v1090_v63 = vpop.f32.mrb[8].mxu0 }
 0x4f0   : > { %v1096_v1 = vpack.c.bf16 %v1090_v63, %v1090_v63  ;;  %v2095_v2 = vpop.f32.mrb[9].mxu0 }
 0x4f1   : > { %v1093_v3 = vpop.f32.mrb[10].mxu0 }
 0x4f2   : > { %1098 = vst.msk [vmem:[#allocation4] sm:$0xf] %vm1097_vm5, %v1096_v1  ;;  %v2096_v4 = vpop.f32.mrb[11].mxu0 }
 0x564   : > { %v1212_v5 = vpop.f32.mrb[12].mxu0 }
 0x565   : > { %v2022_v7 = vpack.c.bf16 %v1212_v5, %v1212_v5  ;;  %v2107_v8 = vpop.f32.mrb[13].mxu0 }
 0x566   : > { %v1215_v9 = vpop.f32.mrb[14].mxu0 }
 0x567   : > { %1222 = vrot.lane.b32.xlu1 %v2022_v7, %s2685_s15  ;;  %v2108_v10 = vpop.f32.mrb[15].mxu0  ;;  %s3381_s15 = sld [smem:[#allocation41_spill]] }
 0x56d   : > { %v1339_v12 = vpop.f32.mrb[16].mxu0 }
 0x56e   : > { %v2023_v14 = vpack.c.bf16 %v1339_v12, %v1339_v12  ;;  %v2119_v15 = vpop.f32.mrb[17].mxu0 }
 0x56f   : > { %v1342_v16 = vpop.f32.mrb[18].mxu0 }
 0x570   : > { %1349 = vrot.lane.b32.xlu0 %v2023_v14, %s2686_s19  ;;  %v2120_v17 = vpop.f32.mrb[19].mxu0  ;;  %s2019_s19 = sshll.u32 %s2660_s21, 7  ;;  %s2688_s21 = smov [#allocation19]  }
 0x571   : > { %v2016_v17 = vld [vmem:[%s3381_s15] ss:$0 sm:$0xff]  ;;  %s3252_s10 = scalar_lea.hbm %s3383_s8, %s2019_s19 }
 0x575   : > { %v1466_v18 = vpop.f32.mrb[20].mxu0 }
 0x576   : > { %v2024_v19 = vpack.c.bf16 %v1466_v18, %v1466_v18  ;;  %v2131_v20 = vpop.f32.mrb[21].mxu0 }
 0x577   : > { %v1469_v21 = vpop.f32.mrb[22].mxu0 }
 0x578   : > { %1476 = vrot.lane.b32.xlu1 %v2024_v19, %s2687_s23  ;;  %v2132_v22 = vpop.f32.mrb[23].mxu0  ;;  %s3380_s23 = sld [smem:[#allocation40_spill]]  ;;  %v2017_v19 = vld [vmem:[%s3382_s18] ss:$0 sm:$0xff] }
 0x5d9   : > { %v1223_v23 = vpop.permute.xlu1 %1222 }
 0x5da   : > { %1226 = vst.msk [vmem:[#allocation4] sm:$0xf] %vm1225_vm6, %v1223_v23 }
 0x5e2   : > { %v1350_v24 = vpop.permute.xlu0 %1349 }
 0x5e3   : > { %1353 = vst.msk [vmem:[#allocation4] sm:$0xf] %vm1352_vm7, %v1350_v24 }
 0x5ea   : > { %v1477_v25 = vpop.permute.xlu1 %1476 }
 0x5eb   : > { %1480 = vst.msk [vmem:[#allocation4] sm:$0xf] %vm1479_vm8, %v1477_v25 }
 0x5f2   : > { %v1481_v26 = vld [vmem:[#allocation4] sm:$0xf] }
 0x5f3   : > { %2138 = vmatmul.mubr.msk.bf16.vlgmr.msra.gmra.mrb[20].mxu1 %vm796_vm1, %v1481_v26 }
 0x5f4   : > { %2157 = vmatprep.mubr.msk.bf16.mxu1 %vm2681_vm0, %v2680_v0 }
 0x6c6   : > { %v1542_v28 = vpop.f32.mrb[20].mxu1 }
 0x6c7   : > { %v1543_v29 = vadd.f32 %v2000_v27, %v1542_v28  ;;  %v2139_v30 = vpop.f32.mrb[21].mxu1 }
 0x6c8   : > { %v1545_v31 = vpop.f32.mrb[22].mxu1 }
 0x6c9   : > { %v2140_v32 = vpop.f32.mrb[23].mxu1  ;;  %v1548_v33 = vadd.f32 %v1543_v29, %v3112_v6  ;;  %v2320_v6 = vld [vmem:[%s3378_s4] sm:$0xff]  }
 0x6ca   : > { %2150 = vmatpush3.bf16.msra.mxu1 %v2320_v6 }
 0x6cb   : > { %v1551_v34 = vsel %vm796_vm1, %v1548_v33, 0.0  ;;  %2151 = vmatprep.subr.bf16.mxu1 %v2680_v0 }
 0x6cc   : > { %1552 = vadd.xlane.f32.xlu0 %v1551_v34 }
 0x6ce   : > { %2152 = vmatpush3.bf16.msra.mxu1 %v2321_v42 }
 0x6cf   : > { %2153 = vmatprep.subr.bf16.mxu1 %v2680_v0 }
 0x6d2   : > { %2154 = vmatpush3.bf16.msra.mxu1 %v2322_v53 }
 0x6d3   : > { %2155 = vmatprep.subr.bf16.mxu1 %v2680_v0  ;;  %v2010_v0 = vld [vmem:[%s3380_s23] ss:$0 sm:$0xff]  ;;  %s754_s23 = scalar_lea.vmem [#allocation19], %s1967_s13  ;;  %s2574_s13 = sshll.u32 %s2688_s21, 4  ;;  %s2575_s13 = int_to_ptr.vmem [resolvable:$false] %s2574_s13 }
 0x6d4   : > { %s1777_s4 = sshll.u32 %s754_s23, 4  ;;  %s2576_s15 = scalar_lea.vmem %s2575_s13, 256  ;;  %s3254_s4 = int_to_ptr.vmem [resolvable:$true] %s1777_s4 }
 0x6d5   : > { %s2570_s3 = scalar_lea.vmem %s3254_s4, 128  ;;  %p2577_p4 = scmp.lt.s32.totalorder %s3254_s4, %s2575_s13 }
 0x6d6   : > { %2156 = vmatpush3.bf16.msra.mxu1 %v2323_v54  ;;  %p2571_p5 = scmp.ne.s32.totalorder %s3254_s4, %s2570_s3  ;;  %p2578_p9 = scmp.lt.s32.totalorder %s2576_s15, %s2570_s3 }
 0x6d8   : > { %p2572_p1 = pnand %p2571_p5, %p3384_p10  ;;  %p2579_p8 = por %p2578_p9, %p2577_p4 }
 0x6da   : > { %p2573_p2 = pneg %p2572_p1 }
 0x6dc   : > { %p2580_p3 = pnand %p2579_p8, %p2573_p2 }
 0x759   : > { %v1553_v35 = vpop.xlane.xlu0 %1552 }
 0x75a   : > { %v1555_v36 = vmul.f32 0.03125, %v1553_v35 }
 0x75c   : > { %v1556_v37 = vsub.f32 %v1548_v33, %v1555_v36 }
 0x75e   : > { %v1557_v38 = vmul.f32 %v1556_v37, %v1556_v37 }
 0x760   : > { %v1558_v39 = vsel %vm796_vm1, %v1557_v38, 0.0 }
 0x761   : > { %1559 = vadd.xlane.f32.xlu1 %v1558_v39 }
 0x7ee   : > { %v1560_v43 = vpop.xlane.xlu1 %1559 }
 0x7ef   : > { %v1561_v44 = vmul.f32 0.03125, %v1560_v43 }
 0x7f1   : > { %v1562_v45 = vadd.f32 1e-06, %v1561_v44 }
 0x7f3   : > { %2340 = vrsqrt.f32 %v1562_v45 }
 0x7fd   : > { %v2341_v46 = vpop.eup %2340 }
 0x7fe   : > { %v1564_v48 = vmul.f32 %v2341_v46, %v1556_v37 }
 0x800   : > { %v1571_v50 = vmul.f32 %v2004_v47, %v1564_v48 }
 0x802   : > { %v1578_v51 = vadd.f32 %v2005_v49, %v1571_v50 }
 0x804   : > { %v1579_v52 = vpack.c.bf16 %v1578_v51, %v1578_v51 }
 0x806   : > { %2146 = vmatmul.mubr.msk.bf16.vlgmr.msra.gmra.mrb[24].mxu0 %vm796_vm1, %v1579_v52 }
 0x8d9   : > { %v1640_v56 = vpop.f32.mrb[24].mxu0 }
 0x8da   : > { %v1641_v57 = vadd.f32 %v2006_v55, %v1640_v56  ;;  %v2147_v58 = vpop.f32.mrb[25].mxu0 }
 0x8db   : > { %v1643_v59 = vpop.f32.mrb[26].mxu0 }
 0x8dc   : > { %v1646_v60 = vmax.f32 %v1641_v57, 0.0  ;;  %v2148_v61 = vpop.f32.mrb[27].mxu0 }
 0x8de   : > { %v1647_v62 = vpack.c.bf16 %v1646_v60, %v1646_v60 }
 0x8e0   : > { %2158 = vmatmul.mubr.msk.bf16.vlgmr.msra.gmra.mrb[24].mxu1 %vm1687_vm9, %v1647_v62 }
 0x9b3   : > { %v1725_v63 = vpop.f32.mrb[24].mxu1 }
 0x9b4   : > { %v1726_v1 = vadd.f32 %v2010_v0, %v1725_v63  ;;  %v2159_v2 = vpop.f32.mrb[25].mxu1 }
 0x9b5   : > { %v1728_v3 = vpop.f32.mrb[26].mxu1 }
 0x9b6   : > { %v2160_v4 = vpop.f32.mrb[27].mxu1  ;;  %v1731_v5 = vadd.f32 %v1726_v1, %v1578_v51 }
 0x9b8   : > { %v1734_v7 = vsel %vm796_vm1, %v1731_v5, 0.0 }
 0x9b9   : > { %1735 = vadd.xlane.f32.xlu0 %v1734_v7 }
 0xa46   : > { %v1736_v8 = vpop.xlane.xlu0 %1735 }
 0xa47   : > { %v1737_v9 = vmul.f32 0.03125, %v1736_v8 }
 0xa49   : > { %v1738_v10 = vsub.f32 %v1731_v5, %v1737_v9 }
 0xa4b   : > { %v1739_v11 = vmul.f32 %v1738_v10, %v1738_v10 }
 0xa4d   : > { %v1740_v12 = vsel %vm796_vm1, %v1739_v11, 0.0 }
 0xa4e   : > { %1741 = vadd.xlane.f32.xlu0 %v1740_v12 }
 0xadb   : > { %v1742_v13 = vpop.xlane.xlu0 %1741 }
 0xadc   : > { %v1743_v14 = vmul.f32 0.03125, %v1742_v13 }
 0xade   : > { %v1744_v15 = vadd.f32 1e-06, %v1743_v14 }
 0xae0   : > { %2342 = vrsqrt.f32 %v1744_v15 }
 0xaea   : > { %v2343_v16 = vpop.eup %2342 }
 0xaeb   : > { %v1746_v18 = vmul.f32 %v2343_v16, %v1738_v10 }
 0xaed   : > { %v1753_v20 = vmul.f32 %v2016_v17, %v1746_v18 }
 0xaef   : > { %v1760_v21 = vadd.f32 %v2017_v19, %v1753_v20 }
 0xaf1   : > { %1761 = vst.msk [vmem:[%s754_s23] sm:$0xff] %vm796_vm1, %v1760_v21 }
 0xaf2   : > { %2583 = shalt.err (!%p2580_p3)
}
 0xaf3   : > { %s2584_s6 = scalar_lea.hbm %s3252_s10, 128  ;;  %s2588_s5 = scalar_lea.hbm %s3383_s8, 256 }
 0xaf4   : > { %p2585_p12 = scmp.ne.s32.totalorder %s3252_s10, %s2584_s6  ;;  %p2589_p11 = scmp.lt.u32.totalorder %s3252_s10, %s3383_s8 }
 0xaf5   : > { %p2590_p7 = scmp.lt.u32.totalorder %s2588_s5, %s2584_s6  ;;  %p2592_p5 = scmp.lt.u32.totalorder %s2584_s6, %s3252_s10 }
 0xaf6   : > { %p2586_p13 = pnand %p2585_p12, %p3384_p10 }
 0xaf7   : > { %p2591_p6 = por %p2590_p7, %p2589_p11 }
 0xaf8   : > { %p2587_p0 = pneg %p2586_p13 }
 0xaf9   : > { %p2593_p1 = por %p2592_p5, %p2591_p6 }
 0xafb   : > { %p2594_p2 = pnand %p2593_p1, %p2587_p0 }
 0xafd   : > { %2597 = shalt.err (!%p2594_p2)
}
 0xafe   : > { %2191 = dma.vmem_to_hbm [thread:$0]  (%p3384_p10), %s3254_s4, 128, %s3252_s10, %s1763_s14  }
 0xaff PF: > { %s1789_s19 = sand.u32 1, %s2648_s0   ;;  %p3385_p4 = scmp.ne.s32.totalorder %s3366_s16, 0 }
 0xb00   : > { %p3386_p9 = scmp.ge.s32.totalorder %s2668_s22, 2  ;;  %s1790_s23 = scalar_lea.sflag [#allocation7], %s1789_s19 }
 0xb02   : > { %p2220_p8 = pnand %p3386_p9, %p3385_p4 }
 0xb04   : > { %2643 = dma.done.wait (!%p2220_p8), %s1790_s23, 128  }
 0xb05   : > { %2645 = vsyncadd (!%p2220_p8), %s1790_s23, 4294967168  ;;  %s39_s22 = sadd.s32 1, %s2668_s22   ;;  %s3387_s0 = smov %s2652_s30 }
 0xb06   : > { %p36_p3 = scmp.ge.s32.totalorder %s39_s22, 4   ;;  %s3388_s30 = smov %s2656_s20 }
 0xb07   : > { %s3389_s20 = smov %s3020_s29  ;;  %s3390_s21 = smov %s2664_s1 }
 0xb08   : > { %s3391_s1 = smov %s3393_s17  ;;  %38 = sbr.rel (!%p36_p3) target bundleno = 29 (0x1d), region = 179 }
 0xb0f   :  { %1795 = vsyncpa [#allocation6], 1 }
 0xb10   :  { %1797 = vsyncpa [#allocation6 + $0x1], 1 }
 0xb11   :  { %1798 = vsyncpa [#allocation9], 1 }
 0xb12   :  { %1799 = vsyncpa [#allocation12], 1 }
 0xb13   :  { %1800 = vsyncpa [#allocation15], 1 }
 0xb14   :  { %1801 = vsyncpa [#allocation18], 1 }
 0xb15   :  { %1802 = vsyncpa [#allocation7], 1 }
 0xb16   :  { %1804 = vsyncpa [#allocation7 + $0x1], 1 }

</bundles_post_ra>
